<compile_context>
chip_gen: v5e
topology: v5e:2x2
jax: 0.10.0
libtpu: 0.0.40
codegen_flags: <defaults>
</compile_context>

<pallas_src>
import functools

import numpy as np
import jax
import jax.numpy as jnp
from jax import lax
from jax.experimental import pallas as pl
from jax.experimental.pallas import tpu as pltpu


P_PARTS = 3       # semantic parts handled jointly by the correspondence kernel
VCOLS = 16        # packed value columns: 3*P colors + P masks + pad -> 16 lanes
TM_MAX = 256      # query-row tile (256-aligned for v6e/v7x MXU)
TK_MAX = 512      # key-column chunk sliced from the VMEM-resident K
FPN_TM_MAX = 1024  # row tile of the FPN conv matmul


def _round_up(x, m):
    return ((x + m - 1) // m) * m


# -----------------------------------------------------------------------------
# Kernel 1: multi-part masked flash attention (hot path of get_color_refer)
#   Shared-max online softmax.  Key-side masks are folded into the packed value
#   columns by the wrapper, so one (TM,TK)x(TK,16) PV matmul per step yields all
#   per-part numerators AND denominators.  K/V stay resident in VMEM; the j grid
#   axis only walks pl.ds slices of the resident buffers.
# -----------------------------------------------------------------------------
def _mp_flash_kernel(tao_ref, q_ref, k_ref, v_ref, o_ref, m_sc, acc_sc, *, tk):
    j = pl.program_id(1)

    @pl.when(j == 0)
    def _init():
        m_sc[...] = jnp.full_like(m_sc, -1e30)
        acc_sc[...] = jnp.zeros_like(acc_sc)

    tao = tao_ref[0, 0]                               # SMEM scalar
    kstart = pl.multiple_of(j * tk, tk)
    k_chunk = k_ref[pl.ds(kstart, tk), :]             # (tk, C)   bf16, VMEM-resident
    v_chunk = v_ref[pl.ds(kstart, tk), :]             # (tk, 16)  bf16, VMEM-resident

    # shared similarity tile (TM, tk): contraction over channels, no transpose.
    s = lax.dot_general(q_ref[...], k_chunk, (((1,), (1,)), ((), ())),
                        preferred_element_type=jnp.float32) * tao

    m_old = m_sc[...]                                 # (TM, 1)
    m_new = jnp.maximum(m_old, jnp.max(s, axis=1, keepdims=True))
    alpha = jnp.exp(m_old - m_new)
    p = jnp.exp(s - m_new)                            # single exp per sim element
    acc_sc[...] = alpha * acc_sc[...] + jnp.dot(
        p.astype(jnp.bfloat16), v_chunk, preferred_element_type=jnp.float32)
    m_sc[...] = m_new

    @pl.when(j == pl.num_programs(1) - 1)
    def _finalize():
        acc = acc_sc[...]                                        # (TM, 16)
        l = jnp.maximum(acc[:, 3 * P_PARTS:4 * P_PARTS], 1e-6)   # (TM, P); l==0 -> 0
        inv = pl.reciprocal(l, approx=True)                      # (TM, P)
        # selector[p, c] = 1 iff column c carries part p's colors (c in [3p, 3p+3))
        col = lax.broadcasted_iota(jnp.int32, (P_PARTS, VCOLS), 1)
        row = lax.broadcasted_iota(jnp.int32, (P_PARTS, VCOLS), 0)
        sel = ((col >= 3 * row) & (col < 3 * row + 3)).astype(jnp.float32)
        den = jnp.dot(inv, sel, preferred_element_type=jnp.float32)  # (TM, 16)
        o_ref[...] = (acc * den).astype(o_ref.dtype)     # full-width, lane-dense store


def masked_multipart_attention(tao, q, k, v_packed):
    """
    q        : (HWq, C)   bf16  normalized query features
    k        : (HWk, C)   bf16  normalized key features (kept resident in VMEM)
    v_packed : (HWk, 16)  bf16  packed values: [m0*c | m1*c | m2*c | m0 m1 m2 | 0..]
    returns (HWq, 9) bf16 per-part attention outputs (query-side gating outside).
    """
    HWq, C = q.shape
    HWk = k.shape[0]
    V = v_packed.shape[1]

    TM = min(TM_MAX, _round_up(HWq, 128))
    TK = min(TK_MAX, _round_up(HWk, 128))
    HWq_p = _round_up(HWq, TM)
    HWk_p = _round_up(HWk, TK)
    if HWq_p != HWq:
        q = jnp.pad(q, ((0, HWq_p - HWq), (0, 0)))
    if HWk_p != HWk:
        # padded key rows are zero => zero value/mask columns => no contribution
        k = jnp.pad(k, ((0, HWk_p - HWk), (0, 0)))
        v_packed = jnp.pad(v_packed, ((0, HWk_p - HWk), (0, 0)))
    grid = (HWq_p // TM, HWk_p // TK)
    # NOTE(v7x): at realistic sizes (HWq=16384, TM=256) the parallel i-axis has 64
    # tiles (even) so both TensorCores get work; at toy sizes it degenerates to 1.

    cost = pl.CostEstimate(
        flops=2 * HWq_p * HWk_p * C + 2 * HWq_p * HWk_p * V,
        transcendentals=HWq_p * HWk_p,
        bytes_accessed=(HWq_p * C + HWk_p * C + HWk_p * V + HWq_p * V) * 2 + 4)

    kernel = functools.partial(_mp_flash_kernel, tk=TK)
    out = pl.pallas_call(
        kernel,
        out_shape=jax.ShapeDtypeStruct((HWq_p, V), jnp.bfloat16),
        grid_spec=pltpu.PrefetchScalarGridSpec(
            num_scalar_prefetch=0,
            grid=grid,
            in_specs=[
                pl.BlockSpec(memory_space=pltpu.MemorySpace.SMEM),  # tao (1,1)
                pl.BlockSpec((TM, C), lambda i, j: (i, 0)),         # q tile
                pl.BlockSpec((HWk_p, C), lambda i, j: (0, 0)),      # K resident
                pl.BlockSpec((HWk_p, V), lambda i, j: (0, 0)),      # V resident
            ],
            out_specs=pl.BlockSpec((TM, V), lambda i, j: (i, 0)),
            scratch_shapes=[
                pltpu.VMEM((TM, 1), jnp.float32),   # running max
                pltpu.VMEM((TM, V), jnp.float32),   # acc (incl. denominator cols)
            ]),
        compiler_params=pltpu.CompilerParams(
            dimension_semantics=("parallel", "arbitrary")),
        cost_estimate=cost,
    )(tao, q, k, v_packed)
    return out[:HWq, :3 * P_PARTS]


def pack_values(vals_per_part, masks_per_part):
    """Fold key-side masks into value columns; append mask columns for the
    softmax denominators; pad lane-width to VCOLS."""
    cols = [v * m[:, None] for v, m in zip(vals_per_part, masks_per_part)]
    cols.append(jnp.stack(masks_per_part, axis=1))        # (HW, P)
    packed = jnp.concatenate(cols, axis=1)                # (HW, 3P + P) = 12
    pad = VCOLS - packed.shape[1]
    if pad:
        packed = jnp.pad(packed, ((0, 0), (0, pad)))
    return packed.astype(jnp.bfloat16)


# -----------------------------------------------------------------------------
# Kernel 2: FPN feature extraction — 3x3 stride-2 conv as im2col matmul with the
#           per-position feature normalization FUSED in; bf16 output.
# -----------------------------------------------------------------------------
def _fpn_conv_norm_kernel(patches_ref, w_ref, b_ref, o_ref):
    acc = jnp.dot(patches_ref[...], w_ref[...], preferred_element_type=jnp.float32)
    acc = jnp.maximum(acc + b_ref[...], 0.0)
    # CoCosNet-style per-position feature normalization (mean-center + L2)
    acc = acc - jnp.mean(acc, axis=1, keepdims=True)
    acc = acc * lax.rsqrt(jnp.sum(acc * acc, axis=1, keepdims=True) + 1e-6)
    o_ref[...] = acc.astype(o_ref.dtype)


def fpn_conv_norm(patches, w, b, tm):
    # patches: (R, 32) bf16 with R a multiple of tm
    R, Kp = patches.shape
    C = w.shape[1]
    return pl.pallas_call(
        _fpn_conv_norm_kernel,
        out_shape=jax.ShapeDtypeStruct((R, C), jnp.bfloat16),
        grid_spec=pltpu.PrefetchScalarGridSpec(
            num_scalar_prefetch=0,
            grid=(R // tm,),
            in_specs=[
                pl.BlockSpec((tm, Kp), lambda i: (i, 0)),
                pl.BlockSpec((Kp, C), lambda i: (0, 0)),
                pl.BlockSpec((1, C), lambda i: (0, 0)),
            ],
            out_specs=pl.BlockSpec((tm, C), lambda i: (i, 0))),
        compiler_params=pltpu.CompilerParams(dimension_semantics=("parallel",)),
    )(patches, w, b)


# -----------------------------------------------------------------------------
# Glue helpers (plain JAX; approximations of the undefined torch helpers)
# -----------------------------------------------------------------------------
def im2col_3x3_s2(x_nhwc):
    # 3x3 kernel, stride 2, padding 1
    # TODO(synk): im2col is materialized in HBM; could be fused via shifted
    # BlockSpec reads or lax.conv, but the traffic is tiny vs. the attention.
    N, H, W, Cin = x_nhwc.shape
    xp = jnp.pad(x_nhwc, ((0, 0), (1, 1), (1, 1), (0, 0)))
    patches = []
    for dh in range(3):
        for dw in range(3):
            patches.append(xp[:, dh:dh + H:2, dw:dw + W:2, :])
    p = jnp.concatenate(patches, axis=-1)                  # (N, H/2, W/2, 9*Cin)
    return p.reshape(N * (H // 2) * (W // 2), 9 * Cin)


def small_fpn(params, img_nchw):
    # TODO(synk): SmallFPN / AdaptiveFeatureGenerator architectures are not in the
    # provided source; approximated as one 3x3/stride-2 conv + ReLU + per-position
    # feature normalization (single fused Pallas matmul kernel).
    x = jnp.transpose(img_nchw, (0, 2, 3, 1))
    N, H, W, _ = x.shape
    patches = im2col_3x3_s2(x)                             # (R0, 27) f32
    R0, K27 = patches.shape
    Kp = params['fpn_w'].shape[0]                          # 32 (padded contraction)
    tm = min(FPN_TM_MAX, _round_up(R0, 128))
    R_p = _round_up(R0, tm)
    patches = jnp.pad(patches, ((0, R_p - R0), (0, Kp - K27))).astype(jnp.bfloat16)
    feat_n = fpn_conv_norm(patches, params['fpn_w'].astype(jnp.bfloat16),
                           params['fpn_b'], tm)
    return feat_n[:R0], (N, H // 2, W // 2)                # (HW, C) bf16, normalized


def get_part_dict(mask):
    # TODO(synk): real face-parser label set unknown; 1=skin, 2=hair.
    return {
        'skin': (mask == 1).astype(jnp.float32),
        'hair': (mask == 2).astype(jnp.float32),
        'head': (mask >= 1).astype(jnp.float32),
    }


def get_dilated_mask(m):
    # TODO(synk): dilation kernel size unknown; 5x5 max-pool dilation.
    return lax.reduce_window(m, -jnp.inf, lax.max,
                             window_dimensions=(1, 5, 5),
                             window_strides=(1, 1, 1), padding='SAME')


def get_color_refer(img_T_nchw, fA_n, fT_n, pdA, pdT, tao_arr, compute_inv,
                    feat_shape):
    N, Hf, Wf = feat_shape
    HWf = N * Hf * Wf
    parts = [k for k in pdA.keys() if k != 'head']         # skin, hair, inpainting
    assert len(parts) == P_PARTS

    img_T_nhwc = jnp.transpose(img_T_nchw, (0, 2, 3, 1))
    colT = img_T_nhwc[:, ::2, ::2, :].reshape(HWf, 3)

    def down(m):                                            # mask at feature res
        return m[:, ::2, ::2].reshape(HWf)

    mA = {k: down(pdA[k]) for k in parts}
    mT = {k: down(pdT[k]) for k in parts}

    # forward: A positions attend over part-masked T positions; values = T colors.
    v_fwd = pack_values([colT] * P_PARTS, [mT[k] for k in parts])
    o_fwd = masked_multipart_attention(tao_arr, fA_n, fT_n, v_fwd)   # (HWf, 9) bf16

    color_refs, inv_pairs = {}, {}
    refs_flat = []
    for p, k in enumerate(parts):
        ref = o_fwd[:, 3 * p:3 * p + 3].astype(jnp.float32) * mA[k][:, None]
        refs_flat.append(ref)
        color_refs[k] = ref.reshape(N, Hf, Wf, 3).transpose(0, 3, 1, 2)

    if compute_inv:
        # inverse (cycle): T positions attend over part-masked A positions;
        # values are the (gated) forward references.
        v_inv = pack_values(refs_flat, [mA[k] for k in parts])
        o_inv = masked_multipart_attention(tao_arr, fT_n, fA_n, v_inv)
        for p, k in enumerate(parts):
            inv = o_inv[:, 3 * p:3 * p + 3].astype(jnp.float32) * mT[k][:, None]
            tgt = colT * mT[k][:, None]
            inv_pairs[k] = (inv.reshape(N, Hf, Wf, 3).transpose(0, 3, 1, 2),
                            tgt.reshape(N, Hf, Wf, 3).transpose(0, 3, 1, 2))
    return color_refs, inv_pairs


# -----------------------------------------------------------------------------
# Referencer.forward
# -----------------------------------------------------------------------------
def referencer_forward(params, img_A, img_T, mask_A, mask_T, flip_coin):
    # img_A / img_T: (N,3,H,W) NCHW ; mask_A / mask_T: (N,H,W); flip_coin: traced scalar
    N, _, H, W = img_T.shape
    tao_arr = jnp.reshape(params['tao'], (1, 1)).astype(jnp.float32)

    fA_n, (_, Hf, Wf) = small_fpn(params, img_A)
    # flip decided on a traced scalar -> no retrace/recompile per coin value
    img_T_in = jnp.where(flip_coin < 0.5, img_T, jnp.flip(img_T, axis=-1))
    fT_n, _ = small_fpn(params, img_T_in)

    pdA = get_part_dict(mask_A)
    pdT = get_part_dict(mask_T)

    # mem-bound elementwise glue — left to XLA fusion
    gray_head_A = (0.299 * img_A[:, 0] + 0.587 * img_A[:, 1]
                   + 0.114 * img_A[:, 2]) * pdA['head']            # (N,H,W)
    inpaint_T = jnp.clip(get_dilated_mask(pdT['head']) - pdT['head'], 0, 1)
    e_AT = get_dilated_mask(jnp.clip(pdA['head'] + pdT['head'], 0, 1))
    inpaint_A = jnp.clip(e_AT - pdA['head'], 0, 1)
    img_bg = img_T * (1.0 - e_AT[:, None])

    pdA = dict(pdA); pdT = dict(pdT)
    pdA['inpainting'] = inpaint_A
    pdT['inpainting'] = inpaint_T

    color_refs, inv_pairs = get_color_refer(
        img_T, fA_n, fT_n, pdA, pdT, tao_arr, True, (N, Hf, Wf))

    # lambda_CYC2 branch (batch-flip of T).  For N == 1 the flip is the identity
    # and the results are identical -> skip the duplicated correspondence.
    if N == 1:
        inv_pairs_cro = inv_pairs
    else:
        # TODO(synk): for N > 1 the flattened correspondence mixes batch elements;
        # exact semantics would need a per-batch grid axis.
        Cfeat = fT_n.shape[1]
        fT_flip = jnp.flip(fT_n.reshape(N, Hf, Wf, Cfeat), axis=0).reshape(-1, Cfeat)
        pdT_flip = {k: jnp.flip(v, axis=0) for k, v in pdT.items()}
        _, inv_pairs_cro = get_color_refer(
            jnp.flip(img_T, axis=0), fA_n, fT_flip, pdA, pdT_flip, tao_arr,
            True, (N, Hf, Wf))

    if len(color_refs) <= 1:
        head_ref = jnp.zeros_like(img_T)
        inpaint_ref = jnp.zeros_like(img_T)
    else:
        head_ref = sum(v for k, v in color_refs.items() if k != 'inpainting')
        inpaint_ref = color_refs['inpainting']

    # TODO(synk): F.upsample_bilinear uses align_corners=True; jax.image.resize
    # uses half-pixel centers (align_corners=False).
    cat6 = jnp.concatenate([head_ref, inpaint_ref], axis=1)
    up = jax.image.resize(cat6, (N, 6, H, W), method='bilinear')

    packages = jnp.concatenate([
        up,
        pdA['head'][:, None].astype(jnp.float32),
        inpaint_A[:, None].astype(jnp.float32),
        gray_head_A[:, None],
        img_bg,
    ], axis=1)                                                     # (N, 12, H, W)
    return packages, inv_pairs, inv_pairs_cro


# -----------------------------------------------------------------------------
if __name__ == "__main__":
    C_FEAT = 64
    key = jax.random.PRNGKey(0)
    kw, kA, kT, kMA, kMT = jax.random.split(key, 5)

    # Deterministic synthetic parameters (not a checkpoint load)
    w27 = jax.random.normal(kw, (27, C_FEAT), jnp.float32) * 0.1
    params = {
        'fpn_w': jnp.pad(w27, ((0, 5), (0, 0))),   # contraction padded 27 -> 32
        'fpn_b': jnp.zeros((1, C_FEAT), jnp.float32),
        'tao': jnp.float32(1.0),                   # trainable_tao
    }

    # Small inputs consistent with the module's (img, mask) interface
    img_A = jax.random.uniform(kA, (1, 3, 32, 32), jnp.float32)
    img_T = jax.random.uniform(kT, (1, 3, 32, 32), jnp.float32)
    mask_A = jax.random.randint(kMA, (1, 32, 32), 0, 3).astype(jnp.float32)
    mask_T = jax.random.randint(kMT, (1, 32, 32), 0, 3).astype(jnp.float32)

    np.random.seed(0)                 # deterministic replacement of np.random.rand()
    flip_coin = jnp.float32(np.random.rand())   # traced scalar, no recompile per value

    fwd = jax.jit(referencer_forward)
    packages, inv_pairs, inv_pairs_cro = fwd(
        params, img_A, img_T, mask_A, mask_T, flip_coin)

    jax.block_until_ready(packages)
    for d in (inv_pairs, inv_pairs_cro):
        for a, b in d.values():
            jax.block_until_ready(a)
            jax.block_until_ready(b)

    assert packages.shape == (1, 12, 32, 32)
    print("KERNEL_OK")
</pallas_src>

<mosaic_0001>
module attributes {stable_mosaic.version = 11 : i64} {
  func.func @_fpn_conv_norm_kernel(%arg0: i32, %arg1: memref<256x32xbf16, #tpu.memory_space<vmem>>, %arg2: memref<32x64xbf16, #tpu.memory_space<vmem>>, %arg3: memref<1x64xf32, #tpu.memory_space<vmem>>, %arg4: memref<256x64xbf16, #tpu.memory_space<vmem>>) attributes {dimension_semantics = [#tpu.dimension_semantics<parallel>], iteration_bounds = array<i64: 1>, scalar_prefetch = 0 : i64, scratch_operands = 0 : i64, tpu.core_type = #tpu.core_type<tc>, window_params = [{transform_indices = @transform_0, window_bounds = array<i64: 256, 32>}, {pipeline_mode = #tpu.pipeline_mode<synchronous>, transform_indices = @transform_1, window_bounds = array<i64: 32, 64>}, {pipeline_mode = #tpu.pipeline_mode<synchronous>, transform_indices = @transform_2, window_bounds = array<i64: 1, 64>}, {transform_indices = @transform_3, window_bounds = array<i64: 256, 64>}]} {
    %c0 = arith.constant 0 : index
    %c0_0 = arith.constant 0 : index
    %0 = vector.load %arg1[%c0, %c0_0] : memref<256x32xbf16, #tpu.memory_space<vmem>>, vector<256x32xbf16>
    %c0_1 = arith.constant 0 : index
    %c0_2 = arith.constant 0 : index
    %1 = vector.load %arg2[%c0_1, %c0_2] : memref<32x64xbf16, #tpu.memory_space<vmem>>, vector<32x64xbf16>
    %cst = arith.constant dense<0.000000e+00> : vector<256x64xf32>
    %2 = tpu.matmul %0, %1, %cst {dimension_numbers = #tpu.dot_dimension_numbers<[1], [0], [0], [1], [0, 0, 1, 1], [], []>} : vector<256x32xbf16>, vector<32x64xbf16>, vector<256x64xf32> -> vector<256x64xf32>
    %c0_3 = arith.constant 0 : index
    %c0_4 = arith.constant 0 : index
    %3 = vector.load %arg3[%c0_3, %c0_4] : memref<1x64xf32, #tpu.memory_space<vmem>>, vector<1x64xf32>
    %4 = vector.broadcast %3 : vector<1x64xf32> to vector<256x64xf32>
    %5 = arith.addf %2, %4 : vector<256x64xf32>
    %cst_5 = arith.constant 0.000000e+00 : f32
    %6 = vector.broadcast %cst_5 : f32 to vector<256x64xf32>
    %7 = arith.maximumf %5, %6 : vector<256x64xf32>
    %cst_6 = arith.constant dense<0.000000e+00> : vector<256xf32>
    %8 = vector.multi_reduction <add>, %7, %cst_6 [1] : vector<256x64xf32> to vector<256xf32>
    %9 = vector.shape_cast %8 : vector<256xf32> to vector<256x1xf32>
    %cst_7 = arith.constant 6.400000e+01 : f32
    %10 = vector.broadcast %cst_7 : f32 to vector<256x1xf32>
    %11 = arith.divf %9, %10 : vector<256x1xf32>
    %12 = vector.broadcast %11 : vector<256x1xf32> to vector<256x64xf32>
    %13 = arith.subf %7, %12 : vector<256x64xf32>
    %14 = arith.mulf %13, %13 : vector<256x64xf32>
    %cst_8 = arith.constant dense<0.000000e+00> : vector<256xf32>
    %15 = vector.multi_reduction <add>, %14, %cst_8 [1] : vector<256x64xf32> to vector<256xf32>
    %16 = vector.shape_cast %15 : vector<256xf32> to vector<256x1xf32>
    %cst_9 = arith.constant 9.99999997E-7 : f32
    %17 = vector.broadcast %cst_9 : f32 to vector<256x1xf32>
    %18 = arith.addf %16, %17 : vector<256x1xf32>
    %19 = math.rsqrt %18 : vector<256x1xf32>
    %20 = vector.broadcast %19 : vector<256x1xf32> to vector<256x64xf32>
    %21 = arith.mulf %13, %20 : vector<256x64xf32>
    %22 = arith.truncf %21 : vector<256x64xf32> to vector<256x64xbf16>
    %c0_10 = arith.constant 0 : index
    %c0_11 = arith.constant 0 : index
    %23 = vector.load %arg4[%c0_10, %c0_11] : memref<256x64xbf16, #tpu.memory_space<vmem>>, vector<256x64xbf16>
    tpu.vector_store %arg4[%c0_10, %c0_11], %22 {strides = array<i32>} : memref<256x64xbf16, #tpu.memory_space<vmem>>, vector<256x64xbf16>,
    return
  }
  func.func @transform_0(%arg0: i32) -> (i32, i32) {
    %c0_i32 = arith.constant 0 : i32
    %c0_i32_0 = arith.constant 0 : i32
    return %arg0, %c0_i32 : i32, i32
  }
  func.func @transform_1(%arg0: i32) -> (i32, i32) {
    %c0_i32 = arith.constant 0 : i32
    %c0_i32_0 = arith.constant 0 : i32
    %c0_i32_1 = arith.constant 0 : i32
    return %c0_i32, %c0_i32_0 : i32, i32
  }
  func.func @transform_2(%arg0: i32) -> (i32, i32) {
    %c0_i32 = arith.constant 0 : i32
    %c0_i32_0 = arith.constant 0 : i32
    %c0_i32_1 = arith.constant 0 : i32
    return %c0_i32, %c0_i32_0 : i32, i32
  }
  func.func @transform_3(%arg0: i32) -> (i32, i32) {
    %c0_i32 = arith.constant 0 : i32
    %c0_i32_0 = arith.constant 0 : i32
    return %arg0, %c0_i32 : i32, i32
  }
}

module attributes {stable_mosaic.version = 11 : i64} {
  func.func @_mp_flash_kernel(%arg0: i32, %arg1: i32, %arg2: memref<1x1xf32, #tpu.memory_space<smem>>, %arg3: memref<256x64xbf16, #tpu.memory_space<vmem>>, %arg4: memref<256x64xbf16, #tpu.memory_space<vmem>>, %arg5: memref<256x16xbf16, #tpu.memory_space<vmem>>, %arg6: memref<256x16xbf16, #tpu.memory_space<vmem>>, %arg7: memref<256x1xf32, #tpu.memory_space<vmem>>, %arg8: memref<256x16xf32, #tpu.memory_space<vmem>>) attributes {dimension_semantics = [#tpu.dimension_semantics<parallel>, #tpu.dimension_semantics<arbitrary>], iteration_bounds = array<i64: 1, 1>, scalar_prefetch = 0 : i64, scratch_operands = 2 : i64, tpu.core_type = #tpu.core_type<tc>, window_params = [{transform_indices = @transform_0, window_bounds = array<i64: 1, 1>}, {transform_indices = @transform_1, window_bounds = array<i64: 256, 64>}, {pipeline_mode = #tpu.pipeline_mode<synchronous>, transform_indices = @transform_2, window_bounds = array<i64: 256, 64>}, {pipeline_mode = #tpu.pipeline_mode<synchronous>, transform_indices = @transform_3, window_bounds = array<i64: 256, 16>}, {transform_indices = @transform_4, window_bounds = array<i64: 256, 16>}]} {
    %c0_i32 = arith.constant 0 : i32
    %0 = arith.cmpi eq, %arg1, %c0_i32 : i32
    %1 = arith.extui %0 : i1 to i32
    %c0_i32_0 = arith.constant 0 : i32
    %2 = arith.cmpi ne, %1, %c0_i32_0 : i32
    scf.if %2 {
      %cst_18 = arith.constant -1.000000e+30 : f32
      %34 = vector.broadcast %cst_18 : f32 to vector<256x1xf32>
      %c0_19 = arith.constant 0 : index
      %c0_20 = arith.constant 0 : index
      %35 = vector.load %arg7[%c0_19, %c0_20] : memref<256x1xf32, #tpu.memory_space<vmem>>, vector<256x1xf32>
      tpu.vector_store %arg7[%c0_19, %c0_20], %34 {strides = array<i32>} : memref<256x1xf32, #tpu.memory_space<vmem>>, vector<256x1xf32>,
      %cst_21 = arith.constant 0.000000e+00 : f32
      %36 = vector.broadcast %cst_21 : f32 to vector<256x16xf32>
      %c0_22 = arith.constant 0 : index
      %c0_23 = arith.constant 0 : index
      %37 = vector.load %arg8[%c0_22, %c0_23] : memref<256x16xf32, #tpu.memory_space<vmem>>, vector<256x16xf32>
      tpu.vector_store %arg8[%c0_22, %c0_23], %36 {strides = array<i32>} : memref<256x16xf32, #tpu.memory_space<vmem>>, vector<256x16xf32>,
    } else {
    }
    %c0 = arith.constant 0 : index
    %c0_1 = arith.constant 0 : index
    %3 = memref.load %arg2[%c0, %c0_1] : memref<1x1xf32, #tpu.memory_space<smem>>
    %c256_i32 = arith.constant 256 : i32
    %4 = arith.muli %arg1, %c256_i32 : i32
    %5 = tpu.assume_multiple %4, 256 : i32
    %6 = arith.index_cast %5 : i32 to index
    %c0_2 = arith.constant 0 : index
    %7 = vector.load %arg4[%6, %c0_2] : memref<256x64xbf16, #tpu.memory_space<vmem>>, vector<256x64xbf16>
    %8 = arith.index_cast %5 : i32 to index
    %c0_3 = arith.constant 0 : index
    %9 = vector.load %arg5[%8, %c0_3] : memref<256x16xbf16, #tpu.memory_space<vmem>>, vector<256x16xbf16>
    %c0_4 = arith.constant 0 : index
    %c0_5 = arith.constant 0 : index
    %10 = vector.load %arg3[%c0_4, %c0_5] : memref<256x64xbf16, #tpu.memory_space<vmem>>, vector<256x64xbf16>
    %cst = arith.constant dense<0.000000e+00> : vector<256x256xf32>
    %11 = tpu.matmul %10, %7, %cst {dimension_numbers = #tpu.dot_dimension_numbers<[1], [1], [0], [0], [0, 0, 1, 0], [], []>} : vector<256x64xbf16>, vector<256x64xbf16>, vector<256x256xf32> -> vector<256x256xf32>
    %12 = vector.broadcast %3 : f32 to vector<256x256xf32>
    %13 = arith.mulf %11, %12 : vector<256x256xf32>
    %c0_6 = arith.constant 0 : index
    %c0_7 = arith.constant 0 : index
    %14 = vector.load %arg7[%c0_6, %c0_7] : memref<256x1xf32, #tpu.memory_space<vmem>>, vector<256x1xf32>
    %cst_8 = arith.constant dense<0xFF800000> : vector<256xf32>
    %15 = vector.multi_reduction <maximumf>, %13, %cst_8 [1] : vector<256x256xf32> to vector<256xf32>
    %16 = vector.shape_cast %15 : vector<256xf32> to vector<256x1xf32>
    %17 = arith.maximumf %14, %16 : vector<256x1xf32>
    %18 = arith.subf %14, %17 : vector<256x1xf32>
    %19 = math.exp %18 : vector<256x1xf32>
    %20 = vector.broadcast %17 : vector<256x1xf32> to vector<256x256xf32>
    %21 = arith.subf %13, %20 : vector<256x256xf32>
    %22 = math.exp %21 : vector<256x256xf32>
    %c0_9 = arith.constant 0 : index
    %c0_10 = arith.constant 0 : index
    %23 = vector.load %arg8[%c0_9, %c0_10] : memref<256x16xf32, #tpu.memory_space<vmem>>, vector<256x16xf32>
    %24 = vector.broadcast %19 : vector<256x1xf32> to vector<256x16xf32>
    %25 = arith.mulf %24, %23 : vector<256x16xf32>
    %26 = arith.truncf %22 : vector<256x256xf32> to vector<256x256xbf16>
    %cst_11 = arith.constant dense<0.000000e+00> : vector<256x16xf32>
    %27 = tpu.matmul %26, %9, %cst_11 {dimension_numbers = #tpu.dot_dimension_numbers<[1], [0], [0], [1], [0, 0, 1, 1], [], []>} : vector<256x256xbf16>, vector<256x16xbf16>, vector<256x16xf32> -> vector<256x16xf32>
    %28 = arith.addf %25, %27 : vector<256x16xf32>
    %c0_12 = arith.constant 0 : index
    %c0_13 = arith.constant 0 : index
    %29 = vector.load %arg8[%c0_12, %c0_13] : memref<256x16xf32, #tpu.memory_space<vmem>>, vector<256x16xf32>
    tpu.vector_store %arg8[%c0_12, %c0_13], %28 {strides = array<i32>} : memref<256x16xf32, #tpu.memory_space<vmem>>, vector<256x16xf32>,
    %c0_14 = arith.constant 0 : index
    %c0_15 = arith.constant 0 : index
    %30 = vector.load %arg7[%c0_14, %c0_15] : memref<256x1xf32, #tpu.memory_space<vmem>>, vector<256x1xf32>
    tpu.vector_store %arg7[%c0_14, %c0_15], %17 {strides = array<i32>} : memref<256x1xf32, #tpu.memory_space<vmem>>, vector<256x1xf32>,
    %c0_i32_16 = arith.constant 0 : i32
    %31 = arith.cmpi eq, %arg1, %c0_i32_16 : i32
    %32 = arith.extui %31 : i1 to i32
    %c0_i32_17 = arith.constant 0 : i32
    %33 = arith.cmpi ne, %32, %c0_i32_17 : i32
    scf.if %33 {
      %c0_18 = arith.constant 0 : index
      %c0_19 = arith.constant 0 : index
      %34 = vector.load %arg8[%c0_18, %c0_19] : memref<256x16xf32, #tpu.memory_space<vmem>>, vector<256x16xf32>
      %35 = vector.extract_strided_slice %34 {offsets = [0, 9], sizes = [256, 3], strides = [1, 1]} : vector<256x16xf32> to vector<256x3xf32>
      %cst_20 = arith.constant 9.99999997E-7 : f32
      %36 = vector.broadcast %cst_20 : f32 to vector<256x3xf32>
      %37 = arith.maximumf %35, %36 : vector<256x3xf32>
      %38 = tpu.reciprocal %37 {approx = true} : vector<256x3xf32> -> vector<256x3xf32>
      %39 = tpu.iota {dimensions = array<i32: 1>} : vector<3x16xi32>
      %40 = tpu.iota {dimensions = array<i32: 0>} : vector<3x16xi32>
      %c3_i32 = arith.constant 3 : i32
      %41 = vector.broadcast %c3_i32 : i32 to vector<3x16xi32>
      %42 = arith.muli %41, %40 : vector<3x16xi32>
      %43 = arith.cmpi sge, %39, %42 : vector<3x16xi32>
      %c3_i32_21 = arith.constant 3 : i32
      %44 = vector.broadcast %c3_i32_21 : i32 to vector<3x16xi32>
      %45 = arith.muli %44, %40 : vector<3x16xi32>
      %c3_i32_22 = arith.constant 3 : i32
      %46 = vector.broadcast %c3_i32_22 : i32 to vector<3x16xi32>
      %47 = arith.addi %45, %46 : vector<3x16xi32>
      %48 = arith.cmpi slt, %39, %47 : vector<3x16xi32>
      %49 = arith.andi %43, %48 : vector<3x16xi1>
      %50 = arith.extui %49 : vector<3x16xi1> to vector<3x16xi32>
      %51 = arith.sitofp %50 : vector<3x16xi32> to vector<3x16xf32>
      %cst_23 = arith.constant dense<0.000000e+00> : vector<256x16xf32>
      %52 = tpu.matmul %38, %51, %cst_23 {dimension_numbers = #tpu.dot_dimension_numbers<[1], [0], [0], [1], [0, 0, 1, 1], [], []>} : vector<256x3xf32>, vector<3x16xf32>, vector<256x16xf32> -> vector<256x16xf32>
      %53 = arith.mulf %34, %52 : vector<256x16xf32>
      %54 = arith.truncf %53 : vector<256x16xf32> to vector<256x16xbf16>
      %c0_24 = arith.constant 0 : index
      %c0_25 = arith.constant 0 : index
      %55 = vector.load %arg6[%c0_24, %c0_25] : memref<256x16xbf16, #tpu.memory_space<vmem>>, vector<256x16xbf16>
      tpu.vector_store %arg6[%c0_24, %c0_25], %54 {strides = array<i32>} : memref<256x16xbf16, #tpu.memory_space<vmem>>, vector<256x16xbf16>,
    } else {
    }
    return
  }
  func.func @transform_0(%arg0: i32, %arg1: i32) -> (i32, i32) {
    %c0_i32 = arith.constant 0 : i32
    %c0_i32_0 = arith.constant 0 : i32
    %c0_i32_1 = arith.constant 0 : i32
    return %c0_i32, %c0_i32_0 : i32, i32
  }
  func.func @transform_1(%arg0: i32, %arg1: i32) -> (i32, i32) {
    %c0_i32 = arith.constant 0 : i32
    %c0_i32_0 = arith.constant 0 : i32
    return %arg0, %c0_i32 : i32, i32
  }
  func.func @transform_2(%arg0: i32, %arg1: i32) -> (i32, i32) {
    %c0_i32 = arith.constant 0 : i32
    %c0_i32_0 = arith.constant 0 : i32
    %c0_i32_1 = arith.constant 0 : i32
    return %c0_i32, %c0_i32_0 : i32, i32
  }
  func.func @transform_3(%arg0: i32, %arg1: i32) -> (i32, i32) {
    %c0_i32 = arith.constant 0 : i32
    %c0_i32_0 = arith.constant 0 : i32
    %c0_i32_1 = arith.constant 0 : i32
    return %c0_i32, %c0_i32_0 : i32, i32
  }
  func.func @transform_4(%arg0: i32, %arg1: i32) -> (i32, i32) {
    %c0_i32 = arith.constant 0 : i32
    %c0_i32_0 = arith.constant 0 : i32
    return %arg0, %c0_i32 : i32, i32
  }
}

</mosaic_0001>

<bundles_post_ra>
// kernel: mul.95
= control target key start
LH: loop header
LB: loop body
LE: loop exit
PB: predicated region body
PF: predicated region fallthrough
CT: control target
= control target key end

     0   :  { %s7_s6 = smov 3  ;;  %s21_s9 = smov 3  ;;  %vm4_vm0 = vcmask 130048   ;;  %vm11_vm1 = vcmask 1048448   ;;  %vm18_vm2 = vcmask 917248   ;;  %vm25_vm3 = vcmask 786048   ;;  %s119_s0 = inlined_call_operand.vmem [shape: f32[1,16,16], index: 0, kind: input, shape index: {}]   ;;  %s120_s1 = inlined_call_operand.vmem [shape: f32[256], index: 1, kind: output, shape index: {}]  }
   0x1   :  { %v61_v0 = vld [vmem:[%s119_s0 + $0x7] ss:$8 sm:%s7_s6]   ;;  %s75_s10 = smov 112   ;;  %v63_v1 = vld [vmem:[%s119_s0 + $0x5] ss:$8 sm:%s21_s9]   ;;  %s76_s13 = smov 80  }
   0x2   :  { %9 = vrot.lane.b32.xlu0 %v61_v0, %s75_s10  ;;  %23 = vrot.lane.b32.xlu1 %v63_v1, %s76_s13  ;;  %s14_s14 = smov 3  ;;  %s28_s15 = smov 3  ;;  %vm32_vm4 = vcmask 654848   ;;  %vm39_vm5 = vcmask 523648   ;;  %vm46_vm6 = vcmask 392448   ;;  %vm53_vm7 = vcmask 261248  }
   0x3   :  { %s35_s16 = smov 3  ;;  %v62_v3 = vld [vmem:[%s119_s0 + $0x6] ss:$8 sm:%s14_s14]   ;;  %s77_s21 = smov 48   ;;  %v64_v4 = vld [vmem:[%s119_s0 + $0x4] ss:$8 sm:%s28_s15]  }
   0x4   :  { %v65_v2 = vld [vmem:[%s119_s0 + $0x3] ss:$8 sm:%s35_s16]   ;;  %s42_s24 = smov 3  ;;  %s78_s25 = smov 96  }
   0x5   :  { %37 = vrot.lane.b32.xlu2 %v65_v2, %s77_s21  ;;  %s79_s26 = smov 64   ;;  %s49_s27 = smov 3  ;;  %v66_v5 = vld [vmem:[%s119_s0 + $0x2] ss:$8 sm:%s42_s24]  }
   0x6   :  { %v67_v6 = vld [vmem:[%s119_s0 + $0x1] ss:$8 sm:%s49_s27]   ;;  %s80_s3 = smov 32   ;;  %s81_s4 = smov 16  }
   0x7   :  { %s2_s5 = smov 3 }
   0x8   :  { %v3_v7 = vld [vmem:[%s119_s0] ss:$8 sm:%s2_s5]  }
   0x9   :  { %5 = vst.msk [vmem:[#allocation0] sm:$0x3] %vm4_vm0, %v3_v7  }
   0xa   :  { %16 = vrot.lane.b32.xlu0 %v62_v3, %s78_s25  ;;  %30 = vrot.lane.b32.xlu1 %v64_v4, %s79_s26 }
   0xd   :  { %44 = vrot.lane.b32.xlu2 %v66_v5, %s80_s3 }
  0x12   :  { %51 = vrot.lane.b32.xlu0 %v67_v6, %s81_s4 }
  0x5f   :  { %v38_v8 = vpop.permute.xlu2 %37  }
  0x67   :  { %v45_v9 = vpop.permute.xlu2 %44  }
  0x74   :  { %v10_v10 = vpop.permute.xlu0 %9   ;;  %v24_v11 = vpop.permute.xlu1 %23  }
  0x75   :  { %12 = vst.msk [vmem:[#allocation0] sm:$0x3] %vm11_vm1, %v10_v10  }
  0x7c   :  { %v17_v12 = vpop.permute.xlu0 %16   ;;  %v31_v13 = vpop.permute.xlu1 %30  }
  0x7d   :  { %19 = vst.msk [vmem:[#allocation0] sm:$0x3] %vm18_vm2, %v17_v12  }
  0x7e   :  { %26 = vst.msk [vmem:[#allocation0] sm:$0x3] %vm25_vm3, %v24_v11  }
  0x7f   :  { %33 = vst.msk [vmem:[#allocation0] sm:$0x3] %vm32_vm4, %v31_v13  }
  0x80   :  { %40 = vst.msk [vmem:[#allocation0] sm:$0x3] %vm39_vm5, %v38_v8  }
  0x81   :  { %47 = vst.msk [vmem:[#allocation0] sm:$0x3] %vm46_vm6, %v45_v9  }
  0x84   :  { %v52_v14 = vpop.permute.xlu0 %51  }
  0x85   :  { %54 = vst.msk [vmem:[#allocation0] sm:$0x3] %vm53_vm7, %v52_v14  }
  0x8c   :  { %v57_v15 = vld [vmem:[#allocation0] sm:$0x3] }
  0x8d   :  { %60 = vst [vmem:[%s120_s1] sm:$0x3] %v57_v15 }

// kernel: referencer_forward.5
= control target key start
LH: loop header
LB: loop body
LE: loop exit
PB: predicated region body
PF: predicated region fallthrough
CT: control target
= control target key end

     0   :  { %vm147_vm0 = vcmask 261120   ;;  %vm317_vm1 = vcmask 523264   ;;  %vm1029_vm9 = vcmask 519168   ;;  %s2340_s1 = inlined_call_operand.vmem [shape: bf16[32,64], index: 1, kind: input, shape index: {}]   ;;  %s2341_s0 = inlined_call_operand.vmem [shape: bf16[256,32], index: 0, kind: input, shape index: {}]   ;;  %s2342_s2 = inlined_call_operand.vmem [shape: f32[1,64], index: 2, kind: input, shape index: {}]   ;;  %s2343_s3 = inlined_call_operand.vmem [shape: bf16[256,64], index: 3, kind: output, shape index: {}]  }
   0x1   :  { %v1171_v0 = vld [vmem:[%s2340_s1 + $0x8] sm:$0xff]  ;;  %v1170_v1 = vld [vmem:[%s2340_s1] sm:$0xff]  ;;  %v1156_v10 = vld [vmem:[%s2341_s0 + $0x10] sm:$0xff] }
   0x2   :  { %202 = vmatpush.bf16.msra.mxu0 %v1171_v0  ;;  %1172 = vmatpush.bf16.msra.mxu1 %v1171_v0  ;;  %v1154_v2 = vld [vmem:[%s2341_s0] sm:$0xff]  ;;  %v1155_v6 = vld [vmem:[%s2341_s0 + $0x8] sm:$0xff]  ;;  %v1160_v11 = vld [vmem:[%s2341_s0 + $0x30] sm:$0xff] }
   0x3   :  { %1173 = vmatpush.bf16.msra.mxu2 %v1171_v0  ;;  %1174 = vmatpush.bf16.msra.mxu3 %v1171_v0  ;;  %v1158_v3 = vld [vmem:[%s2341_s0 + $0x20] sm:$0xff]  ;;  %v1159_v7 = vld [vmem:[%s2341_s0 + $0x28] sm:$0xff]  ;;  %v1164_v12 = vld [vmem:[%s2341_s0 + $0x50] sm:$0xff] }
   0x4   :  { %v1162_v4 = vld [vmem:[%s2341_s0 + $0x40] sm:$0xff]  ;;  %v1167_v8 = vld [vmem:[%s2341_s0 + $0x68] sm:$0xff]  ;;  %v1168_v13 = vld [vmem:[%s2341_s0 + $0x70] sm:$0xff] }
   0x5   :  { %v1166_v5 = vld [vmem:[%s2341_s0 + $0x60] sm:$0xff]  ;;  %v1163_v9 = vld [vmem:[%s2341_s0 + $0x48] sm:$0xff]  ;;  %v1157_v14 = vld [vmem:[%s2341_s0 + $0x18] sm:$0xff] }
   0x6   :  { %203 = vmatpush.bf16.msra.mxu0 %v1170_v1  ;;  %1175 = vmatpush.bf16.msra.mxu1 %v1170_v1  ;;  %v1161_v15 = vld [vmem:[%s2341_s0 + $0x38] sm:$0xff]  ;;  %v1340_v18 = vld [vmem:[%s2342_s2] ss:$0 sm:$0xff] }
   0x7   :  { %1176 = vmatpush.bf16.msra.mxu2 %v1170_v1  ;;  %1177 = vmatpush.bf16.msra.mxu3 %v1170_v1  ;;  %v1165_v16 = vld [vmem:[%s2341_s0 + $0x58] sm:$0xff] }
   0x8   :  { %v1169_v17 = vld [vmem:[%s2341_s0 + $0x78] sm:$0xff] }
   0x9   :  { %1138 = vmatmul.msk.bf16.vlgmr.msra.gmra.mxu0 %vm147_vm0, %v1154_v2  ;;  %1142 = vmatmul.msk.bf16.vlgmr.msra.gmra.mxu1 %vm147_vm0, %v1158_v3 }
   0xa   :  { %1146 = vmatmul.msk.bf16.vlgmr.msra.gmra.mxu2 %vm147_vm0, %v1162_v4  ;;  %1150 = vmatmul.msk.bf16.vlgmr.msra.gmra.mxu3 %vm147_vm0, %v1166_v5 }
  0x19   :  { %1139 = vmatmul.msk.bf16.gmra.mxu0 %vm147_vm0, %v1155_v6  ;;  %1143 = vmatmul.msk.bf16.gmra.mxu1 %vm147_vm0, %v1159_v7 }
  0x1a   :  { %1151 = vmatmul.msk.bf16.gmra.mxu3 %vm147_vm0, %v1167_v8  ;;  %1147 = vmatmul.msk.bf16.gmra.mxu2 %vm147_vm0, %v1163_v9 }
  0x29   :  { %1140 = vmatmul.msk.bf16.gmra.mxu0 %vm147_vm0, %v1156_v10  ;;  %1144 = vmatmul.msk.bf16.gmra.mxu1 %vm147_vm0, %v1160_v11 }
  0x2a   :  { %1148 = vmatmul.msk.bf16.gmra.mxu2 %vm147_vm0, %v1164_v12  ;;  %1152 = vmatmul.msk.bf16.gmra.mxu3 %vm147_vm0, %v1168_v13 }
  0x39   :  { %1141 = vmatmul.msk.bf16.gmra.mxu0 %vm147_vm0, %v1157_v14  ;;  %1145 = vmatmul.msk.bf16.gmra.mxu1 %vm147_vm0, %v1161_v15 }
  0x3a   :  { %1149 = vmatmul.msk.bf16.gmra.mxu2 %vm147_vm0, %v1165_v16  ;;  %1153 = vmatmul.msk.bf16.gmra.mxu3 %vm147_vm0, %v1169_v17 }
  0x86   :  { %v205_v19 = vpop.f32.mrf.mxu0  ;;  %v225_v20 = vpop.f32.mrf.mxu1 }
  0x87   :  { %v1343_v21 = vadd.f32 %v1340_v18, %v205_v19  ;;  %v1346_v22 = vadd.f32 %v1340_v18, %v225_v20 }
  0x89   :  { %v285_v23 = vmax.f32 %v1343_v21, 0.0  ;;  %v293_v24 = vmax.f32 %v1346_v22, 0.0 }
  0x8b   :  { %v342_v25 = vsel %vm317_vm1, %v293_v24, 0.0  ;;  %v318_v26 = vsel %vm317_vm1, %v285_v23, 0.0 }
  0x8c   :  { %343 = vadd.xlane.f32.xlu2 %v342_v25  ;;  %319 = vadd.xlane.f32.xlu0 %v318_v26 }
  0x8d   :  { %v245_v27 = vpop.f32.mrf.mxu2  ;;  %v265_v28 = vpop.f32.mrf.mxu3 }
  0x8e   :  { %v1357_v29 = vadd.f32 %v1340_v18, %v245_v27  ;;  %v1360_v30 = vadd.f32 %v1340_v18, %v265_v28  ;;  %v207_v31 = vpop.f32.mrf.mxu0  ;;  %v227_v32 = vpop.f32.mrf.mxu1 }
  0x8f   :  { %v1368_v36 = vadd.f32 %v1340_v18, %v207_v31  ;;  %v1392_v50 = vadd.f32 %v1340_v18, %v227_v32 }
  0x90   :  { %v301_v33 = vmax.f32 %v1357_v29, 0.0  ;;  %v309_v34 = vmax.f32 %v1360_v30, 0.0 }
  0x91   :  { %v286_v44 = vmax.f32 %v1368_v36, 0.0  ;;  %v294_v58 = vmax.f32 %v1392_v50, 0.0 }
  0x92   :  { %v366_v35 = vsel %vm317_vm1, %v301_v33, 0.0  ;;  %v390_v37 = vsel %vm317_vm1, %v309_v34, 0.0 }
  0x93   :  { %367 = vadd.xlane.f32.xlu1 %v366_v35  ;;  %v321_v51 = vsel %vm317_vm1, %v286_v44, 0.0  ;;  %v345_v1 = vsel %vm317_vm1, %v294_v58, 0.0 }
  0x94   :  { %391 = vadd.xlane.f32.xlu0 %v390_v37 }
  0x95   :  { %v247_v38 = vpop.f32.mrf.mxu2  ;;  %v267_v39 = vpop.f32.mrf.mxu3 }
  0x96   :  { %v1374_v40 = vadd.f32 %v1340_v18, %v247_v38  ;;  %v1377_v41 = vadd.f32 %v1340_v18, %v267_v39  ;;  %v210_v42 = vpop.f32.mrf.mxu0  ;;  %v230_v43 = vpop.f32.mrf.mxu1 }
  0x97   :  { %v1383_v47 = vadd.f32 %v1340_v18, %v210_v42  ;;  %v1403_v59 = vadd.f32 %v1340_v18, %v230_v43 }
  0x98   :  { %v302_v45 = vmax.f32 %v1374_v40, 0.0  ;;  %v310_v46 = vmax.f32 %v1377_v41, 0.0 }
  0x99   :  { %v287_v52 = vmax.f32 %v1383_v47, 0.0  ;;  %v295_v2 = vmax.f32 %v1403_v59, 0.0 }
  0x9a   :  { %v393_v48 = vsel %vm317_vm1, %v310_v46, 0.0  ;;  %v369_v49 = vsel %vm317_vm1, %v302_v45, 0.0 }
  0x9b   :  { %394 = vadd.xlane.f32.xlu1 %v393_v48  ;;  %370 = vadd.xlane.f32.xlu2 %v369_v49  ;;  %v324_v61 = vsel %vm317_vm1, %v287_v52, 0.0  ;;  %v348_v9 = vsel %vm317_vm1, %v295_v2, 0.0 }
  0x9c   :  { %322 = vadd.xlane.f32.xlu0 %v321_v51 }
  0x9d   :  { %v270_v53 = vpop.f32.mrf.mxu3  ;;  %v250_v54 = vpop.f32.mrf.mxu2 }
  0x9e   :  { %v1399_v55 = vadd.f32 %v1340_v18, %v270_v53  ;;  %v212_v56 = vpop.f32.mrf.mxu0  ;;  %v232_v57 = vpop.f32.mrf.mxu1  ;;  %v1413_v63 = vadd.f32 %v1340_v18, %v250_v54 }
  0x9f   :  { %v1410_v62 = vadd.f32 %v1340_v18, %v232_v57  ;;  %v1437_v12 = vadd.f32 %v1340_v18, %v212_v56 }
  0xa0   :  { %v311_v60 = vmax.f32 %v1399_v55, 0.0  ;;  %v303_v4 = vmax.f32 %v1413_v63, 0.0 }
  0xa1   :  { %v296_v3 = vmax.f32 %v1410_v62, 0.0  ;;  %v288_v16 = vmax.f32 %v1437_v12, 0.0 }
  0xa2   :  { %v396_v0 = vsel %vm317_vm1, %v311_v60, 0.0  ;;  %v372_v11 = vsel %vm317_vm1, %v303_v4, 0.0 }
  0xa3   :  { %397 = vadd.xlane.f32.xlu2 %v396_v0  ;;  %325 = vadd.xlane.f32.xlu1 %v324_v61  ;;  %v351_v8 = vsel %vm317_vm1, %v296_v3, 0.0  ;;  %v327_v28 = vsel %vm317_vm1, %v288_v16, 0.0 }
  0xa4   :  { %346 = vadd.xlane.f32.xlu0 %v345_v1 }
  0xa5   :  { %v252_v5 = vpop.f32.mrf.mxu2  ;;  %v272_v7 = vpop.f32.mrf.mxu3 }
  0xa6   :  { %v215_v6 = vpop.f32.mrf.mxu0  ;;  %v1440_v13 = vadd.f32 %v1340_v18, %v272_v7  ;;  %v235_v20 = vpop.f32.mrf.mxu1  ;;  %v1455_v27 = vadd.f32 %v1340_v18, %v252_v5 }
  0xa7   :  { %v1431_v10 = vadd.f32 %v1340_v18, %v215_v6  ;;  %v1452_v26 = vadd.f32 %v1340_v18, %v235_v20 }
  0xa8   :  { %v312_v17 = vmax.f32 %v1440_v13, 0.0  ;;  %v304_v38 = vmax.f32 %v1455_v27, 0.0 }
  0xa9   :  { %v289_v14 = vmax.f32 %v1431_v10, 0.0  ;;  %v297_v37 = vmax.f32 %v1452_v26, 0.0 }
  0xaa   :  { %v399_v31 = vsel %vm317_vm1, %v312_v17, 0.0  ;;  %v375_v53 = vsel %vm317_vm1, %v304_v38, 0.0 }
  0xab   :  { %352 = vadd.xlane.f32.xlu2 %v351_v8  ;;  %349 = vadd.xlane.f32.xlu1 %v348_v9  ;;  %v330_v19 = vsel %vm317_vm1, %v289_v14, 0.0  ;;  %v354_v49 = vsel %vm317_vm1, %v297_v37, 0.0 }
  0xac   :  { %373 = vadd.xlane.f32.xlu0 %v372_v11 }
  0xad   :  { %v255_v15 = vpop.f32.mrf.mxu2  ;;  %v275_v32 = vpop.f32.mrf.mxu3 }
  0xae   :  { %v1449_v25 = vadd.f32 %v1340_v18, %v255_v15  ;;  %v217_v39 = vpop.f32.mrf.mxu0  ;;  %v1470_v48 = vadd.f32 %v1340_v18, %v275_v32  ;;  %v237_v57 = vpop.f32.mrf.mxu1 }
  0xaf   :  { %v1476_v51 = vadd.f32 %v1340_v18, %v217_v39  ;;  %v1497_v9 = vadd.f32 %v1340_v18, %v237_v57 }
  0xb0   :  { %v305_v35 = vmax.f32 %v1449_v25, 0.0  ;;  %v2353_v56 = vmax.f32 %v1470_v48, 0.0 }
  0xb1   :  { %v2355_v0 = vmax.f32 %v1476_v51, 0.0  ;;  %v2348_v32 = vmax.f32 %v1497_v9, 0.0 }
  0xb2   :  { %v378_v42 = vsel %vm317_vm1, %v305_v35, 0.0  ;;  %v402_v5 = vsel %vm317_vm1, %v2353_v56, 0.0 }
  0xb3   :  { %331 = vadd.xlane.f32.xlu2 %v330_v19  ;;  %328 = vadd.xlane.f32.xlu1 %v327_v28  ;;  %v333_v11 = vsel %vm317_vm1, %v2355_v0, 0.0 }
  0xb4   :  { %400 = vadd.xlane.f32.xlu0 %v399_v31 }
  0xb5   :  { %v257_v43 = vpop.f32.mrf.mxu2  ;;  %v277_v61 = vpop.f32.mrf.mxu3 }
  0xb6   :  { %v1482_v54 = vadd.f32 %v1340_v18, %v257_v43  ;;  %v220_v6 = vpop.f32.mrf.mxu0  ;;  %v1491_v7 = vadd.f32 %v1340_v18, %v277_v61  ;;  %v240_v31 = vpop.f32.mrf.mxu1  ;;  %v357_v61 = vsel %vm317_vm1, %v2348_v32, 0.0 }
  0xb7   :  { %v1494_v8 = vadd.f32 %v1340_v18, %v220_v6 }
  0xb8   :  { %v2351_v1 = vmax.f32 %v1482_v54, 0.0  ;;  %v2344_v20 = vmax.f32 %v1491_v7, 0.0 }
  0xb9   :  { %v2345_v28 = vmax.f32 %v1494_v8, 0.0 }
  0xba   :  { %v381_v15 = vsel %vm317_vm1, %v2351_v1, 0.0  ;;  %v405_v39 = vsel %vm317_vm1, %v2344_v20, 0.0 }
  0xbb   :  { %379 = vadd.xlane.f32.xlu2 %v378_v42  ;;  %376 = vadd.xlane.f32.xlu1 %v375_v53  ;;  %v1512_v42 = vadd.f32 %v1340_v18, %v240_v31  ;;  %v336_v57 = vsel %vm317_vm1, %v2345_v28, 0.0 }
  0xbc   :  { %355 = vadd.xlane.f32.xlu0 %v354_v49 }
  0xbd   :  { %v260_v19 = vpop.f32.mrf.mxu2  ;;  %v280_v49 = vpop.f32.mrf.mxu3 }
  0xbe   :  { %v1515_v43 = vadd.f32 %v1340_v18, %v260_v19  ;;  %v1518_v53 = vadd.f32 %v1340_v18, %v280_v49  ;;  %v222_v19 = vpop.f32.mrf.mxu0  ;;  %v242_v20 = vpop.f32.mrf.mxu1 }
  0xbf   :  { %v1545_v28 = vadd.f32 %v1340_v18, %v242_v20 }
  0xc0   :  { %v2347_v6 = vmax.f32 %v1515_v43, 0.0 }
  0xc2   :  { %v384_v49 = vsel %vm317_vm1, %v2347_v6, 0.0 }
  0xc3   :  { %334 = vadd.xlane.f32.xlu2 %v333_v11  ;;  %403 = vadd.xlane.f32.xlu1 %v402_v5  ;;  %v2346_v5 = vmax.f32 %v1512_v42, 0.0  ;;  %v2349_v11 = vmax.f32 %v1518_v53, 0.0 }
  0xc4   :  { %382 = vadd.xlane.f32.xlu0 %v381_v15 }
  0xc5   :  { %v262_v15 = vpop.f32.mrf.mxu2  ;;  %v360_v31 = vsel %vm317_vm1, %v2346_v5, 0.0  ;;  %v282_v32 = vpop.f32.mrf.mxu3 }
  0xcb   :  { %406 = vadd.xlane.f32.xlu2 %v405_v39  ;;  %358 = vadd.xlane.f32.xlu1 %v357_v61  ;;  %v1536_v39 = vadd.f32 %v1340_v18, %v262_v15  ;;  %v1542_v61 = vadd.f32 %v1340_v18, %v222_v19  ;;  %v2354_v15 = vmax.f32 %v1545_v28, 0.0  ;;  %v1554_v19 = vadd.f32 %v1340_v18, %v282_v32 }
  0xcc   :  { %337 = vadd.xlane.f32.xlu0 %v336_v57  ;;  %v408_v57 = vsel %vm317_vm1, %v2349_v11, 0.0  ;;  %v1246_v18 = vmov 64.0  }
  0xcd   :  { %v2350_v5 = vmax.f32 %v1536_v39, 0.0  ;;  %v2352_v6 = vmax.f32 %v1542_v61, 0.0  ;;  %1180 = vrcp.f32 %v1246_v18 }
  0xcf   :  { %v387_v11 = vsel %vm317_vm1, %v2350_v5, 0.0  ;;  %v339_v20 = vsel %vm317_vm1, %v2352_v6, 0.0 }
  0xd3   :  { %361 = vadd.xlane.f32.xlu2 %v360_v31  ;;  %385 = vadd.xlane.f32.xlu1 %v384_v49  ;;  %v363_v31 = vsel %vm317_vm1, %v2354_v15, 0.0  ;;  %v2356_v49 = vmax.f32 %v1554_v19, 0.0  ;;  %v1181_v32 = vpop.eup %1180 }
  0xd4   :  { %409 = vadd.xlane.f32.xlu0 %v408_v57  ;;  %v415_v5 = vmul.f32 64.0, %v1181_v32  ;;  %vm419_vm2 = vweird.f32 %v1181_v32 }
  0xd5   :  { %v411_v57 = vsel %vm317_vm1, %v2356_v49, 0.0 }
  0xd6   :  { %v416_v1 = vsub.f32 1.0, %v415_v5 }
  0xd8   :  { %v417_v6 = vmul.f32 %v1181_v32, %v416_v1 }
  0xdb   :  { %388 = vadd.xlane.f32.xlu2 %v387_v11  ;;  %340 = vadd.xlane.f32.xlu1 %v339_v20  ;;  %v418_v11 = vadd.f32 %v1181_v32, %v417_v6 }
  0xdc   :  { %364 = vadd.xlane.f32.xlu0 %v363_v31 }
  0xdd   :  { %v1566_v20 = vsel %vm419_vm2, %v1181_v32, %v418_v11 }
  0xe3   :  { %412 = vadd.xlane.f32.xlu1 %v411_v57 }
  0xff   :  { %v344_v56 = vpop.xlane.xlu2 %343  ;;  %v320_v15 = vpop.xlane.xlu0 %319 }
 0x100   :  { %v429_v31 = vmul.f32 %v1566_v20, %v344_v56  ;;  %v421_v0 = vmul.f32 %v1566_v20, %v320_v15 }
 0x102   :  { %v1572_v49 = vsub.f32 %v293_v24, %v429_v31  ;;  %v1576_v57 = vsub.f32 %v285_v23, %v421_v0 }
 0x104   :  { %v493_v1 = vmul.f32 %v1572_v49, %v1572_v49  ;;  %v485_v5 = vmul.f32 %v1576_v57, %v1576_v57 }
 0x106   :  { %v368_v6 = vpop.xlane.xlu1 %367  ;;  %v541_v18 = vsel %vm317_vm1, %v493_v1, 0.0  ;;  %v517_v56 = vsel %vm317_vm1, %v485_v5, 0.0 }
 0x107   :  { %v437_v15 = vmul.f32 %v1566_v20, %v368_v6  ;;  %542 = vadd.xlane.f32.xlu1 %v541_v18  ;;  %518 = vadd.xlane.f32.xlu2 %v517_v56  ;;  %v392_v22 = vpop.xlane.xlu0 %391 }
 0x108   :  { %v445_v21 = vmul.f32 %v1566_v20, %v392_v22 }
 0x109   :  { %v1588_v23 = vsub.f32 %v301_v33, %v437_v15 }
 0x10a   :  { %v1592_v24 = vsub.f32 %v309_v34, %v445_v21 }
 0x10b   :  { %v501_v0 = vmul.f32 %v1588_v23, %v1588_v23 }
 0x10c   :  { %v509_v32 = vmul.f32 %v1592_v24, %v1592_v24 }
 0x10d   :  { %v565_v11 = vsel %vm317_vm1, %v501_v0, 0.0 }
 0x10e   :  { %v395_v31 = vpop.xlane.xlu1 %394  ;;  %v371_v1 = vpop.xlane.xlu2 %370  ;;  %566 = vadd.xlane.f32.xlu0 %v565_v11  ;;  %v589_v5 = vsel %vm317_vm1, %v509_v32, 0.0 }
 0x10f   :  { %v438_v29 = vmul.f32 %v1566_v20, %v371_v1  ;;  %590 = vadd.xlane.f32.xlu2 %v589_v5  ;;  %v323_v33 = vpop.xlane.xlu0 %322  ;;  %v446_v6 = vmul.f32 %v1566_v20, %v395_v31 }
 0x110   :  { %v422_v30 = vmul.f32 %v1566_v20, %v323_v33 }
 0x111   :  { %v1604_v34 = vsub.f32 %v302_v45, %v438_v29  ;;  %v1618_v21 = vsub.f32 %v310_v46, %v446_v6 }
 0x112   :  { %v1609_v18 = vsub.f32 %v286_v44, %v422_v30 }
 0x113   :  { %v502_v56 = vmul.f32 %v1604_v34, %v1604_v34  ;;  %v510_v46 = vmul.f32 %v1618_v21, %v1618_v21 }
 0x114   :  { %v486_v15 = vmul.f32 %v1609_v18, %v1609_v18 }
 0x115   :  { %v568_v22 = vsel %vm317_vm1, %v502_v56, 0.0 }
 0x116   :  { %v398_v40 = vpop.xlane.xlu2 %397  ;;  %569 = vadd.xlane.f32.xlu1 %v568_v22  ;;  %v326_v45 = vpop.xlane.xlu1 %325  ;;  %v520_v0 = vsel %vm317_vm1, %v486_v15, 0.0 }
 0x117   :  { %v423_v36 = vmul.f32 %v1566_v20, %v326_v45  ;;  %521 = vadd.xlane.f32.xlu0 %v520_v0  ;;  %v347_v44 = vpop.xlane.xlu0 %346  ;;  %v447_v11 = vmul.f32 %v1566_v20, %v398_v40 }
 0x118   :  { %v430_v32 = vmul.f32 %v1566_v20, %v347_v44 }
 0x119   :  { %v1626_v31 = vsub.f32 %v287_v52, %v423_v36  ;;  %v1640_v29 = vsub.f32 %v311_v60, %v447_v11 }
 0x11a   :  { %v1630_v41 = vsub.f32 %v294_v58, %v430_v32  ;;  %v592_v58 = vsel %vm317_vm1, %v510_v46, 0.0 }
 0x11b   :  { %v487_v1 = vmul.f32 %v1626_v31, %v1626_v31  ;;  %v511_v15 = vmul.f32 %v1640_v29, %v1640_v29 }
 0x11c   :  { %v494_v5 = vmul.f32 %v1630_v41, %v1630_v41 }
 0x11d   :  { %v523_v47 = vsel %vm317_vm1, %v487_v1, 0.0  ;;  %v595_v59 = vsel %vm317_vm1, %v511_v15, 0.0 }
 0x11e   :  { %v353_v52 = vpop.xlane.xlu2 %352  ;;  %524 = vadd.xlane.f32.xlu1 %v523_v47  ;;  %v350_v50 = vpop.xlane.xlu1 %349  ;;  %v544_v33 = vsel %vm317_vm1, %v494_v5, 0.0 }
 0x11f   :  { %v431_v30 = vmul.f32 %v1566_v20, %v350_v50  ;;  %593 = vadd.xlane.f32.xlu0 %v592_v58  ;;  %545 = vadd.xlane.f32.xlu2 %v544_v33  ;;  %v374_v6 = vpop.xlane.xlu0 %373  ;;  %v432_v55 = vmul.f32 %v1566_v20, %v353_v52 }
 0x120   :  { %v439_v56 = vmul.f32 %v1566_v20, %v374_v6 }
 0x121   :  { %v1650_v60 = vsub.f32 %v295_v2, %v431_v30  ;;  %v1664_v0 = vsub.f32 %v296_v3, %v432_v55 }
 0x122   :  { %v1656_v22 = vsub.f32 %v303_v4, %v439_v56 }
 0x123   :  { %v495_v40 = vmul.f32 %v1650_v60, %v1650_v60  ;;  %v496_v62 = vmul.f32 %v1664_v0, %v1664_v0 }
 0x124   :  { %v503_v45 = vmul.f32 %v1656_v22, %v1656_v22 }
 0x125   :  { %v547_v44 = vsel %vm317_vm1, %v495_v40, 0.0  ;;  %v550_v1 = vsel %vm317_vm1, %v496_v62, 0.0 }
 0x126   :  { %v332_v2 = vpop.xlane.xlu2 %331  ;;  %596 = vadd.xlane.f32.xlu1 %v595_v59  ;;  %v329_v36 = vpop.xlane.xlu1 %328  ;;  %v571_v63 = vsel %vm317_vm1, %v503_v45, 0.0 }
 0x127   :  { %v424_v4 = vmul.f32 %v1566_v20, %v329_v36  ;;  %548 = vadd.xlane.f32.xlu0 %v547_v44  ;;  %572 = vadd.xlane.f32.xlu2 %v571_v63  ;;  %v401_v32 = vpop.xlane.xlu0 %400  ;;  %v425_v33 = vmul.f32 %v1566_v20, %v332_v2 }
 0x128   :  { %v448_v3 = vmul.f32 %v1566_v20, %v401_v32 }
 0x129   :  { %v1672_v11 = vsub.f32 %v288_v16, %v424_v4  ;;  %v1705_v25 = vsub.f32 %v289_v14, %v425_v33  ;;  %v2357_v14 = vmax.f32 %v1476_v51, 0.0  ;;  %v2358_v4 = vmax.f32 %v1470_v48, 0.0 }
 0x12a   :  { %v1682_v5 = vsub.f32 %v312_v17, %v448_v3  ;;  %v2359_v3 = vmax.f32 %v1482_v54, 0.0 }
 0x12b   :  { %v488_v46 = vmul.f32 %v1672_v11, %v1672_v11  ;;  %v489_v26 = vmul.f32 %v1705_v25, %v1705_v25 }
 0x12c   :  { %v512_v6 = vmul.f32 %v1682_v5, %v1682_v5 }
 0x12d   :  { %v526_v12 = vsel %vm317_vm1, %v488_v46, 0.0  ;;  %v529_v62 = vsel %vm317_vm1, %v489_v26, 0.0 }
 0x12e   :  { %v380_v47 = vpop.xlane.xlu2 %379  ;;  %551 = vadd.xlane.f32.xlu1 %v550_v1  ;;  %v377_v52 = vpop.xlane.xlu1 %376  ;;  %v598_v45 = vsel %vm317_vm1, %v512_v6, 0.0  ;;  %v2361_v6 = vmax.f32 %v1494_v8, 0.0 }
 0x12f   :  { %v441_v16 = vmul.f32 %v1566_v20, %v380_v47  ;;  %v440_v50 = vmul.f32 %v1566_v20, %v377_v52  ;;  %527 = vadd.xlane.f32.xlu2 %v526_v12  ;;  %v356_v58 = vpop.xlane.xlu0 %355 }
 0x130   :  { %v433_v17 = vmul.f32 %v1566_v20, %v356_v58  ;;  %v2360_v58 = vmax.f32 %v1497_v9, 0.0 }
 0x131   :  { %v1690_v30 = vsub.f32 %v305_v35, %v441_v16  ;;  %v1694_v13 = vsub.f32 %v304_v38, %v440_v50 }
 0x132   :  { %v1711_v38 = vsub.f32 %v297_v37, %v433_v17 }
 0x133   :  { %v505_v56 = vmul.f32 %v1690_v30, %v1690_v30  ;;  %v504_v55 = vmul.f32 %v1694_v13, %v1694_v13 }
 0x134   :  { %v497_v44 = vmul.f32 %v1711_v38, %v1711_v38 }
 0x135   :  { %v577_v35 = vsel %vm317_vm1, %v505_v56, 0.0  ;;  %v574_v27 = vsel %vm317_vm1, %v504_v55, 0.0 }
 0x136   :  { %v335_v15 = vpop.xlane.xlu2 %334  ;;  %578 = vadd.xlane.f32.xlu1 %v577_v35  ;;  %v404_v40 = vpop.xlane.xlu1 %403  ;;  %575 = vadd.xlane.f32.xlu0 %v574_v27  ;;  %v553_v52 = vsel %vm317_vm1, %v497_v44, 0.0 }
 0x137   :  { %v426_v59 = vmul.f32 %v1566_v20, %v335_v15  ;;  %599 = vadd.xlane.f32.xlu2 %v598_v45  ;;  %v383_v10 = vpop.xlane.xlu0 %382  ;;  %v449_v36 = vmul.f32 %v1566_v20, %v404_v40  ;;  %v2362_v45 = vmax.f32 %v1512_v42, 0.0 }
 0x138   :  { %v442_v37 = vmul.f32 %v1566_v20, %v383_v10 }
 0x139   :  { %v1717_v2 = vsub.f32 %v2357_v14, %v426_v59  ;;  %v1729_v32 = vsub.f32 %v2358_v4, %v449_v36  ;;  %v2363_v36 = vmax.f32 %v1515_v43, 0.0 }
 0x13a   :  { %v1735_v46 = vsub.f32 %v2359_v3, %v442_v37 }
 0x13b   :  { %v490_v63 = vmul.f32 %v1717_v2, %v1717_v2  ;;  %v513_v16 = vmul.f32 %v1729_v32, %v1729_v32 }
 0x13c   :  { %v506_v54 = vmul.f32 %v1735_v46, %v1735_v46 }
 0x13d   :  { %v532_v51 = vsel %vm317_vm1, %v490_v63, 0.0  ;;  %v601_v17 = vsel %vm317_vm1, %v513_v16, 0.0 }
 0x13e   :  { %v407_v1 = vpop.xlane.xlu2 %406  ;;  %533 = vadd.xlane.f32.xlu1 %v532_v51  ;;  %v359_v47 = vpop.xlane.xlu1 %358  ;;  %530 = vadd.xlane.f32.xlu0 %v529_v62  ;;  %v580_v27 = vsel %vm317_vm1, %v506_v54, 0.0 }
 0x13f   :  { %554 = vadd.xlane.f32.xlu2 %v553_v52  ;;  %v338_v12 = vpop.xlane.xlu0 %337  ;;  %v434_v48 = vmul.f32 %v1566_v20, %v359_v47  ;;  %v450_v43 = vmul.f32 %v1566_v20, %v407_v1  ;;  %v2364_v47 = vmax.f32 %v1536_v39, 0.0  ;;  %v2366_v39 = vmax.f32 %v1491_v7, 0.0 }
 0x140   :  { %v427_v50 = vmul.f32 %v1566_v20, %v338_v12 }
 0x141   :  { %v1746_v33 = vsub.f32 %v2360_v58, %v434_v48 }
 0x142   :  { %v1751_v56 = vsub.f32 %v2361_v6, %v427_v50  ;;  %v2365_v50 = vmax.f32 %v1545_v28, 0.0  ;;  %v2367_v6 = vmax.f32 %v1542_v61, 0.0 }
 0x143   :  { %v498_v8 = vmul.f32 %v1746_v33, %v1746_v33 }
 0x144   :  { %v491_v10 = vmul.f32 %v1751_v56, %v1751_v56 }
 0x145   :  { %v556_v42 = vsel %vm317_vm1, %v498_v8, 0.0 }
 0x146   :  { %v362_v55 = vpop.xlane.xlu2 %361  ;;  %v386_v35 = vpop.xlane.xlu1 %385  ;;  %602 = vadd.xlane.f32.xlu0 %v601_v17  ;;  %v535_v4 = vsel %vm317_vm1, %v491_v10, 0.0  ;;  %v1794_v17 = vsub.f32 %v2366_v39, %v450_v43 }
 0x147   :  { %v435_v15 = vmul.f32 %v1566_v20, %v362_v55  ;;  %581 = vadd.xlane.f32.xlu2 %v580_v27  ;;  %v410_v40 = vpop.xlane.xlu0 %409  ;;  %v443_v59 = vmul.f32 %v1566_v20, %v386_v35  ;;  %v2368_v27 = vmax.f32 %v1518_v53, 0.0  ;;  %v2369_v53 = vmax.f32 %v1554_v19, 0.0 }
 0x148   :  { %v451_v16 = vmul.f32 %v1566_v20, %v410_v40  ;;  %v514_v61 = vmul.f32 %v1794_v17, %v1794_v17 }
 0x149   :  { %v1757_v9 = vsub.f32 %v2362_v45, %v435_v15  ;;  %v1768_v26 = vsub.f32 %v2363_v36, %v443_v59 }
 0x14a   :  { %v1804_v15 = vsub.f32 %v2368_v27, %v451_v16 }
 0x14b   :  { %v499_v14 = vmul.f32 %v1757_v9, %v1757_v9  ;;  %v507_v48 = vmul.f32 %v1768_v26, %v1768_v26 }
 0x14c   :  { %v515_v8 = vmul.f32 %v1804_v15, %v1804_v15 }
 0x14d   :  { %v559_v37 = vsel %vm317_vm1, %v499_v14, 0.0  ;;  %v583_v28 = vsel %vm317_vm1, %v507_v48, 0.0  ;;  %v604_v14 = vsel %vm317_vm1, %v514_v61, 0.0 }
 0x14e   :  { %v389_v44 = vpop.xlane.xlu2 %388  ;;  %560 = vadd.xlane.f32.xlu1 %v559_v37  ;;  %v341_v63 = vpop.xlane.xlu1 %340  ;;  %557 = vadd.xlane.f32.xlu0 %v556_v42 }
 0x14f   :  { %v444_v51 = vmul.f32 %v1566_v20, %v389_v44  ;;  %536 = vadd.xlane.f32.xlu2 %v535_v4  ;;  %v365_v62 = vpop.xlane.xlu0 %364  ;;  %v428_v12 = vmul.f32 %v1566_v20, %v341_v63 }
 0x150   :  { %v436_v3 = vmul.f32 %v1566_v20, %v365_v62 }
 0x151   :  { %v1778_v52 = vsub.f32 %v2364_v47, %v444_v51  ;;  %v1798_v55 = vsub.f32 %v2367_v6, %v428_v12 }
 0x152   :  { %v1786_v54 = vsub.f32 %v2365_v50, %v436_v3 }
 0x153   :  { %v508_v58 = vmul.f32 %v1778_v52, %v1778_v52  ;;  %v492_v59 = vmul.f32 %v1798_v55, %v1798_v55 }
 0x154   :  { %v500_v1 = vmul.f32 %v1786_v54, %v1786_v54 }
 0x155   :  { %v586_v35 = vsel %vm317_vm1, %v508_v58, 0.0  ;;  %v538_v36 = vsel %vm317_vm1, %v492_v59, 0.0 }
 0x156   :  { %587 = vadd.xlane.f32.xlu1 %v586_v35  ;;  %v413_v40 = vpop.xlane.xlu1 %412  ;;  %584 = vadd.xlane.f32.xlu0 %v583_v28  ;;  %v562_v45 = vsel %vm317_vm1, %v500_v1, 0.0 }
 0x157   :  { %563 = vadd.xlane.f32.xlu2 %v562_v45  ;;  %v452_v7 = vmul.f32 %v1566_v20, %v413_v40  ;;  %v607_v20 = vsel %vm317_vm1, %v515_v8, 0.0 }
 0x159   :  { %v1816_v10 = vsub.f32 %v2369_v53, %v452_v7 }
 0x15b   :  { %v516_v37 = vmul.f32 %v1816_v10, %v1816_v10 }
 0x15d   :  { %v610_v42 = vsel %vm317_vm1, %v516_v37, 0.0 }
 0x15e   :  { %605 = vadd.xlane.f32.xlu1 %v604_v14  ;;  %539 = vadd.xlane.f32.xlu0 %v538_v36 }
 0x15f   :  { %608 = vadd.xlane.f32.xlu2 %v607_v20 }
 0x166   :  { %611 = vadd.xlane.f32.xlu0 %v610_v42 }
 0x17a   :  { %v543_v44 = vpop.xlane.xlu1 %542  ;;  %v519_v63 = vpop.xlane.xlu2 %518 }
 0x17b   :  { %v621_v19 = vadd.f32 1e-06, %v543_v44  ;;  %v613_v4 = vadd.f32 1e-06, %v519_v63 }
 0x17d   :  { %1182 = vrsqrt.f32 %v621_v19  ;;  %vm731_vm5 = vweird.f32 %v621_v19  ;;  %vm651_vm7 = vweird.f32 %v613_v4 }
 0x17e   :  { %1184 = vrsqrt.f32 %v613_v4 }
 0x181   :  { %v567_v51 = vpop.xlane.xlu0 %566 }
 0x182   :  { %v629_v62 = vadd.f32 1e-06, %v567_v51  ;;  %v591_v3 = vpop.xlane.xlu2 %590 }
 0x183   :  { %v1183_v43 = vpop.eup %1182  ;;  %v1824_v47 = vadd.f32 1e-06, %v591_v3 }
 0x184   :  { %v1185_v12 = vpop.eup %1184  ;;  %v726_v48 = vmul.f32 %v1183_v43, %v621_v19  ;;  %1186 = vrsqrt.f32 %v629_v62  ;;  %vm732_vm3 = vweird.f32 %v1183_v43  ;;  %vm811_vm12 = vweird.f32 %v629_v62 }
 0x185   :  { %v646_v16 = vmul.f32 %v1185_v12, %v613_v4  ;;  %1188 = vrsqrt.f32 %v1824_v47  ;;  %vm652_vm4 = vweird.f32 %v1185_v12  ;;  %vm733_vm6 = vmor %vm731_vm5, %vm732_vm3  ;;  %vm891_vm14 = vweird.f32 %v1824_v47 }
 0x186   :  { %v727_v50 = vmul.f32 %v1183_v43, %v726_v48  ;;  %vm653_vm8 = vmor %vm651_vm7, %vm652_vm4 }
 0x187   :  { %v647_v58 = vmul.f32 %v1185_v12, %v646_v16 }
 0x188   :  { %v728_v1 = vmul.f32 0.5, %v727_v50 }
 0x189   :  { %v648_v39 = vmul.f32 0.5, %v647_v58  ;;  %v570_v6 = vpop.xlane.xlu1 %569 }
 0x18a   :  { %v1187_v35 = vpop.eup %1186  ;;  %v729_v28 = vsub.f32 1.5, %v728_v1  ;;  %v1827_v27 = vadd.f32 1e-06, %v570_v6  ;;  %v522_v40 = vpop.xlane.xlu0 %521 }
 0x18b   :  { %v1189_v45 = vpop.eup %1188  ;;  %v649_v7 = vsub.f32 1.5, %v648_v39  ;;  %v806_v61 = vmul.f32 %v1187_v35, %v629_v62  ;;  %v1829_v59 = vadd.f32 1e-06, %v522_v40  ;;  %vm812_vm10 = vweird.f32 %v1187_v35 }
 0x18c   :  { %v730_v8 = vmul.f32 %v1183_v43, %v729_v28  ;;  %v886_v53 = vmul.f32 %v1189_v45, %v1824_v47  ;;  %1190 = vrsqrt.f32 %v1827_v27  ;;  %vm892_vm11 = vweird.f32 %v1189_v45  ;;  %vm813_vm13 = vmor %vm811_vm12, %vm812_vm10 }
 0x18d   :  { %v650_v14 = vmul.f32 %v1185_v12, %v649_v7  ;;  %v807_v36 = vmul.f32 %v1187_v35, %v806_v61  ;;  %1192 = vrsqrt.f32 %v1829_v59  ;;  %vm893_vm15 = vmor %vm891_vm14, %vm892_vm11  ;;  %vm821_vm2 = vweird.f32 %v1827_v27 }
 0x18e   :  { %v734_v20 = vsel %vm733_vm6, %v1183_v43, %v730_v8  ;;  %v887_v37 = vmul.f32 %v1189_v45, %v886_v53  ;;  %vm661_vm4 = vweird.f32 %v1829_v59 }
 0x18f   :  { %v973_v42 = vmul.f32 %v734_v20, %v1572_v49  ;;  %v654_v44 = vsel %vm653_vm8, %v1185_v12, %v650_v14  ;;  %v808_v63 = vmul.f32 0.5, %v807_v36 }
 0x190   :  { %v965_v19 = vmul.f32 %v654_v44, %v1576_v57  ;;  %v888_v51 = vmul.f32 0.5, %v887_v37 }
 0x191   :  { %v1005_v3 = vpack.c.bf16 %v973_v42, %v973_v42  ;;  %v809_v48 = vsub.f32 1.5, %v808_v63  ;;  %v525_v16 = vpop.xlane.xlu1 %524 }
 0x192   :  { %v1191_v50 = vpop.eup %1190  ;;  %v997_v4 = vpack.c.bf16 %v965_v19, %v965_v19  ;;  %v889_v58 = vsub.f32 1.5, %v888_v51  ;;  %v1836_v1 = vadd.f32 1e-06, %v525_v16  ;;  %v546_v43 = vpop.xlane.xlu2 %545 }
 0x193   :  { %v594_v39 = vpop.xlane.xlu0 %593  ;;  %v1193_v6 = vpop.eup %1192  ;;  %1038 = vst.msk [vmem:[%s2343_s3 + $0x20] sm:$0xf] %vm1029_vm9, %v1005_v3  ;;  %v810_v49 = vmul.f32 %v1187_v35, %v809_v48  ;;  %v816_v57 = vmul.f32 %v1191_v50, %v1827_v27  ;;  %v1843_v12 = vadd.f32 1e-06, %v546_v43  ;;  %vm822_vm0 = vweird.f32 %v1191_v50 }
 0x194   :  { %1030 = vst.msk [vmem:[%s2343_s3] sm:$0xf] %vm1029_vm9, %v997_v4  ;;  %v890_v28 = vmul.f32 %v1189_v45, %v889_v58  ;;  %v656_v40 = vmul.f32 %v1193_v6, %v1829_v59  ;;  %1194 = vrsqrt.f32 %v1836_v1  ;;  %v1857_v20 = vadd.f32 1e-06, %v594_v39  ;;  %vm823_vm3 = vmor %vm821_vm2, %vm822_vm0 }
 0x195   :  { %v814_v7 = vsel %vm813_vm13, %v1187_v35, %v810_v49  ;;  %v817_v62 = vmul.f32 %v1191_v50, %v816_v57  ;;  %1196 = vrsqrt.f32 %v1843_v12  ;;  %vm662_vm1 = vweird.f32 %v1193_v6 }
 0x196   :  { %v981_v61 = vmul.f32 %v814_v7, %v1588_v23  ;;  %v894_v8 = vsel %vm893_vm15, %v1189_v45, %v890_v28  ;;  %v657_v53 = vmul.f32 %v1193_v6, %v656_v40  ;;  %1198 = vrsqrt.f32 %v1857_v20  ;;  %vm663_vm5 = vmor %vm661_vm4, %vm662_vm1 }
 0x197   :  { %v989_v14 = vmul.f32 %v894_v8, %v1592_v24  ;;  %v818_v36 = vmul.f32 0.5, %v817_v62  ;;  %vm671_vm6 = vweird.f32 %v1836_v1  ;;  %vm741_vm10 = vweird.f32 %v1843_v12 }
 0x198   :  { %v1013_v47 = vpack.c.bf16 %v981_v61, %v981_v61  ;;  %v658_v37 = vmul.f32 0.5, %v657_v53  ;;  %vm901_vm12 = vweird.f32 %v1857_v20 }
 0x199   :  { %v1021_v42 = vpack.c.bf16 %v989_v14, %v989_v14  ;;  %v819_v44 = vsub.f32 1.5, %v818_v36  ;;  %v597_v35 = vpop.xlane.xlu1 %596 }
 0x19a   :  { %v1195_v63 = vpop.eup %1194  ;;  %1046 = vst.msk [vmem:[%s2343_s3 + $0x40] sm:$0xf] %vm1029_vm9, %v1013_v47  ;;  %v659_v23 = vsub.f32 1.5, %v658_v37  ;;  %v1864_v24 = vadd.f32 1e-06, %v597_v35  ;;  %v573_v45 = vpop.xlane.xlu2 %572 }
 0x19b   :  { %v1197_v19 = vpop.eup %1196  ;;  %1054 = vst.msk [vmem:[%s2343_s3 + $0x60] sm:$0xf] %vm1029_vm9, %v1021_v42  ;;  %v820_v51 = vmul.f32 %v1191_v50, %v819_v44  ;;  %v666_v3 = vmul.f32 %v1195_v63, %v1836_v1  ;;  %v1872_v48 = vadd.f32 1e-06, %v573_v45  ;;  %v549_v58 = vpop.xlane.xlu0 %548  ;;  %vm672_vm7 = vweird.f32 %v1195_v63 }
 0x19c   :  { %v660_v16 = vmul.f32 %v1193_v6, %v659_v23  ;;  %v736_v4 = vmul.f32 %v1197_v19, %v1843_v12  ;;  %1200 = vrsqrt.f32 %v1864_v24  ;;  %v1881_v28 = vpop.eup %1198  ;;  %v1884_v7 = vadd.f32 1e-06, %v549_v58  ;;  %vm673_vm11 = vmor %vm671_vm6, %vm672_vm7 }
 0x19d   :  { %v824_v43 = vsel %vm823_vm3, %v1191_v50, %v820_v51  ;;  %v667_v39 = vmul.f32 %v1195_v63, %v666_v3  ;;  %1202 = vrsqrt.f32 %v1872_v48  ;;  %v896_v61 = vmul.f32 %v1881_v28, %v1857_v20 }
 0x19e   :  { %v982_v27 = vmul.f32 %v824_v43, %v1604_v34  ;;  %v664_v49 = vsel %vm663_vm5, %v1193_v6, %v660_v16  ;;  %v737_v57 = vmul.f32 %v1197_v19, %v736_v4  ;;  %1204 = vrsqrt.f32 %v1884_v7 }
 0x19f   :  { %v966_v40 = vmul.f32 %v664_v49, %v1609_v18  ;;  %v668_v59 = vmul.f32 0.5, %v667_v39  ;;  %vm742_vm8 = vweird.f32 %v1197_v19  ;;  %v897_v14 = vmul.f32 %v1881_v28, %v896_v61 }
 0x1a0   :  { %v1014_v62 = vpack.c.bf16 %v982_v27, %v982_v27  ;;  %v738_v50 = vmul.f32 0.5, %v737_v57  ;;  %vm743_vm13 = vmor %vm741_vm10, %vm742_vm8  ;;  %vm902_vm14 = vweird.f32 %v1881_v28  ;;  %vm911_vm15 = vweird.f32 %v1864_v24 }
 0x1a1   :  { %v998_v8 = vpack.c.bf16 %v966_v40, %v966_v40  ;;  %v669_v53 = vsub.f32 1.5, %v668_v59  ;;  %v552_v34 = vpop.xlane.xlu1 %551  ;;  %v898_v45 = vmul.f32 0.5, %v897_v14  ;;  %vm903_vm0 = vmor %vm901_vm12, %vm902_vm14  ;;  %vm831_vm3 = vweird.f32 %v1872_v48 }
 0x1a2   :  { %v1890_v6 = vpop.eup %1200  ;;  %1047 = vst.msk [vmem:[%s2343_s3 + $0x44] sm:$0xf] %vm1029_vm9, %v1014_v62  ;;  %v739_v18 = vsub.f32 1.5, %v738_v50  ;;  %v1897_v36 = vadd.f32 1e-06, %v552_v34  ;;  %v528_v47 = vpop.xlane.xlu2 %527  ;;  %vm751_vm7 = vweird.f32 %v1884_v7 }
 0x1a3   :  { %v1899_v37 = vpop.eup %1202  ;;  %1031 = vst.msk [vmem:[%s2343_s3 + $0x4] sm:$0xf] %vm1029_vm9, %v998_v8  ;;  %v670_v42 = vmul.f32 %v1195_v63, %v669_v53  ;;  %v906_v44 = vmul.f32 %v1890_v6, %v1864_v24  ;;  %v1908_v35 = vadd.f32 1e-06, %v528_v47  ;;  %v899_v4 = vsub.f32 1.5, %v898_v45 }
 0x1a4   :  { %v740_v23 = vmul.f32 %v1197_v19, %v739_v18  ;;  %v826_v51 = vmul.f32 %v1899_v37, %v1872_v48  ;;  %1206 = vrsqrt.f32 %v1897_v36  ;;  %v1922_v43 = vpop.eup %1204  ;;  %vm912_vm1 = vweird.f32 %v1890_v6 }
 0x1a5   :  { %v674_v3 = vsel %vm673_vm11, %v1195_v63, %v670_v42  ;;  %v907_v12 = vmul.f32 %v1890_v6, %v906_v44  ;;  %1208 = vrsqrt.f32 %v1908_v35  ;;  %v900_v49 = vmul.f32 %v1881_v28, %v899_v4  ;;  %vm913_vm4 = vmor %vm911_vm15, %vm912_vm1 }
 0x1a6   :  { %v967_v16 = vmul.f32 %v674_v3, %v1626_v31  ;;  %v744_v1 = vsel %vm743_vm13, %v1197_v19, %v740_v23  ;;  %v827_v58 = vmul.f32 %v1899_v37, %v826_v51  ;;  %v746_v31 = vmul.f32 %v1922_v43, %v1884_v7 }
 0x1a7   :  { %v974_v39 = vmul.f32 %v744_v1, %v1630_v41  ;;  %v908_v27 = vmul.f32 0.5, %v907_v12  ;;  %vm832_vm2 = vweird.f32 %v1899_v37  ;;  %v904_v62 = vsel %vm903_vm0, %v1881_v28, %v900_v49 }
 0x1a8   :  { %v999_v63 = vpack.c.bf16 %v967_v16, %v967_v16  ;;  %v828_v57 = vmul.f32 0.5, %v827_v58  ;;  %v747_v61 = vmul.f32 %v1922_v43, %v746_v31  ;;  %v990_v34 = vmul.f32 %v904_v62, %v1618_v21  ;;  %vm833_vm6 = vmor %vm831_vm3, %vm832_vm2 }
 0x1a9   :  { %v1006_v19 = vpack.c.bf16 %v974_v39, %v974_v39  ;;  %v909_v40 = vsub.f32 1.5, %v908_v27  ;;  %v579_v41 = vpop.xlane.xlu1 %578  ;;  %v576_v59 = vpop.xlane.xlu0 %575  ;;  %vm752_vm5 = vweird.f32 %v1922_v43  ;;  %vm761_vm11 = vweird.f32 %v1897_v36 }
 0x1aa   :  { %1032 = vst.msk [vmem:[%s2343_s3 + $0x8] sm:$0xf] %vm1029_vm9, %v999_v63  ;;  %v829_v50 = vsub.f32 1.5, %v828_v57  ;;  %v1942_v8 = vadd.f32 1e-06, %v579_v41  ;;  %v600_v20 = vpop.xlane.xlu2 %599  ;;  %v1944_v53 = vpop.eup %1206  ;;  %v748_v47 = vmul.f32 0.5, %v747_v61  ;;  %v1022_v44 = vpack.c.bf16 %v990_v34, %v990_v34  ;;  %vm753_vm8 = vmor %vm751_vm7, %vm752_vm5 }
 0x1ab   :  { %1039 = vst.msk [vmem:[%s2343_s3 + $0x24] sm:$0xf] %vm1029_vm9, %v1006_v19  ;;  %v910_v18 = vmul.f32 %v1890_v6, %v909_v40  ;;  %v1953_v28 = vadd.f32 1e-06, %v576_v59  ;;  %v756_v42 = vmul.f32 %v1944_v53, %v1897_v36  ;;  %v1963_v21 = vpop.eup %1208  ;;  %v1969_v24 = vadd.f32 1e-06, %v600_v20 }
 0x1ac   :  { %v830_v14 = vmul.f32 %v1899_v37, %v829_v50  ;;  %1210 = vrsqrt.f32 %v1942_v8  ;;  %v749_v51 = vsub.f32 1.5, %v748_v47  ;;  %1055 = vst.msk [vmem:[%s2343_s3 + $0x64] sm:$0xf] %vm1029_vm9, %v1022_v44  ;;  %v676_v12 = vmul.f32 %v1963_v21, %v1908_v35 }
 0x1ad   :  { %v914_v48 = vsel %vm913_vm4, %v1890_v6, %v910_v18  ;;  %v757_v3 = vmul.f32 %v1944_v53, %v756_v42  ;;  %1212 = vrsqrt.f32 %v1953_v28  ;;  %vm762_vm10 = vweird.f32 %v1944_v53 }
 0x1ae   :  { %v991_v23 = vmul.f32 %v914_v48, %v1640_v29  ;;  %v834_v45 = vsel %vm833_vm6, %v1899_v37, %v830_v14  ;;  %v750_v29 = vmul.f32 %v1922_v43, %v749_v51  ;;  %v677_v4 = vmul.f32 %v1963_v21, %v676_v12  ;;  %vm763_vm13 = vmor %vm761_vm11, %vm762_vm10 }
 0x1af   :  { %v983_v6 = vmul.f32 %v834_v45, %v1656_v22  ;;  %v758_v37 = vmul.f32 0.5, %v757_v3  ;;  %1214 = vrsqrt.f32 %v1969_v24  ;;  %vm681_vm12 = vweird.f32 %v1908_v35 }
 0x1b0   :  { %v1023_v16 = vpack.c.bf16 %v991_v23, %v991_v23  ;;  %v754_v39 = vsel %vm753_vm8, %v1922_v43, %v750_v29  ;;  %v678_v31 = vmul.f32 0.5, %v677_v4  ;;  %vm682_vm14 = vweird.f32 %v1963_v21 }
 0x1b1   :  { %v1015_v1 = vpack.c.bf16 %v983_v6, %v983_v6  ;;  %v534_v22 = vpop.xlane.xlu1 %533  ;;  %v531_v58 = vpop.xlane.xlu0 %530  ;;  %v759_v27 = vsub.f32 1.5, %v758_v37  ;;  %v975_v57 = vmul.f32 %v754_v39, %v1650_v60  ;;  %vm851_vm15 = vweird.f32 %v1942_v8  ;;  %vm683_vm1 = vmor %vm681_vm12, %vm682_vm14 }
 0x1b2   :  { %1056 = vst.msk [vmem:[%s2343_s3 + $0x68] sm:$0xf] %vm1029_vm9, %v1023_v16  ;;  %v1994_v7 = vadd.f32 1e-06, %v534_v22  ;;  %v555_v63 = vpop.xlane.xlu2 %554  ;;  %v1996_v49 = vpop.eup %1210  ;;  %v2004_v19 = vadd.f32 1e-06, %v531_v58  ;;  %vm841_vm0 = vweird.f32 %v1953_v28  ;;  %vm921_vm2 = vweird.f32 %v1969_v24 }
 0x1b3   :  { %1048 = vst.msk [vmem:[%s2343_s3 + $0x48] sm:$0xf] %vm1029_vm9, %v1015_v1  ;;  %v760_v43 = vmul.f32 %v1944_v53, %v759_v27  ;;  %v846_v40 = vmul.f32 %v1996_v49, %v1942_v8  ;;  %v2011_v41 = vpop.eup %1212  ;;  %v1007_v59 = vpack.c.bf16 %v975_v57, %v975_v57  ;;  %v679_v60 = vsub.f32 1.5, %v678_v31 }
 0x1b4   :  { %1216 = vrsqrt.f32 %v1994_v7  ;;  %v836_v50 = vmul.f32 %v2011_v41, %v1953_v28  ;;  %vm852_vm3 = vweird.f32 %v1996_v49  ;;  %vm842_vm4 = vweird.f32 %v2011_v41 }
 0x1b5   :  { %1218 = vrsqrt.f32 %v2004_v19  ;;  %v764_v36 = vsel %vm763_vm13, %v1944_v53, %v760_v43  ;;  %v847_v62 = vmul.f32 %v1996_v49, %v846_v40  ;;  %v2022_v61 = vpop.eup %1214  ;;  %1040 = vst.msk [vmem:[%s2343_s3 + $0x28] sm:$0xf] %vm1029_vm9, %v1007_v59  ;;  %v680_v34 = vmul.f32 %v1963_v21, %v679_v60  ;;  %vm853_vm5 = vmor %vm851_vm15, %vm852_vm3 }
 0x1b6   :  { %v976_v20 = vmul.f32 %v764_v36, %v1664_v0  ;;  %v2031_v53 = vadd.f32 1e-06, %v555_v63  ;;  %v837_v14 = vmul.f32 %v2011_v41, %v836_v50  ;;  %v916_v47 = vmul.f32 %v2022_v61, %v1969_v24  ;;  %vm843_vm8 = vmor %vm841_vm0, %vm842_vm4 }
 0x1b7   :  { %v848_v18 = vmul.f32 0.5, %v847_v62  ;;  %v684_v0 = vsel %vm683_vm1, %v1963_v21, %v680_v34  ;;  %vm701_vm6 = vweird.f32 %v1994_v7  ;;  %vm922_vm7 = vweird.f32 %v2022_v61 }
 0x1b8   :  { %v1008_v42 = vpack.c.bf16 %v976_v20, %v976_v20  ;;  %1220 = vrsqrt.f32 %v2031_v53  ;;  %v968_v35 = vmul.f32 %v684_v0, %v1672_v11  ;;  %v838_v45 = vmul.f32 0.5, %v837_v14  ;;  %vm923_vm11 = vmor %vm921_vm2, %vm922_vm7 }
 0x1b9   :  { %v603_v44 = vpop.xlane.xlu0 %602  ;;  %v849_v23 = vsub.f32 1.5, %v848_v18  ;;  %v917_v51 = vmul.f32 %v2022_v61, %v916_v47  ;;  %vm691_vm14 = vweird.f32 %v2004_v19  ;;  %vm771_vm1 = vweird.f32 %v2031_v53 }
 0x1ba   :  { %v2042_v48 = vpop.eup %1216  ;;  %v582_v3 = vpop.xlane.xlu2 %581  ;;  %1041 = vst.msk [vmem:[%s2343_s3 + $0x2c] sm:$0xf] %vm1029_vm9, %v1008_v42  ;;  %v2055_v12 = vadd.f32 1e-06, %v603_v44  ;;  %v1000_v16 = vpack.c.bf16 %v968_v35, %v968_v35  ;;  %v839_v37 = vsub.f32 1.5, %v838_v45 }
 0x1bb   :  { %v2046_v6 = vpop.eup %1218  ;;  %v696_v21 = vmul.f32 %v2042_v48, %v1994_v7  ;;  %v2057_v11 = vadd.f32 1e-06, %v582_v3  ;;  %v850_v29 = vmul.f32 %v1996_v49, %v849_v23  ;;  %v918_v1 = vmul.f32 0.5, %v917_v51 }
 0x1bc   :  { %v686_v22 = vmul.f32 %v2046_v6, %v2004_v19  ;;  %1222 = vrsqrt.f32 %v2055_v12  ;;  %1033 = vst.msk [vmem:[%s2343_s3 + $0xc] sm:$0xf] %vm1029_vm9, %v1000_v16  ;;  %v840_v39 = vmul.f32 %v2011_v41, %v839_v37  ;;  %vm702_vm10 = vweird.f32 %v2042_v48 }
 0x1bd   :  { %v697_v4 = vmul.f32 %v2042_v48, %v696_v21  ;;  %v854_v58 = vsel %vm853_vm5, %v1996_v49, %v850_v29  ;;  %v919_v8 = vsub.f32 1.5, %v918_v1  ;;  %1224 = vrsqrt.f32 %v2057_v11  ;;  %vm703_vm13 = vmor %vm701_vm6, %vm702_vm10 }
 0x1be   :  { %v2076_v27 = vpop.eup %1220  ;;  %v985_v63 = vmul.f32 %v854_v58, %v1690_v30  ;;  %v687_v31 = vmul.f32 %v2046_v6, %v686_v22  ;;  %v844_v49 = vsel %vm843_vm8, %v2011_v41, %v840_v39  ;;  %vm692_vm12 = vweird.f32 %v2046_v6 }
 0x1bf   :  { %v698_v57 = vmul.f32 0.5, %v697_v4  ;;  %v920_v43 = vmul.f32 %v2022_v61, %v919_v8  ;;  %v766_v40 = vmul.f32 %v2076_v27, %v2031_v53  ;;  %v984_v59 = vmul.f32 %v844_v49, %v1694_v13  ;;  %vm693_vm0 = vmor %vm691_vm14, %vm692_vm12 }
 0x1c0   :  { %v1017_v30 = vpack.c.bf16 %v985_v63, %v985_v63  ;;  %v688_v60 = vmul.f32 0.5, %v687_v31  ;;  %vm772_vm15 = vweird.f32 %v2076_v27  ;;  %vm931_vm4 = vweird.f32 %v2055_v12 }
 0x1c1   :  { %v699_v28 = vsub.f32 1.5, %v698_v57  ;;  %v561_v36 = vpop.xlane.xlu1 %560  ;;  %v558_v62 = vpop.xlane.xlu0 %557  ;;  %v924_v50 = vsel %vm923_vm11, %v2022_v61, %v920_v43  ;;  %v767_v41 = vmul.f32 %v2076_v27, %v766_v40  ;;  %v1016_v13 = vpack.c.bf16 %v984_v59, %v984_v59  ;;  %vm773_vm2 = vmor %vm771_vm1, %vm772_vm15 }
 0x1c2   :  { %v2096_v20 = vadd.f32 1e-06, %v561_v36  ;;  %v537_v34 = vpop.xlane.xlu2 %536  ;;  %v2098_v18 = vpop.eup %1222  ;;  %1050 = vst.msk [vmem:[%s2343_s3 + $0x50] sm:$0xf] %vm1029_vm9, %v1017_v30  ;;  %v992_v24 = vmul.f32 %v924_v50, %v1682_v5  ;;  %v689_v61 = vsub.f32 1.5, %v688_v60  ;;  %vm861_vm7 = vweird.f32 %v2057_v11 }
 0x1c3   :  { %v700_v14 = vmul.f32 %v2042_v48, %v699_v28  ;;  %v768_v47 = vmul.f32 0.5, %v767_v41  ;;  %v926_v42 = vmul.f32 %v2098_v18, %v2055_v12  ;;  %v2114_v0 = vpop.eup %1224  ;;  %1049 = vst.msk [vmem:[%s2343_s3 + $0x4c] sm:$0xf] %vm1029_vm9, %v1016_v13  ;;  %v2135_v51 = vadd.f32 1e-06, %v558_v62 }
 0x1c4   :  { %1226 = vrsqrt.f32 %v2096_v20  ;;  %v1024_v5 = vpack.c.bf16 %v992_v24, %v992_v24  ;;  %v690_v7 = vmul.f32 %v2046_v6, %v689_v61  ;;  %v856_v45 = vmul.f32 %v2114_v0, %v2057_v11 }
 0x1c5   :  { %v704_v44 = vsel %vm703_vm13, %v2042_v48, %v700_v14  ;;  %v769_v35 = vsub.f32 1.5, %v768_v47  ;;  %v927_v23 = vmul.f32 %v2098_v18, %v926_v42  ;;  %vm932_vm3 = vweird.f32 %v2098_v18 }
 0x1c6   :  { %v970_v19 = vmul.f32 %v704_v44, %v1717_v2  ;;  %1057 = vst.msk [vmem:[%s2343_s3 + $0x6c] sm:$0xf] %vm1029_vm9, %v1024_v5  ;;  %v694_v48 = vsel %vm693_vm0, %v2046_v6, %v690_v7  ;;  %v2137_v2 = vadd.f32 1e-06, %v537_v34  ;;  %v857_v37 = vmul.f32 %v2114_v0, %v856_v45  ;;  %vm933_vm6 = vmor %vm931_vm4, %vm932_vm3 }
 0x1c7   :  { %v969_v21 = vmul.f32 %v694_v48, %v1705_v25  ;;  %v770_v16 = vmul.f32 %v2076_v27, %v769_v35  ;;  %v928_v29 = vmul.f32 0.5, %v927_v23  ;;  %1228 = vrsqrt.f32 %v2135_v51 }
 0x1c8   :  { %v1002_v3 = vpack.c.bf16 %v970_v19, %v970_v19  ;;  %1230 = vrsqrt.f32 %v2137_v2  ;;  %v858_v8 = vmul.f32 0.5, %v857_v37  ;;  %vm862_vm5 = vweird.f32 %v2114_v0 }
 0x1c9   :  { %v588_v53 = vpop.xlane.xlu1 %587  ;;  %v585_v6 = vpop.xlane.xlu0 %584  ;;  %v1001_v25 = vpack.c.bf16 %v969_v21, %v969_v21  ;;  %v774_v4 = vsel %vm773_vm2, %v2076_v27, %v770_v16  ;;  %v929_v22 = vsub.f32 1.5, %v928_v29  ;;  %vm863_vm8 = vmor %vm861_vm7, %vm862_vm5  ;;  %vm791_vm11 = vweird.f32 %v2096_v20 }
 0x1ca   :  { %v2146_v1 = vpop.eup %1226  ;;  %1035 = vst.msk [vmem:[%s2343_s3 + $0x14] sm:$0xf] %vm1029_vm9, %v1002_v3  ;;  %v564_v58 = vpop.xlane.xlu2 %563  ;;  %v977_v39 = vmul.f32 %v774_v4, %v1711_v38  ;;  %v2164_v27 = vadd.f32 1e-06, %v588_v53  ;;  %v2166_v31 = vadd.f32 1e-06, %v585_v6  ;;  %vm781_vm12 = vweird.f32 %v2135_v51 }
 0x1cb   :  { %v786_v63 = vmul.f32 %v2146_v1, %v2096_v20  ;;  %1034 = vst.msk [vmem:[%s2343_s3 + $0x10] sm:$0xf] %vm1029_vm9, %v1001_v25  ;;  %v930_v57 = vmul.f32 %v2098_v18, %v929_v22  ;;  %v859_v12 = vsub.f32 1.5, %v858_v8  ;;  %v2171_v43 = vadd.f32 1e-06, %v564_v58 }
 0x1cc   :  { %v1009_v38 = vpack.c.bf16 %v977_v39, %v977_v39  ;;  %1232 = vrsqrt.f32 %v2164_v27  ;;  %vm792_vm10 = vweird.f32 %v2146_v1  ;;  %vm711_vm13 = vweird.f32 %v2137_v2 }
 0x1cd   :  { %v787_v49 = vmul.f32 %v2146_v1, %v786_v63  ;;  %v934_v40 = vsel %vm933_vm6, %v2098_v18, %v930_v57  ;;  %v2176_v30 = vpop.eup %1228  ;;  %v860_v28 = vmul.f32 %v2114_v0, %v859_v12  ;;  %1234 = vrsqrt.f32 %v2166_v31  ;;  %vm793_vm14 = vmor %vm791_vm11, %vm792_vm10 }
 0x1ce   :  { %1042 = vst.msk [vmem:[%s2343_s3 + $0x30] sm:$0xf] %vm1029_vm9, %v1009_v38  ;;  %v993_v59 = vmul.f32 %v934_v40, %v1729_v32  ;;  %v2185_v36 = vpop.eup %1230  ;;  %v776_v11 = vmul.f32 %v2176_v30, %v2135_v51  ;;  %1236 = vrsqrt.f32 %v2171_v43  ;;  %vm782_vm15 = vweird.f32 %v2176_v30 }
 0x1cf   :  { %v788_v60 = vmul.f32 0.5, %v787_v49  ;;  %v864_v32 = vsel %vm863_vm8, %v2114_v0, %v860_v28  ;;  %v706_v41 = vmul.f32 %v2185_v36, %v2137_v2  ;;  %vm881_vm0 = vweird.f32 %v2164_v27  ;;  %vm783_vm2 = vmor %vm781_vm12, %vm782_vm15 }
 0x1d0   :  { %v1025_v62 = vpack.c.bf16 %v993_v59, %v993_v59  ;;  %v986_v13 = vmul.f32 %v864_v32, %v1735_v46  ;;  %v777_v24 = vmul.f32 %v2176_v30, %v776_v11  ;;  %vm712_vm1 = vweird.f32 %v2185_v36 }
 0x1d1   :  { %v789_v50 = vsub.f32 1.5, %v788_v60  ;;  %v606_v34 = vpop.xlane.xlu1 %605  ;;  %v540_v18 = vpop.xlane.xlu0 %539  ;;  %v707_v47 = vmul.f32 %v2185_v36, %v706_v41  ;;  %vm713_vm4 = vmor %vm711_vm13, %vm712_vm1  ;;  %vm871_vm8 = vweird.f32 %v2166_v31  ;;  %vm801_vm11 = vweird.f32 %v2171_v43 }
 0x1d2   :  { %v2199_v14 = vadd.f32 1e-06, %v606_v34  ;;  %1058 = vst.msk [vmem:[%s2343_s3 + $0x70] sm:$0xf] %vm1029_vm9, %v1025_v62  ;;  %v609_v46 = vpop.xlane.xlu2 %608  ;;  %v2209_v42 = vpop.eup %1232  ;;  %v1018_v20 = vpack.c.bf16 %v986_v13, %v986_v13  ;;  %v778_v0 = vmul.f32 0.5, %v777_v24 }
 0x1d3   :  { %v790_v61 = vmul.f32 %v2146_v1, %v789_v50  ;;  %v2214_v5 = vadd.f32 1e-06, %v540_v18  ;;  %v2216_v44 = vpop.eup %1234  ;;  %v708_v19 = vmul.f32 0.5, %v707_v47  ;;  %v876_v35 = vmul.f32 %v2209_v42, %v2164_v27 }
 0x1d4   :  { %1238 = vrsqrt.f32 %v2199_v14  ;;  %v2223_v23 = vpop.eup %1236  ;;  %1051 = vst.msk [vmem:[%s2343_s3 + $0x54] sm:$0xf] %vm1029_vm9, %v1018_v20  ;;  %v779_v48 = vsub.f32 1.5, %v778_v0  ;;  %v866_v3 = vmul.f32 %v2216_v44, %v2166_v31  ;;  %v2232_v21 = vadd.f32 1e-06, %v609_v46 }
 0x1d5   :  { %v794_v7 = vsel %vm793_vm14, %v2146_v1, %v790_v61  ;;  %v709_v16 = vsub.f32 1.5, %v708_v19  ;;  %v877_v29 = vmul.f32 %v2209_v42, %v876_v35  ;;  %v796_v37 = vmul.f32 %v2223_v23, %v2171_v43 }
 0x1d6   :  { %v979_v45 = vmul.f32 %v794_v7, %v1757_v9  ;;  %v780_v6 = vmul.f32 %v2176_v30, %v779_v48  ;;  %v867_v1 = vmul.f32 %v2216_v44, %v866_v3  ;;  %1240 = vrsqrt.f32 %v2214_v5 }
 0x1d7   :  { %v710_v9 = vmul.f32 %v2185_v36, %v709_v16  ;;  %v878_v25 = vmul.f32 0.5, %v877_v29  ;;  %vm882_vm3 = vweird.f32 %v2209_v42  ;;  %v797_v4 = vmul.f32 %v2223_v23, %v796_v37 }
 0x1d8   :  { %v1011_v53 = vpack.c.bf16 %v979_v45, %v979_v45  ;;  %v784_v58 = vsel %vm783_vm2, %v2176_v30, %v780_v6  ;;  %v868_v51 = vmul.f32 0.5, %v867_v1  ;;  %vm872_vm5 = vweird.f32 %v2216_v44  ;;  %vm883_vm7 = vmor %vm881_vm0, %vm882_vm3 }
 0x1d9   :  { %1242 = vrsqrt.f32 %v2232_v21  ;;  %v612_v39 = vpop.xlane.xlu0 %611  ;;  %v978_v8 = vmul.f32 %v784_v58, %v1746_v33  ;;  %v714_v63 = vsel %vm713_vm4, %v2185_v36, %v710_v9  ;;  %v879_v57 = vsub.f32 1.5, %v878_v25  ;;  %vm873_vm10 = vmor %vm871_vm8, %vm872_vm5 }
 0x1da   :  { %v2248_v22 = vpop.eup %1238  ;;  %1044 = vst.msk [vmem:[%s2343_s3 + $0x38] sm:$0xf] %vm1029_vm9, %v1011_v53  ;;  %v798_v38 = vmul.f32 0.5, %v797_v4  ;;  %v971_v12 = vmul.f32 %v714_v63, %v1751_v56  ;;  %v869_v49 = vsub.f32 1.5, %v868_v51  ;;  %vm802_vm6 = vweird.f32 %v2223_v23 }
 0x1db   :  { %v936_v2 = vmul.f32 %v2248_v22, %v2199_v14  ;;  %v1010_v40 = vpack.c.bf16 %v978_v8, %v978_v8  ;;  %v880_v30 = vmul.f32 %v2209_v42, %v879_v57  ;;  %v2268_v28 = vadd.f32 1e-06, %v612_v39  ;;  %vm803_vm12 = vmor %vm801_vm11, %vm802_vm6 }
 0x1dc   :  { %v799_v59 = vsub.f32 1.5, %v798_v38  ;;  %v1241_v60 = vpop.eup %1240  ;;  %v1003_v33 = vpack.c.bf16 %v971_v12, %v971_v12  ;;  %v870_v56 = vmul.f32 %v2216_v44, %v869_v49  ;;  %vm942_vm13 = vweird.f32 %v2248_v22 }
 0x1dd   :  { %v937_v36 = vmul.f32 %v2248_v22, %v936_v2  ;;  %1043 = vst.msk [vmem:[%s2343_s3 + $0x34] sm:$0xf] %vm1029_vm9, %v1010_v40  ;;  %v884_v11 = vsel %vm883_vm7, %v2209_v42, %v880_v30  ;;  %v716_v27 = vmul.f32 %v1241_v60, %v2214_v5  ;;  %1244 = vrsqrt.f32 %v2268_v28 }
 0x1de   :  { %v800_v62 = vmul.f32 %v2223_v23, %v799_v59  ;;  %1036 = vst.msk [vmem:[%s2343_s3 + $0x18] sm:$0xf] %vm1029_vm9, %v1003_v33  ;;  %v988_v31 = vmul.f32 %v884_v11, %v1778_v52  ;;  %v874_v50 = vsel %vm873_vm10, %v2216_v44, %v870_v56  ;;  %vm941_vm14 = vweird.f32 %v2199_v14 }
 0x1df   :  { %v1243_v32 = vpop.eup %1242  ;;  %v938_v41 = vmul.f32 0.5, %v937_v36  ;;  %v987_v43 = vmul.f32 %v874_v50, %v1768_v26  ;;  %v717_v18 = vmul.f32 %v1241_v60, %v716_v27  ;;  %vm943_vm15 = vmor %vm941_vm14, %vm942_vm13  ;;  %vm722_vm0 = vweird.f32 %v1241_v60 }
 0x1e0   :  { %v804_v34 = vsel %vm803_vm12, %v2223_v23, %v800_v62  ;;  %v946_v13 = vmul.f32 %v1243_v32, %v2232_v21  ;;  %v1020_v24 = vpack.c.bf16 %v988_v31, %v988_v31  ;;  %vm721_vm1 = vweird.f32 %v2214_v5 }
 0x1e1   :  { %v980_v61 = vmul.f32 %v804_v34, %v1786_v54  ;;  %v939_v47 = vsub.f32 1.5, %v938_v41  ;;  %v1019_v52 = vpack.c.bf16 %v987_v43, %v987_v43  ;;  %v718_v46 = vmul.f32 0.5, %v717_v18  ;;  %vm723_vm3 = vmor %vm721_vm1, %vm722_vm0 }
 0x1e2   :  { %v947_v42 = vmul.f32 %v1243_v32, %v946_v13  ;;  %1053 = vst.msk [vmem:[%s2343_s3 + $0x5c] sm:$0xf] %vm1029_vm9, %v1020_v24  ;;  %vm952_vm2 = vweird.f32 %v1243_v32  ;;  %vm951_vm4 = vweird.f32 %v2232_v21  ;;  %vm961_vm7 = vweird.f32 %v2268_v28 }
 0x1e3   :  { %v1012_v26 = vpack.c.bf16 %v980_v61, %v980_v61  ;;  %v940_v20 = vmul.f32 %v2248_v22, %v939_v47  ;;  %1052 = vst.msk [vmem:[%s2343_s3 + $0x58] sm:$0xf] %vm1029_vm9, %v1019_v52  ;;  %v719_v54 = vsub.f32 1.5, %v718_v46  ;;  %v1245_v44 = vpop.eup %1244  ;;  %vm953_vm5 = vmor %vm951_vm4, %vm952_vm2 }
 0x1e4   :  { %v948_v0 = vmul.f32 0.5, %v947_v42  ;;  %v956_v23 = vmul.f32 %v1245_v44, %v2268_v28  ;;  %vm962_vm6 = vweird.f32 %v1245_v44 }
 0x1e5   :  { %1045 = vst.msk [vmem:[%s2343_s3 + $0x3c] sm:$0xf] %vm1029_vm9, %v1012_v26  ;;  %v944_v7 = vsel %vm943_vm15, %v2248_v22, %v940_v20  ;;  %v720_v19 = vmul.f32 %v1241_v60, %v719_v54  ;;  %vm963_vm8 = vmor %vm961_vm7, %vm962_vm6 }
 0x1e6   :  { %v994_v14 = vmul.f32 %v944_v7, %v1794_v17  ;;  %v949_v35 = vsub.f32 1.5, %v948_v0  ;;  %v957_v16 = vmul.f32 %v1245_v44, %v956_v23 }
 0x1e7   :  { %v724_v48 = vsel %vm723_vm3, %v1241_v60, %v720_v19 }
 0x1e8   :  { %v1026_v45 = vpack.c.bf16 %v994_v14, %v994_v14  ;;  %v950_v3 = vmul.f32 %v1243_v32, %v949_v35  ;;  %v972_v29 = vmul.f32 %v724_v48, %v1798_v55  ;;  %v958_v5 = vmul.f32 0.5, %v957_v16 }
 0x1ea   :  { %1059 = vst.msk [vmem:[%s2343_s3 + $0x74] sm:$0xf] %vm1029_vm9, %v1026_v45  ;;  %v954_v17 = vsel %vm953_vm5, %v1243_v32, %v950_v3  ;;  %v1004_v37 = vpack.c.bf16 %v972_v29, %v972_v29  ;;  %v959_v6 = vsub.f32 1.5, %v958_v5 }
 0x1eb   :  { %v995_v53 = vmul.f32 %v954_v17, %v1804_v15 }
 0x1ec   :  { %1037 = vst.msk [vmem:[%s2343_s3 + $0x1c] sm:$0xf] %vm1029_vm9, %v1004_v37  ;;  %v960_v55 = vmul.f32 %v1245_v44, %v959_v6 }
 0x1ed   :  { %v1027_v21 = vpack.c.bf16 %v995_v53, %v995_v53 }
 0x1ee   :  { %v964_v1 = vsel %vm963_vm8, %v1245_v44, %v960_v55 }
 0x1ef   :  { %1060 = vst.msk [vmem:[%s2343_s3 + $0x78] sm:$0xf] %vm1029_vm9, %v1027_v21  ;;  %v996_v15 = vmul.f32 %v964_v1, %v1816_v10 }
 0x1f1   :  { %v1028_v9 = vpack.c.bf16 %v996_v15, %v996_v15 }
 0x1f3   :  { %1061 = vst.msk [vmem:[%s2343_s3 + $0x7c] sm:$0xf] %vm1029_vm9, %v1028_v9 }

// kernel: referencer_forward.6
= control target key start
LH: loop header
LB: loop body
LE: loop exit
PB: predicated region body
PF: predicated region fallthrough
CT: control target
= control target key end

     0   :  { %vm352_vm0 = vcmask 523264   ;;  %vm22_vm1 = vcmask 7168   ;;  %vm55_vm2 = vcmask 130048   ;;  %vm2199_vm6 = vcmask 1042432   ;;  %s4706_s2 = inlined_call_operand.vmem [shape: bf16[256,64], index: 2, kind: input, shape index: {}]   ;;  %s4707_s1 = inlined_call_operand.vmem [shape: bf16[256,64], index: 1, kind: input, shape index: {}]   ;;  %s4708_s0 = inlined_call_operand.<no memory space> [shape: f32[1,1], index: 0, kind: input, shape index: {}]   ;;  %s4709_s3 = inlined_call_operand.vmem [shape: bf16[256,16], index: 3, kind: input, shape index: {}]   ;;  %s4710_s4 = inlined_call_operand.vmem [shape: bf16[256,16], index: 4, kind: output, shape index: {}]  }
   0x1   :  { %v2686_v0 = vld [vmem:[%s4706_s2 + $0x38] sm:$0xff]  ;;  %v2685_v4 = vld [vmem:[%s4706_s2 + $0x30] sm:$0xff]  ;;  %v2684_v8 = vld [vmem:[%s4706_s2 + $0x28] sm:$0xff]  ;;  %v3150_v40 = vstv %s4708_s0  ;;  %vm2134_vm7 = vcmask 23552   ;;  %vm2380_vm8 = vcmask 125952  }
   0x2   :  { %v2694_v1 = vld [vmem:[%s4706_s2 + $0x78] sm:$0xff]  ;;  %v423_v2 = vsel %vm352_vm0, %v2686_v0, 0  ;;  %v2693_v5 = vld [vmem:[%s4706_s2 + $0x70] sm:$0xff]  ;;  %v420_v6 = vsel %vm352_vm0, %v2685_v4, 0  ;;  %v2692_v9 = vld [vmem:[%s4706_s2 + $0x68] sm:$0xff]  ;;  %v417_v10 = vsel %vm352_vm0, %v2684_v8, 0 }
   0x3   :  { %v447_v3 = vsel %vm352_vm0, %v2694_v1, 0  ;;  %449 = vmatpush.bf16.xpose.msra.mxu0 %v423_v2  ;;  %v444_v7 = vsel %vm352_vm0, %v2693_v5, 0  ;;  %v441_v11 = vsel %vm352_vm0, %v2692_v9, 0  ;;  %v2683_v12 = vld [vmem:[%s4706_s2 + $0x20] sm:$0xff]  ;;  %v2682_v16 = vld [vmem:[%s4706_s2 + $0x18] sm:$0xff]  ;;  %v2681_v20 = vld [vmem:[%s4706_s2 + $0x10] sm:$0xff] }
   0x4   :  { %538 = vmatpush.bf16.xpose.msra.mxu1 %v447_v3  ;;  %v2691_v13 = vld [vmem:[%s4706_s2 + $0x60] sm:$0xff]  ;;  %v414_v14 = vsel %vm352_vm0, %v2683_v12, 0  ;;  %v2690_v17 = vld [vmem:[%s4706_s2 + $0x58] sm:$0xff]  ;;  %v411_v18 = vsel %vm352_vm0, %v2682_v16, 0  ;;  %v2689_v21 = vld [vmem:[%s4706_s2 + $0x50] sm:$0xff]  ;;  %v408_v22 = vsel %vm352_vm0, %v2681_v20, 0 }
   0x5   :  { %v438_v15 = vsel %vm352_vm0, %v2691_v13, 0  ;;  %v435_v19 = vsel %vm352_vm0, %v2690_v17, 0  ;;  %v432_v23 = vsel %vm352_vm0, %v2689_v21, 0  ;;  %v2680_v24 = vld [vmem:[%s4706_s2 + $0x8] sm:$0xff]  ;;  %v2679_v28 = vld [vmem:[%s4706_s2] sm:$0xff]  ;;  %v2713_v34 = vld [vmem:[%s4707_s1 + $0x10] sm:$0xff] }
   0x6   :  { %v2688_v25 = vld [vmem:[%s4706_s2 + $0x48] sm:$0xff]  ;;  %v405_v26 = vsel %vm352_vm0, %v2680_v24, 0  ;;  %v2687_v29 = vld [vmem:[%s4706_s2 + $0x40] sm:$0xff]  ;;  %v402_v30 = vsel %vm352_vm0, %v2679_v28, 0  ;;  %v2714_v35 = vld [vmem:[%s4707_s1 + $0x18] sm:$0xff] }
   0x7   :  { %v429_v27 = vsel %vm352_vm0, %v2688_v25, 0  ;;  %v426_v31 = vsel %vm352_vm0, %v2687_v29, 0  ;;  %v2711_v32 = vld [vmem:[%s4707_s1] sm:$0xff]  ;;  %v2712_v33 = vld [vmem:[%s4707_s1 + $0x8] sm:$0xff]  ;;  %v2717_v38 = vld [vmem:[%s4707_s1 + $0x30] sm:$0xff] }
   0x8   :  { %v2715_v36 = vld [vmem:[%s4707_s1 + $0x20] sm:$0xff]  ;;  %v2716_v37 = vld [vmem:[%s4707_s1 + $0x28] sm:$0xff]  ;;  %v2718_v39 = vld [vmem:[%s4707_s1 + $0x38] sm:$0xff] }
   0x9   :  { %v2719_v41 = vld [vmem:[%s4707_s1 + $0x40] sm:$0xff]  ;;  %v2720_v52 = vld [vmem:[%s4707_s1 + $0x48] sm:$0xff]  ;;  %v2721_v63 = vld [vmem:[%s4707_s1 + $0x50] sm:$0xff] }
   0xa   :  { %v2724_v20 = vld [vmem:[%s4707_s1 + $0x68] sm:$0xff] }
   0xb   :  { %450 = vmatpush.bf16.xpose.msra.mxu0 %v420_v6 }
   0xc   :  { %539 = vmatpush.bf16.xpose.msra.mxu1 %v444_v7 }
  0x13   :  { %451 = vmatpush.bf16.xpose.msra.mxu0 %v417_v10  ;;  %v2722_v10 = vld [vmem:[%s4707_s1 + $0x58] sm:$0xff] }
  0x14   :  { %540 = vmatpush.bf16.xpose.msra.mxu1 %v441_v11 }
  0x1b   :  { %452 = vmatpush.bf16.xpose.msra.mxu0 %v414_v14 }
  0x1c   :  { %541 = vmatpush.bf16.xpose.msra.mxu1 %v438_v15  ;;  %v2723_v15 = vld [vmem:[%s4707_s1 + $0x60] sm:$0xff] }
  0x23   :  { %453 = vmatpush.bf16.xpose.msra.mxu0 %v411_v18 }
  0x24   :  { %542 = vmatpush.bf16.xpose.msra.mxu1 %v435_v19 }
  0x2b   :  { %454 = vmatpush.bf16.xpose.msra.mxu0 %v408_v22 }
  0x2c   :  { %543 = vmatpush.bf16.xpose.msra.mxu1 %v432_v23  ;;  %v3014_v23 = vmov -1e+30  }
  0x2d   :  { %23 = vst.msk [vmem:[#allocation2] sm:$0xff] %vm22_vm1, %v3014_v23 }
  0x2e   :  { %24 = vst.msk [vmem:[#allocation2 + $0x8] sm:$0xff] %vm22_vm1, %v3014_v23 }
  0x2f   :  { %25 = vst.msk [vmem:[#allocation2 + $0x10] sm:$0xff] %vm22_vm1, %v3014_v23 }
  0x30   :  { %26 = vst.msk [vmem:[#allocation2 + $0x18] sm:$0xff] %vm22_vm1, %v3014_v23 }
  0x31   :  { %27 = vst.msk [vmem:[#allocation2 + $0x20] sm:$0xff] %vm22_vm1, %v3014_v23 }
  0x32   :  { %28 = vst.msk [vmem:[#allocation2 + $0x28] sm:$0xff] %vm22_vm1, %v3014_v23 }
  0x33   :  { %455 = vmatpush.bf16.xpose.msra.mxu0 %v405_v26  ;;  %29 = vst.msk [vmem:[#allocation2 + $0x30] sm:$0xff] %vm22_vm1, %v3014_v23  ;;  %v2725_v26 = vld [vmem:[%s4707_s1 + $0x70] sm:$0xff] }
  0x34   :  { %544 = vmatpush.bf16.xpose.msra.mxu1 %v429_v27  ;;  %30 = vst.msk [vmem:[#allocation2 + $0x38] sm:$0xff] %vm22_vm1, %v3014_v23 }
  0x35   :  { %31 = vst.msk [vmem:[#allocation2 + $0x40] sm:$0xff] %vm22_vm1, %v3014_v23 }
  0x36   :  { %32 = vst.msk [vmem:[#allocation2 + $0x48] sm:$0xff] %vm22_vm1, %v3014_v23 }
  0x37   :  { %33 = vst.msk [vmem:[#allocation2 + $0x50] sm:$0xff] %vm22_vm1, %v3014_v23 }
  0x38   :  { %34 = vst.msk [vmem:[#allocation2 + $0x58] sm:$0xff] %vm22_vm1, %v3014_v23 }
  0x39   :  { %35 = vst.msk [vmem:[#allocation2 + $0x60] sm:$0xff] %vm22_vm1, %v3014_v23 }
  0x3a   :  { %36 = vst.msk [vmem:[#allocation2 + $0x68] sm:$0xff] %vm22_vm1, %v3014_v23 }
  0x3b   :  { %456 = vmatpush.bf16.xpose.msra.mxu0 %v402_v30  ;;  %37 = vst.msk [vmem:[#allocation2 + $0x70] sm:$0xff] %vm22_vm1, %v3014_v23 }
  0x3c   :  { %545 = vmatpush.bf16.xpose.msra.mxu1 %v426_v31  ;;  %38 = vst.msk [vmem:[#allocation2 + $0x78] sm:$0xff] %vm22_vm1, %v3014_v23  ;;  %v2726_v31 = vld [vmem:[%s4707_s1 + $0x78] sm:$0xff] }
  0x3d   :  { %39 = vst.msk [vmem:[#allocation2 + $0x80] sm:$0xff] %vm22_vm1, %v3014_v23 }
  0x3e   :  { %40 = vst.msk [vmem:[#allocation2 + $0x88] sm:$0xff] %vm22_vm1, %v3014_v23 }
  0x3f   :  { %41 = vst.msk [vmem:[#allocation2 + $0x90] sm:$0xff] %vm22_vm1, %v3014_v23 }
  0x40   :  { %42 = vst.msk [vmem:[#allocation2 + $0x98] sm:$0xff] %vm22_vm1, %v3014_v23 }
  0x41   :  { %43 = vst.msk [vmem:[#allocation2 + $0xa0] sm:$0xff] %vm22_vm1, %v3014_v23 }
  0x42   :  { %2549 = vmatmul.msk.bf16.vlgmr.msra.gmra.mxu0 %vm352_vm0, %v2711_v32  ;;  %44 = vst.msk [vmem:[#allocation2 + $0xa8] sm:$0xff] %vm22_vm1, %v3014_v23 }
  0x43   :  { %2565 = vmatmul.msk.bf16.vlgmr.msra.gmra.mxu1 %vm352_vm0, %v2711_v32  ;;  %45 = vst.msk [vmem:[#allocation2 + $0xb0] sm:$0xff] %vm22_vm1, %v3014_v23 }
  0x44   :  { %46 = vst.msk [vmem:[#allocation2 + $0xb8] sm:$0xff] %vm22_vm1, %v3014_v23 }
  0x45   :  { %47 = vst.msk [vmem:[#allocation2 + $0xc0] sm:$0xff] %vm22_vm1, %v3014_v23 }
  0x46   :  { %48 = vst.msk [vmem:[#allocation2 + $0xc8] sm:$0xff] %vm22_vm1, %v3014_v23 }
  0x47   :  { %49 = vst.msk [vmem:[#allocation2 + $0xd0] sm:$0xff] %vm22_vm1, %v3014_v23 }
  0x48   :  { %50 = vst.msk [vmem:[#allocation2 + $0xd8] sm:$0xff] %vm22_vm1, %v3014_v23 }
  0x49   :  { %51 = vst.msk [vmem:[#allocation2 + $0xe0] sm:$0xff] %vm22_vm1, %v3014_v23 }
  0x4a   :  { %52 = vst.msk [vmem:[#allocation2 + $0xe8] sm:$0xff] %vm22_vm1, %v3014_v23 }
  0x4b   :  { %53 = vst.msk [vmem:[#allocation2 + $0xf0] sm:$0xff] %vm22_vm1, %v3014_v23 }
  0x4c   :  { %54 = vst.msk [vmem:[#allocation2 + $0xf8] sm:$0xff] %vm22_vm1, %v3014_v23 }
  0x52   :  { %2550 = vmatmul.msk.bf16.gmra.mxu0 %vm352_vm0, %v2712_v33 }
  0x53   :  { %2566 = vmatmul.msk.bf16.gmra.mxu1 %vm352_vm0, %v2712_v33 }
  0x62   :  { %2551 = vmatmul.msk.bf16.gmra.mxu0 %vm352_vm0, %v2713_v34 }
  0x63   :  { %2567 = vmatmul.msk.bf16.gmra.mxu1 %vm352_vm0, %v2713_v34  ;;  %v3308_v34 = vld [vmem:[#allocation2] sm:$0xff] }
  0x64   :  { %4770 = vst [vmem:[#allocation10_spill] sm:$0xff] %v3308_v34 }
  0x72   :  { %2552 = vmatmul.msk.bf16.gmra.mxu0 %vm352_vm0, %v2714_v35 }
  0x73   :  { %2568 = vmatmul.msk.bf16.gmra.mxu1 %vm352_vm0, %v2714_v35 }
  0x82   :  { %2553 = vmatmul.msk.bf16.gmra.mxu0 %vm352_vm0, %v2715_v36 }
  0x83   :  { %2569 = vmatmul.msk.bf16.gmra.mxu1 %vm352_vm0, %v2715_v36 }
  0x92   :  { %2554 = vmatmul.msk.bf16.gmra.mxu0 %vm352_vm0, %v2716_v37 }
  0x93   :  { %2570 = vmatmul.msk.bf16.gmra.mxu1 %vm352_vm0, %v2716_v37 }
  0xa2   :  { %2555 = vmatmul.msk.bf16.gmra.mxu0 %vm352_vm0, %v2717_v38 }
  0xa3   :  { %2571 = vmatmul.msk.bf16.gmra.mxu1 %vm352_vm0, %v2717_v38 }
  0xb2   :  { %2556 = vmatmul.msk.bf16.gmra.mxu0 %vm352_vm0, %v2718_v39 }
  0xb3   :  { %2572 = vmatmul.msk.bf16.gmra.mxu1 %vm352_vm0, %v2718_v39  ;;  %v3319_v39 = vld [vmem:[#allocation2 + $0x8] sm:$0xff] }
  0xb4   :  { %4772 = vst [vmem:[#allocation12_spill] sm:$0xff] %v3319_v39 }
  0xbf   :  { %v458_v42 = vpop.f32.mrf.mxu0 }
  0xc0   :  { %v547_v43 = vpop.f32.mrf.mxu1  ;;  %v3156_v44 = vmul.f32 %v3150_v40, %v458_v42 }
  0xc1   :  { %v3159_v45 = vmul.f32 %v3150_v40, %v547_v43 }
  0xc2   :  { %2557 = vmatmul.msk.bf16.gmra.mxu0 %vm352_vm0, %v2719_v41 }
  0xc3   :  { %2573 = vmatmul.msk.bf16.gmra.mxu1 %vm352_vm0, %v2719_v41  ;;  %v724_v46 = vmax.f32 %v3156_v44, %v3159_v45 }
  0xc5   :  { %725 = vmax.xlane.f32.xlu2 %v724_v46 }
  0xc7   :  { %v460_v47 = vpop.f32.mrf.mxu0 }
  0xc8   :  { %v549_v48 = vpop.f32.mrf.mxu1  ;;  %v3166_v49 = vmul.f32 %v3150_v40, %v460_v47  ;;  %v3330_v47 = vld [vmem:[#allocation2 + $0x10] sm:$0xff] }
  0xc9   :  { %v3169_v50 = vmul.f32 %v3150_v40, %v549_v48  ;;  %4773 = vst [vmem:[#allocation13_spill] sm:$0xff] %v3330_v47 }
  0xcb   :  { %v727_v51 = vmax.f32 %v3166_v49, %v3169_v50 }
  0xcd   :  { %728 = vmax.xlane.f32.xlu1 %v727_v51 }
  0xcf   :  { %v463_v53 = vpop.f32.mrf.mxu0 }
  0xd0   :  { %v552_v54 = vpop.f32.mrf.mxu1  ;;  %v3177_v55 = vmul.f32 %v3150_v40, %v463_v53 }
  0xd1   :  { %v3180_v56 = vmul.f32 %v3150_v40, %v552_v54  ;;  %v3341_v54 = vld [vmem:[#allocation2 + $0x18] sm:$0xff] }
  0xd2   :  { %2558 = vmatmul.msk.bf16.gmra.mxu0 %vm352_vm0, %v2720_v52  ;;  %4775 = vst [vmem:[#allocation15_spill] sm:$0xff] %v3341_v54 }
  0xd3   :  { %2574 = vmatmul.msk.bf16.gmra.mxu1 %vm352_vm0, %v2720_v52  ;;  %v730_v57 = vmax.f32 %v3177_v55, %v3180_v56 }
  0xd5   :  { %731 = vmax.xlane.f32.xlu2 %v730_v57 }
  0xd7   :  { %v465_v58 = vpop.f32.mrf.mxu0 }
  0xd8   :  { %v554_v59 = vpop.f32.mrf.mxu1  ;;  %v3187_v60 = vmul.f32 %v3150_v40, %v465_v58 }
  0xd9   :  { %v3190_v61 = vmul.f32 %v3150_v40, %v554_v59 }
  0xdb   :  { %4765 = vst [vmem:[#allocation5_spill] sm:$0xff] %v3190_v61  ;;  %v733_v62 = vmax.f32 %v3187_v60, %v3190_v61 }
  0xdd   :  { %734 = vmax.xlane.f32.xlu0 %v733_v62 }
  0xdf   :  { %v468_v0 = vpop.f32.mrf.mxu0 }
  0xe0   :  { %v557_v1 = vpop.f32.mrf.mxu1  ;;  %v3198_v2 = vmul.f32 %v3150_v40, %v468_v0 }
  0xe1   :  { %v3201_v3 = vmul.f32 %v3150_v40, %v557_v1 }
  0xe2   :  { %4766 = vst [vmem:[#allocation6_spill] sm:$0xff] %v3198_v2  ;;  %2559 = vmatmul.msk.bf16.gmra.mxu0 %vm352_vm0, %v2721_v63 }
  0xe3   :  { %4767 = vst [vmem:[#allocation7_spill] sm:$0xff] %v3201_v3  ;;  %2575 = vmatmul.msk.bf16.gmra.mxu1 %vm352_vm0, %v2721_v63  ;;  %v736_v4 = vmax.f32 %v3198_v2, %v3201_v3  ;;  %v3352_v63 = vld [vmem:[#allocation2 + $0x20] sm:$0xff] }
  0xe4   :  { %4776 = vst [vmem:[#allocation16_spill] sm:$0xff] %v3352_v63 }
  0xe5   :  { %737 = vmax.xlane.f32.xlu1 %v736_v4 }
  0xe7   :  { %v470_v5 = vpop.f32.mrf.mxu0 }
  0xe8   :  { %v559_v6 = vpop.f32.mrf.mxu1  ;;  %v3208_v7 = vmul.f32 %v3150_v40, %v470_v5 }
  0xe9   :  { %v3211_v8 = vmul.f32 %v3150_v40, %v559_v6  ;;  %v3363_v6 = vld [vmem:[#allocation2 + $0x28] sm:$0xff] }
  0xea   :  { %4768 = vst [vmem:[#allocation8_spill] sm:$0xff] %v3208_v7 }
  0xeb   :  { %4769 = vst [vmem:[#allocation9_spill] sm:$0xff] %v3211_v8  ;;  %v739_v9 = vmax.f32 %v3208_v7, %v3211_v8 }
  0xec   :  { %4779 = vst [vmem:[#allocation19_spill] sm:$0xff] %v3363_v6 }
  0xed   :  { %740 = vmax.xlane.f32.xlu2 %v739_v9 }
  0xef   :  { %v3218_v11 = vpop.f32.mrf.mxu0 }
  0xf0   :  { %v3220_v12 = vpop.f32.mrf.mxu1 }
  0xf2   :  { %2560 = vmatmul.msk.bf16.gmra.mxu0 %vm352_vm0, %v2722_v10 }
  0xf3   :  { %2576 = vmatmul.msk.bf16.gmra.mxu1 %vm352_vm0, %v2722_v10 }
  0xf7   :  { %v3224_v13 = vpop.f32.mrf.mxu0 }
  0xf8   :  { %v3226_v14 = vpop.f32.mrf.mxu1 }
  0xff   :  { %v3231_v16 = vpop.f32.mrf.mxu0 }
 0x100   :  { %v3233_v17 = vpop.f32.mrf.mxu1 }
 0x102   :  { %2561 = vmatmul.msk.bf16.gmra.mxu0 %vm352_vm0, %v2723_v15 }
 0x103   :  { %2577 = vmatmul.msk.bf16.gmra.mxu1 %vm352_vm0, %v2723_v15 }
 0x107   :  { %v3237_v18 = vpop.f32.mrf.mxu0 }
 0x108   :  { %v3239_v19 = vpop.f32.mrf.mxu1 }
 0x10f   :  { %v3244_v21 = vpop.f32.mrf.mxu0 }
 0x110   :  { %v3246_v22 = vpop.f32.mrf.mxu1 }
 0x112   :  { %2562 = vmatmul.msk.bf16.gmra.mxu0 %vm352_vm0, %v2724_v20 }
 0x113   :  { %2578 = vmatmul.msk.bf16.gmra.mxu1 %vm352_vm0, %v2724_v20 }
 0x117   :  { %v3257_v24 = vpop.f32.mrf.mxu0 }
 0x118   :  { %v3259_v25 = vpop.f32.mrf.mxu1 }
 0x11f   :  { %v3272_v27 = vpop.f32.mrf.mxu0 }
 0x120   :  { %v3274_v28 = vpop.f32.mrf.mxu1 }
 0x122   :  { %2563 = vmatmul.msk.bf16.gmra.mxu0 %vm352_vm0, %v2725_v26 }
 0x123   :  { %2579 = vmatmul.msk.bf16.gmra.mxu1 %vm352_vm0, %v2725_v26 }
 0x127   :  { %v3286_v29 = vpop.f32.mrf.mxu0 }
 0x128   :  { %v3288_v30 = vpop.f32.mrf.mxu1 }
 0x12f   :  { %v3301_v32 = vpop.f32.mrf.mxu0 }
 0x130   :  { %v3303_v33 = vpop.f32.mrf.mxu1 }
 0x132   :  { %2564 = vmatmul.msk.bf16.gmra.mxu0 %vm352_vm0, %v2726_v31 }
 0x133   :  { %2580 = vmatmul.msk.bf16.gmra.mxu1 %vm352_vm0, %v2726_v31 }
 0x137   :  { %v3310_v35 = vpop.f32.mrf.mxu0 }
 0x138   :  { %v3312_v36 = vpop.f32.mrf.mxu1  ;;  %v726_v37 = vpop.xlane.xlu2 %725 }
 0x139   :  { %v3315_v38 = vmax.f32 %v3308_v34, %v726_v37 }
 0x13b   :  { %4771 = vst [vmem:[#allocation11_spill] sm:$0xff] %v3315_v38 }
 0x13c   :  { %1896 = vst.msk [vmem:[#allocation2] sm:$0xff] %vm22_vm1, %v3315_v38 }
 0x13f   :  { %v3321_v41 = vpop.f32.mrf.mxu0 }
 0x140   :  { %v3323_v42 = vpop.f32.mrf.mxu1  ;;  %v729_v43 = vpop.xlane.xlu1 %728 }
 0x141   :  { %v3326_v46 = vmax.f32 %v3319_v39, %v729_v43 }
 0x143   :  { %1897 = vst.msk [vmem:[#allocation2 + $0x8] sm:$0xff] %vm22_vm1, %v3326_v46 }
 0x147   :  { %v3332_v48 = vpop.f32.mrf.mxu0 }
 0x148   :  { %v3334_v51 = vpop.f32.mrf.mxu1  ;;  %v732_v52 = vpop.xlane.xlu2 %731 }
 0x149   :  { %v3337_v53 = vmax.f32 %v3330_v47, %v732_v52 }
 0x14b   :  { %4774 = vst [vmem:[#allocation14_spill] sm:$0xff] %v3337_v53 }
 0x14c   :  { %1898 = vst.msk [vmem:[#allocation2 + $0x10] sm:$0xff] %vm22_vm1, %v3337_v53 }
 0x14f   :  { %v3343_v57 = vpop.f32.mrf.mxu0 }
 0x150   :  { %v3345_v58 = vpop.f32.mrf.mxu1  ;;  %v735_v59 = vpop.xlane.xlu0 %734 }
 0x151   :  { %v3348_v62 = vmax.f32 %v3341_v54, %v735_v59 }
 0x153   :  { %1899 = vst.msk [vmem:[#allocation2 + $0x18] sm:$0xff] %vm22_vm1, %v3348_v62 }
 0x157   :  { %v3354_v0 = vpop.f32.mrf.mxu0 }
 0x158   :  { %4777 = vst [vmem:[#allocation17_spill] sm:$0xff] %v3354_v0  ;;  %v3356_v1 = vpop.f32.mrf.mxu1  ;;  %v738_v4 = vpop.xlane.xlu1 %737 }
 0x159   :  { %4778 = vst [vmem:[#allocation18_spill] sm:$0xff] %v3356_v1  ;;  %v3359_v5 = vmax.f32 %v3352_v63, %v738_v4 }
 0x15b   :  { %1900 = vst.msk [vmem:[#allocation2 + $0x20] sm:$0xff] %vm22_vm1, %v3359_v5 }
 0x15f   :  { %v3365_v9 = vpop.f32.mrf.mxu0 }
 0x160   :  { %4780 = vst [vmem:[#allocation20_spill] sm:$0xff] %v3365_v9  ;;  %v3367_v10 = vpop.f32.mrf.mxu1  ;;  %v741_v15 = vpop.xlane.xlu2 %740 }
 0x161   :  { %4781 = vst [vmem:[#allocation21_spill] sm:$0xff] %v3367_v10  ;;  %v3370_v20 = vmax.f32 %v3363_v6, %v741_v15 }
 0x163   :  { %1901 = vst.msk [vmem:[#allocation2 + $0x28] sm:$0xff] %vm22_vm1, %v3370_v20 }
 0x167   :  { %v3374_v23 = vpop.f32.mrf.mxu0 }
 0x168   :  { %4782 = vst [vmem:[#allocation22_spill] sm:$0xff] %v3374_v23  ;;  %v3376_v26 = vpop.f32.mrf.mxu1 }
 0x169   :  { %4783 = vst [vmem:[#allocation23_spill] sm:$0xff] %v3376_v26 }
 0x16f   :  { %v513_v31 = vpop.f32.mrf.mxu0 }
 0x170   :  { %v602_v37 = vpop.f32.mrf.mxu1  ;;  %v3379_v43 = vmul.f32 %v3150_v40, %v513_v31 }
 0x171   :  { %v3382_v52 = vmul.f32 %v3150_v40, %v602_v37 }
 0x173   :  { %v790_v59 = vmax.f32 %v3379_v43, %v3382_v52 }
 0x175   :  { %791 = vmax.xlane.f32.xlu0 %v790_v59 }
 0x177   :  { %v515_v4 = vpop.f32.mrf.mxu0 }
 0x178   :  { %v604_v15 = vpop.f32.mrf.mxu1  ;;  %v3387_v6 = vmul.f32 %v3150_v40, %v515_v4 }
 0x179   :  { %v3390_v47 = vmul.f32 %v3150_v40, %v604_v15 }
 0x17b   :  { %v793_v63 = vmax.f32 %v3387_v6, %v3390_v47 }
 0x17d   :  { %794 = vmax.xlane.f32.xlu0 %v793_v63 }
 0x17f   :  { %v518_v31 = vpop.f32.mrf.mxu0 }
 0x180   :  { %v607_v39 = vpop.f32.mrf.mxu1  ;;  %v3395_v37 = vmul.f32 %v3150_v40, %v518_v31 }
 0x181   :  { %v3398_v54 = vmul.f32 %v3150_v40, %v607_v39 }
 0x183   :  { %v796_v59 = vmax.f32 %v3395_v37, %v3398_v54 }
 0x185   :  { %797 = vmax.xlane.f32.xlu1 %v796_v59 }
 0x187   :  { %v520_v4 = vpop.f32.mrf.mxu0 }
 0x188   :  { %v609_v34 = vpop.f32.mrf.mxu1  ;;  %v3403_v15 = vmul.f32 %v3150_v40, %v520_v4 }
 0x189   :  { %v3406_v1 = vmul.f32 %v3150_v40, %v609_v34 }
 0x18b   :  { %v799_v63 = vmax.f32 %v3403_v15, %v3406_v1 }
 0x18d   :  { %800 = vmax.xlane.f32.xlu1 %v799_v63 }
 0x18f   :  { %v523_v31 = vpop.f32.mrf.mxu0 }
 0x190   :  { %v612_v0 = vpop.f32.mrf.mxu1  ;;  %v3411_v39 = vmul.f32 %v3150_v40, %v523_v31 }
 0x191   :  { %v3414_v26 = vmul.f32 %v3150_v40, %v612_v0 }
 0x193   :  { %4784 = vst [vmem:[#allocation24_spill] sm:$0xff] %v3414_v26  ;;  %v802_v59 = vmax.f32 %v3411_v39, %v3414_v26 }
 0x195   :  { %803 = vmax.xlane.f32.xlu2 %v802_v59 }
 0x197   :  { %v525_v4 = vpop.f32.mrf.mxu0 }
 0x198   :  { %v614_v23 = vpop.f32.mrf.mxu1  ;;  %v3419_v34 = vmul.f32 %v3150_v40, %v525_v4 }
 0x199   :  { %v3422_v3 = vmul.f32 %v3150_v40, %v614_v23 }
 0x19b   :  { %4785 = vst [vmem:[#allocation25_spill] sm:$0xff] %v3422_v3  ;;  %v805_v63 = vmax.f32 %v3419_v34, %v3422_v3 }
 0x19d   :  { %806 = vmax.xlane.f32.xlu2 %v805_v63 }
 0x19f   :  { %v528_v31 = vpop.f32.mrf.mxu0 }
 0x1a0   :  { %v617_v8 = vpop.f32.mrf.mxu1  ;;  %v3427_v0 = vmul.f32 %v3150_v40, %v528_v31  ;;  %v3448_v31 = vmul.f32 %v3150_v40, %v3226_v14  ;;  %v3466_v14 = vmul.f32 %v3150_v40, %v3233_v17  ;;  %v3478_v17 = vld [vmem:[#allocation2 + $0xb0] sm:$0xff] }
 0x1a1   :  { %v3430_v26 = vmul.f32 %v3150_v40, %v617_v8  ;;  %v3444_v8 = vmul.f32 %v3150_v40, %v3224_v13  ;;  %v3462_v13 = vmul.f32 %v3150_v40, %v3231_v16  ;;  %v3015_v16 = vmov 0   ;;  %4789 = vst [vmem:[#allocation29_spill] sm:$0xff] %v3478_v17 }
 0x1a2   :  { %4786 = vst [vmem:[#allocation26_spill] sm:$0xff] %v3448_v31  ;;  %2755 = vset.pattern.permute.xlu0 %v3015_v16  ;;  %2756 = vset.pattern.permute.xlu1 %v3015_v16 }
 0x1a3   :  { %v808_v59 = vmax.f32 %v3427_v0, %v3430_v26  ;;  %4787 = vst [vmem:[#allocation27_spill] sm:$0xff] %v3462_v13  ;;  %2757 = vset.pattern.permute.xlu2 %v3015_v16 }
 0x1a4   :  { %4788 = vst [vmem:[#allocation28_spill] sm:$0xff] %v3466_v14 }
 0x1a5   :  { %809 = vmax.xlane.f32.xlu2 %v808_v59 }
 0x1a7   :  { %v530_v4 = vpop.f32.mrf.mxu0 }
 0x1a8   :  { %v619_v10 = vpop.f32.mrf.mxu1  ;;  %v3435_v23 = vmul.f32 %v3150_v40, %v530_v4 }
 0x1a9   :  { %v3438_v3 = vmul.f32 %v3150_v40, %v619_v10 }
 0x1ab   :  { %v811_v63 = vmax.f32 %v3435_v23, %v3438_v3 }
 0x1ad   :  { %812 = vmax.xlane.f32.xlu2 %v811_v63  ;;  %v745_v63 = vmax.f32 %v3444_v8, %v3448_v31 }
 0x1af   :  { %v533_v59 = vpop.f32.mrf.mxu0 }
 0x1b0   :  { %v622_v9 = vpop.f32.mrf.mxu1  ;;  %v3451_v4 = vmul.f32 %v3150_v40, %v533_v59 }
 0x1b1   :  { %v3454_v10 = vmul.f32 %v3150_v40, %v622_v9 }
 0x1b3   :  { %v814_v7 = vmax.f32 %v3451_v4, %v3454_v10 }
 0x1b5   :  { %815 = vmax.xlane.f32.xlu1 %v814_v7  ;;  %746 = vmax.xlane.f32.xlu2 %v745_v63  ;;  %v748_v7 = vmax.f32 %v3462_v13, %v3466_v14  ;;  %v3568_v13 = vld [vmem:[#allocation2 + $0x38] sm:$0xff] }
 0x1b6   :  { %4808 = vst [vmem:[#allocation48_spill] sm:$0xff] %v3568_v13 }
 0x1b7   :  { %v535_v59 = vpop.f32.mrf.mxu0 }
 0x1b8   :  { %v624_v2 = vpop.f32.mrf.mxu1  ;;  %v3469_v9 = vmul.f32 %v3150_v40, %v535_v59 }
 0x1b9   :  { %v3472_v61 = vmul.f32 %v3150_v40, %v624_v2 }
 0x1bb   :  { %v817_v63 = vmax.f32 %v3469_v9, %v3472_v61 }
 0x1bd   :  { %749 = vmax.xlane.f32.xlu1 %v748_v7  ;;  %818 = vmax.xlane.f32.xlu0 %v817_v63  ;;  %v3488_v7 = vld [vmem:[#allocation2 + $0xb8] sm:$0xff] }
 0x1be   :  { %4791 = vst [vmem:[#allocation31_spill] sm:$0xff] %v3488_v7 }
 0x1e8   :  { %v792_v31 = vpop.xlane.xlu0 %791 }
 0x1e9   :  { %v3481_v59 = vmax.f32 %v3478_v17, %v792_v31  ;;  %v3498_v31 = vld [vmem:[#allocation2 + $0xc0] sm:$0xff] }
 0x1ea   :  { %4793 = vst [vmem:[#allocation33_spill] sm:$0xff] %v3498_v31 }
 0x1eb   :  { %4790 = vst [vmem:[#allocation30_spill] sm:$0xff] %v3481_v59  ;;  %1060 = vperm.xlu0 %2755, %v3481_v59  }
 0x1ec   :  { %1918 = vst.msk [vmem:[#allocation2 + $0xb0] sm:$0xff] %vm22_vm1, %v3481_v59 }
 0x1f0   :  { %v795_v63 = vpop.xlane.xlu0 %794 }
 0x1f1   :  { %v3491_v14 = vmax.f32 %v3488_v7, %v795_v63  ;;  %v3508_v63 = vld [vmem:[#allocation2 + $0xc8] sm:$0xff] }
 0x1f2   :  { %4795 = vst [vmem:[#allocation35_spill] sm:$0xff] %v3508_v63 }
 0x1f3   :  { %4792 = vst [vmem:[#allocation32_spill] sm:$0xff] %v3491_v14  ;;  %1065 = vperm.xlu1 %2756, %v3491_v14  }
 0x1f4   :  { %1919 = vst.msk [vmem:[#allocation2 + $0xb8] sm:$0xff] %vm22_vm1, %v3491_v14  ;;  %v3532_v14 = vmul.f32 %v3150_v40, %v3218_v11 }
 0x1f6   :  { %4800 = vst [vmem:[#allocation40_spill] sm:$0xff] %v3532_v14 }
 0x1f8   :  { %v798_v2 = vpop.xlane.xlu1 %797 }
 0x1f9   :  { %v3501_v17 = vmax.f32 %v3498_v31, %v798_v2  ;;  %v3518_v2 = vld [vmem:[#allocation2 + $0xd0] sm:$0xff] }
 0x1fa   :  { %4797 = vst [vmem:[#allocation37_spill] sm:$0xff] %v3518_v2 }
 0x1fb   :  { %4794 = vst [vmem:[#allocation34_spill] sm:$0xff] %v3501_v17  ;;  %1070 = vperm.xlu2 %2757, %v3501_v17  }
 0x1fc   :  { %1920 = vst.msk [vmem:[#allocation2 + $0xc0] sm:$0xff] %vm22_vm1, %v3501_v17  ;;  %v3557_v17 = vld [vmem:[#allocation2 + $0xe8] sm:$0xff] }
 0x1fd   :  { %4805 = vst [vmem:[#allocation45_spill] sm:$0xff] %v3557_v17 }
 0x200   :  { %v801_v16 = vpop.xlane.xlu1 %800 }
 0x201   :  { %v3511_v7 = vmax.f32 %v3508_v63, %v801_v16  ;;  %v3528_v16 = vld [vmem:[#allocation2 + $0xd8] sm:$0xff] }
 0x202   :  { %4799 = vst [vmem:[#allocation39_spill] sm:$0xff] %v3528_v16 }
 0x203   :  { %4796 = vst [vmem:[#allocation36_spill] sm:$0xff] %v3511_v7  ;;  %1075 = vperm.xlu1 %2756, %v3511_v7  }
 0x204   :  { %1921 = vst.msk [vmem:[#allocation2 + $0xc8] sm:$0xff] %vm22_vm1, %v3511_v7  ;;  %v3536_v7 = vmul.f32 %v3150_v40, %v3220_v12 }
 0x206   :  { %4801 = vst [vmem:[#allocation41_spill] sm:$0xff] %v3536_v7  ;;  %v742_v11 = vmax.f32 %v3532_v14, %v3536_v7 }
 0x208   :  { %v804_v59 = vpop.xlane.xlu2 %803 }
 0x209   :  { %v3521_v31 = vmax.f32 %v3518_v2, %v804_v59 }
 0x20b   :  { %4798 = vst [vmem:[#allocation38_spill] sm:$0xff] %v3521_v31  ;;  %1080 = vperm.xlu2 %2757, %v3521_v31  }
 0x20c   :  { %1922 = vst.msk [vmem:[#allocation2 + $0xd0] sm:$0xff] %vm22_vm1, %v3521_v31  ;;  %v3548_v31 = vld [vmem:[#allocation2 + $0xe0] sm:$0xff] }
 0x20d   :  { %4803 = vst [vmem:[#allocation43_spill] sm:$0xff] %v3548_v31 }
 0x210   :  { %v807_v59 = vpop.xlane.xlu2 %806 }
 0x211   :  { %v3539_v63 = vmax.f32 %v3528_v16, %v807_v59  ;;  %v3572_v59 = vmul.f32 %v3150_v40, %v3244_v21 }
 0x213   :  { %4802 = vst [vmem:[#allocation42_spill] sm:$0xff] %v3539_v63  ;;  %1085 = vperm.xlu2 %2757, %v3539_v63  }
 0x214   :  { %1923 = vst.msk [vmem:[#allocation2 + $0xd8] sm:$0xff] %vm22_vm1, %v3539_v63 }
 0x215   :  { %743 = vmax.xlane.f32.xlu0 %v742_v11 }
 0x218   :  { %v810_v12 = vpop.xlane.xlu2 %809 }
 0x219   :  { %v3551_v2 = vmax.f32 %v3548_v31, %v810_v12  ;;  %v3566_v12 = vld [vmem:[#allocation2 + $0xf0] sm:$0xff]  ;;  %v3576_v31 = vmul.f32 %v3150_v40, %v3246_v22 }
 0x21a   :  { %4807 = vst [vmem:[#allocation47_spill] sm:$0xff] %v3566_v12 }
 0x21b   :  { %4804 = vst [vmem:[#allocation44_spill] sm:$0xff] %v3551_v2  ;;  %v754_v22 = vmax.f32 %v3572_v59, %v3576_v31 }
 0x21c   :  { %1924 = vst.msk [vmem:[#allocation2 + $0xe0] sm:$0xff] %vm22_vm1, %v3551_v2 }
 0x220   :  { %v813_v16 = vpop.xlane.xlu2 %812 }
 0x221   :  { %v3560_v63 = vmax.f32 %v3557_v17, %v813_v16  ;;  %v2702_v17 = vld [vmem:[%s4709_s3 + $0x38] sm:$0xff] }
 0x222   :  { %2729 = vmatpush.bf16.msra.mxu3 %v2702_v17  ;;  %1652 = vmatpush.bf16.msrb.mxu0 %v2702_v17 }
 0x223   :  { %4806 = vst [vmem:[#allocation46_spill] sm:$0xff] %v3560_v63  ;;  %2727 = vmatpush.bf16.msrb.mxu1 %v2702_v17  ;;  %2728 = vmatpush.bf16.msra.mxu2 %v2702_v17 }
 0x224   :  { %1925 = vst.msk [vmem:[#allocation2 + $0xe8] sm:$0xff] %vm22_vm1, %v3560_v63 }
 0x228   :  { %v816_v16 = vpop.xlane.xlu1 %815  ;;  %v747_v7 = vpop.xlane.xlu2 %746 }
 0x229   :  { %v3579_v14 = vmax.f32 %v3566_v12, %v816_v16  ;;  %v3582_v11 = vmax.f32 %v3568_v13, %v747_v7  ;;  %950 = vperm.xlu0 %2755, %v3315_v38   ;;  %v3595_v7 = vld [vmem:[#allocation2 + $0x40] sm:$0xff]  ;;  %v3597_v16 = vld [vmem:[#allocation2 + $0xf8] sm:$0xff] }
 0x22a   :  { %4811 = vst [vmem:[#allocation51_spill] sm:$0xff] %v3595_v7 }
 0x22b   :  { %4809 = vst [vmem:[#allocation49_spill] sm:$0xff] %v3579_v14 }
 0x22c   :  { %4810 = vst [vmem:[#allocation50_spill] sm:$0xff] %v3582_v11 }
 0x22d   :  { %1926 = vst.msk [vmem:[#allocation2 + $0xf0] sm:$0xff] %vm22_vm1, %v3579_v14  ;;  %755 = vmax.xlane.f32.xlu1 %v754_v22  ;;  %v3663_v22 = vmul.f32 %v3150_v40, %v3301_v32 }
 0x22e   :  { %1903 = vst.msk [vmem:[#allocation2 + $0x38] sm:$0xff] %vm22_vm1, %v3582_v11 }
 0x22f   :  { %4812 = vst [vmem:[#allocation52_spill] sm:$0xff] %v3597_v16 }
 0x230   :  { %v750_v12 = vpop.xlane.xlu1 %749  ;;  %v819_v38 = vpop.xlane.xlu0 %818 }
 0x231   :  { %v3603_v21 = vmax.f32 %v3595_v7, %v750_v12  ;;  %1090 = vperm.xlu0 %2755, %v3551_v2   ;;  %v3607_v13 = vmax.f32 %v3597_v16, %v819_v38  ;;  %v3617_v12 = vmul.f32 %v3150_v40, %v3237_v18  ;;  %v3621_v2 = vmul.f32 %v3150_v40, %v3239_v19  ;;  %v2701_v38 = vld [vmem:[%s4709_s3 + $0x30] sm:$0xff]  ;;  %v2700_v18 = vld [vmem:[%s4709_s3 + $0x28] sm:$0xff]  ;;  %v2699_v19 = vld [vmem:[%s4709_s3 + $0x20] sm:$0xff] }
 0x232   :  { %2732 = vmatpush.bf16.msra.mxu3 %v2701_v38  ;;  %1653 = vmatpush.bf16.msrb.mxu0 %v2701_v38 }
 0x233   :  { %4813 = vst [vmem:[#allocation53_spill] sm:$0xff] %v3607_v13  ;;  %v751_v17 = vmax.f32 %v3617_v12, %v3621_v2  ;;  %2730 = vmatpush.bf16.msrb.mxu1 %v2701_v38  ;;  %2731 = vmatpush.bf16.msra.mxu2 %v2701_v38  ;;  %v2698_v38 = vld [vmem:[%s4709_s3 + $0x18] sm:$0xff] }
 0x234   :  { %1904 = vst.msk [vmem:[#allocation2 + $0x40] sm:$0xff] %vm22_vm1, %v3603_v21 }
 0x235   :  { %1927 = vst.msk [vmem:[#allocation2 + $0xf8] sm:$0xff] %vm22_vm1, %v3607_v13 }
 0x236   :  { %2735 = vmatpush.bf16.msra.mxu3 %v2700_v18  ;;  %1654 = vmatpush.bf16.msrb.mxu0 %v2700_v18 }
 0x237   :  { %2733 = vmatpush.bf16.msrb.mxu1 %v2700_v18  ;;  %2734 = vmatpush.bf16.msra.mxu2 %v2700_v18  ;;  %v2696_v18 = vld [vmem:[%s4709_s3 + $0x8] sm:$0xff] }
 0x23a   :  { %2738 = vmatpush.bf16.msra.mxu3 %v2699_v19  ;;  %1655 = vmatpush.bf16.msrb.mxu0 %v2699_v19 }
 0x23b   :  { %2736 = vmatpush.bf16.msrb.mxu1 %v2699_v19  ;;  %2737 = vmatpush.bf16.msra.mxu2 %v2699_v19  ;;  %v2695_v19 = vld [vmem:[%s4709_s3] sm:$0xff] }
 0x23c   :  { %752 = vmax.xlane.f32.xlu2 %v751_v17  ;;  %v2697_v17 = vld [vmem:[%s4709_s3 + $0x10] sm:$0xff] }
 0x23e   :  { %2741 = vmatpush.bf16.msra.mxu3 %v2698_v38  ;;  %1656 = vmatpush.bf16.msrb.mxu0 %v2698_v38 }
 0x23f   :  { %2739 = vmatpush.bf16.msrb.mxu1 %v2698_v38  ;;  %2740 = vmatpush.bf16.msra.mxu2 %v2698_v38  ;;  %v3651_v38 = vmul.f32 %v3150_v40, %v3257_v24  ;;  %v3667_v24 = vmul.f32 %v3150_v40, %v3303_v33 }
 0x242   :  { %2744 = vmatpush.bf16.msra.mxu3 %v2697_v17  ;;  %1657 = vmatpush.bf16.msrb.mxu0 %v2697_v17 }
 0x243   :  { %2742 = vmatpush.bf16.msrb.mxu1 %v2697_v17  ;;  %2743 = vmatpush.bf16.msra.mxu2 %v2697_v17  ;;  %v3655_v17 = vmul.f32 %v3150_v40, %v3259_v25 }
 0x246   :  { %955 = vperm.xlu1 %2756, %v3326_v46   ;;  %2747 = vmatpush.bf16.msra.mxu3 %v2696_v18 }
 0x247   :  { %1658 = vmatpush.bf16.msrb.mxu0 %v2696_v18  ;;  %2745 = vmatpush.bf16.msrb.mxu1 %v2696_v18 }
 0x248   :  { %2746 = vmatpush.bf16.msra.mxu2 %v2696_v18  ;;  %v757_v18 = vmax.f32 %v3651_v38, %v3655_v17 }
 0x24a   :  { %2750 = vmatpush.bf16.msra.mxu3 %v2695_v19 }
 0x24b   :  { %1659 = vmatpush.bf16.msrb.mxu0 %v2695_v19  ;;  %2748 = vmatpush.bf16.msrb.mxu1 %v2695_v19 }
 0x24c   :  { %2749 = vmatpush.bf16.msra.mxu2 %v2695_v19 }
 0x24e   :  { %1095 = vperm.xlu1 %2756, %v3560_v63  }
 0x254   :  { %960 = vperm.xlu2 %2757, %v3337_v53  }
 0x256   :  { %965 = vperm.xlu1 %2756, %v3348_v62  }
 0x25b   :  { %758 = vmax.xlane.f32.xlu0 %v757_v18  ;;  %v766_v18 = vmax.f32 %v3663_v22, %v3667_v24 }
 0x25c   :  { %1100 = vperm.xlu2 %2757, %v3579_v14  }
 0x25d   :  { %v1061_v16 = vpop.permute.xlu0 %1060 }
 0x25e   :  { %1105 = vperm.xlu1 %2756, %v3607_v13   ;;  %v1152_v25 = vsub.f32 %v3379_v43, %v1061_v16  ;;  %v1153_v19 = vsub.f32 %v3382_v52, %v1061_v16  ;;  %v1071_v43 = vpop.permute.xlu2 %1070 }
 0x260   :  { %v1260_v63 = vmul.f32 1.442695, %v1152_v25  ;;  %v1262_v32 = vmul.f32 1.442695, %v1153_v19  ;;  %v1156_v25 = vsub.f32 %v3395_v37, %v1071_v43  ;;  %v1157_v19 = vsub.f32 %v3398_v54, %v1071_v43 }
 0x262   :  { %2758 = vpow2.f32 %v1260_v63  ;;  %v1270_v63 = vmul.f32 1.442695, %v1157_v19 }
 0x263   :  { %767 = vmax.xlane.f32.xlu0 %v766_v18  ;;  %2760 = vpow2.f32 %v1262_v32 }
 0x264   :  { %985 = vperm.xlu2 %2757, %v3582_v11  }
 0x265   :  { %v1066_v14 = vpop.permute.xlu1 %1065 }
 0x266   :  { %v1154_v53 = vsub.f32 %v3387_v6, %v1066_v14  ;;  %v1155_v33 = vsub.f32 %v3390_v47, %v1066_v14  ;;  %v1268_v14 = vmul.f32 1.442695, %v1156_v25 }
 0x268   :  { %v1264_v7 = vmul.f32 1.442695, %v1154_v53  ;;  %v1266_v13 = vmul.f32 1.442695, %v1155_v33  ;;  %v2759_v52 = vpop.eup %2758  ;;  %v3685_v53 = vpop.permute.xlu2 %1080 }
 0x269   :  { %v3677_v16 = vpop.eup %2760  ;;  %4814 = vst [vmem:[#allocation54_spill] sm:$0xff] %v3685_v53  ;;  %v1160_v19 = vsub.f32 %v3411_v39, %v3685_v53 }
 0x26a   :  { %2762 = vpow2.f32 %v1264_v7 }
 0x26b   :  { %2764 = vpow2.f32 %v1266_v13 }
 0x26c   :  { %2766 = vpow2.f32 %v1268_v14 }
 0x26d   :  { %2768 = vpow2.f32 %v1270_v63  ;;  %v1276_v63 = vmul.f32 1.442695, %v1160_v19  ;;  %v3736_v19 = vmul.f32 %v3150_v40, %v3343_v57  ;;  %v3753_v57 = vld [vmem:[#allocation2 + $0x48] sm:$0xff] }
 0x270   :  { %v2763_v18 = vpop.eup %2762  ;;  %v3690_v54 = vpop.permute.xlu2 %1085 }
 0x271   :  { %v3680_v11 = vpop.eup %2764  ;;  %v1546_v6 = vpack.c.bf16 %v2763_v18, %v2759_v52  ;;  %4815 = vst [vmem:[#allocation55_spill] sm:$0xff] %v3690_v54 }
 0x272   :  { %v2767_v43 = vpop.eup %2766 }
 0x273   :  { %1715 = vmatmul.bf16.vlgmr.msra.gmra.mxu3 %v1546_v6  ;;  %v3692_v52 = vpop.eup %2768  ;;  %v3786_v6 = vmul.f32 %v3150_v40, %v3310_v35 }
 0x274   :  { %4816 = vst [vmem:[#allocation56_spill] sm:$0xff] %v3692_v52 }
 0x275   :  { %v1076_v13 = vpop.permute.xlu1 %1075 }
 0x276   :  { %v1158_v7 = vsub.f32 %v3403_v15, %v1076_v13  ;;  %v1159_v32 = vsub.f32 %v3406_v1, %v1076_v13  ;;  %v1162_v15 = vsub.f32 %v3419_v34, %v3690_v54  ;;  %v3703_v13 = vld [vmem:[#allocation2 + $0x30] sm:$0xff]  ;;  %v3711_v34 = vmul.f32 %v3150_v40, %v3288_v30 }
 0x277   :  { %970 = vperm.xlu0 %2755, %v3359_v5  }
 0x278   :  { %v1272_v37 = vmul.f32 1.442695, %v1158_v7  ;;  %v1274_v33 = vmul.f32 1.442695, %v1159_v32  ;;  %v1280_v14 = vmul.f32 1.442695, %v1162_v15  ;;  %v3707_v7 = vmul.f32 %v3150_v40, %v3286_v29 }
 0x27a   :  { %2770 = vpow2.f32 %v1272_v37  ;;  %v763_v29 = vmax.f32 %v3707_v7, %v3711_v34 }
 0x27b   :  { %2772 = vpow2.f32 %v1274_v33  ;;  %v3726_v33 = vmul.f32 %v3150_v40, %v3321_v41 }
 0x27c   :  { %2774 = vpow2.f32 %v1280_v14  ;;  %v3740_v14 = vmul.f32 %v3150_v40, %v3345_v58  ;;  %v3757_v58 = vmul.f32 %v3150_v40, %v3272_v27 }
 0x27d   :  { %2776 = vpow2.f32 %v1276_v63 }
 0x27e   :  { %v778_v41 = vmax.f32 %v3736_v19, %v3740_v14 }
 0x27f   :  { %975 = vperm.xlu0 %2755, %v3370_v20  }
 0x280   :  { %v2771_v18 = vpop.eup %2770 }
 0x281   :  { %v3697_v1 = vpop.eup %2772  ;;  %v1548_v25 = vpack.c.bf16 %v2771_v18, %v2767_v43  ;;  %v3730_v43 = vmul.f32 %v3150_v40, %v3323_v42  ;;  %v3744_v42 = vld [vmem:[#allocation2 + $0x50] sm:$0xff] }
 0x282   :  { %4817 = vst [vmem:[#allocation57_spill] sm:$0xff] %v3697_v1  ;;  %v2775_v30 = vpop.eup %2774 }
 0x283   :  { %1720 = vmatmul.bf16.gmra.mxu3 %v1548_v25  ;;  %v2777_v18 = vpop.eup %2776  ;;  %v772_v25 = vmax.f32 %v3726_v33, %v3730_v43 }
 0x284   :  { %v1550_v15 = vpack.c.bf16 %v2775_v30, %v2777_v18  ;;  %v3761_v30 = vmul.f32 %v3150_v40, %v3274_v28  ;;  %v2709_v28 = vld [vmem:[%s4709_s3 + $0x70] sm:$0xff] }
 0x286   :  { %v760_v27 = vmax.f32 %v3757_v58, %v3761_v30 }
 0x287   :  { %990 = vperm.xlu0 %2755, %v3603_v21  }
 0x288   :  { %v744_v39 = vpop.xlane.xlu0 %743 }
 0x289   :  { %v3715_v32 = vmax.f32 %v3703_v13, %v744_v39 }
 0x28b   :  { %1902 = vst.msk [vmem:[#allocation2 + $0x30] sm:$0xff] %vm22_vm1, %v3715_v32  ;;  %980 = vperm.xlu1 %2756, %v3715_v32  }
 0x28d   :  { %764 = vmax.xlane.f32.xlu2 %v763_v29  ;;  %v2708_v29 = vld [vmem:[%s4709_s3 + $0x68] sm:$0xff] }
 0x293   :  { %1725 = vmatmul.bf16.gmra.mxu3 %v1550_v15 }
 0x295   :  { %773 = vmax.xlane.f32.xlu2 %v772_v25 }
 0x29b   :  { %v3763_v18 = vpop.permute.xlu0 %950 }
 0x29d   :  { %779 = vmax.xlane.f32.xlu2 %v778_v41  ;;  %v2710_v41 = vld [vmem:[%s4709_s3 + $0x78] sm:$0xff] }
 0x29e   :  { %1741 = vmatpush.bf16.msrb.mxu3 %v2710_v41  ;;  %v3790_v41 = vmul.f32 %v3150_v40, %v3312_v36  ;;  %v2707_v36 = vld [vmem:[%s4709_s3 + $0x60] sm:$0xff] }
 0x2a0   :  { %v756_v63 = vpop.xlane.xlu1 %755  ;;  %v769_v35 = vmax.f32 %v3786_v6, %v3790_v41 }
 0x2a1   :  { %v3747_v39 = vmax.f32 %v3744_v42, %v756_v63 }
 0x2a2   :  { %1742 = vmatpush.bf16.msrb.mxu3 %v2709_v28 }
 0x2a3   :  { %1906 = vst.msk [vmem:[#allocation2 + $0x50] sm:$0xff] %vm22_vm1, %v3747_v39 }
 0x2a6   :  { %1743 = vmatpush.bf16.msrb.mxu3 %v2708_v29  ;;  %v3812_v29 = vmul.f32 %v3150_v40, %v3334_v51 }
 0x2aa   :  { %1744 = vmatpush.bf16.msrb.mxu3 %v2707_v36 }
 0x2af   :  { %v753_v15 = vpop.xlane.xlu2 %752 }
 0x2b0   :  { %v3766_v25 = vmax.f32 %v3753_v57, %v753_v15  ;;  %v1108_v15 = vsub.f32 %v3156_v44, %v3763_v18  ;;  %v1091_v44 = vpop.permute.xlu0 %1090 }
 0x2b1   :  { %v1164_v37 = vsub.f32 %v3427_v0, %v1091_v44  ;;  %v1165_v52 = vsub.f32 %v3430_v26, %v1091_v44  ;;  %v2706_v0 = vld [vmem:[%s4709_s3 + $0x58] sm:$0xff] }
 0x2b2   :  { %1905 = vst.msk [vmem:[#allocation2 + $0x48] sm:$0xff] %vm22_vm1, %v3766_v25  ;;  %995 = vperm.xlu0 %2755, %v3766_v25   ;;  %v1172_v63 = vmul.f32 1.442695, %v1108_v15  ;;  %1745 = vmatpush.bf16.msrb.mxu3 %v2706_v0 }
 0x2b3   :  { %v1286_v26 = vmul.f32 1.442695, %v1165_v52 }
 0x2b4   :  { %2778 = vpow2.f32 %v1172_v63  ;;  %v1284_v63 = vmul.f32 1.442695, %v1164_v37 }
 0x2b5   :  { %761 = vmax.xlane.f32.xlu1 %v760_v27  ;;  %1000 = vperm.xlu2 %2757, %v3747_v39  }
 0x2b7   :  { %v3814_v15 = vpop.permute.xlu2 %960 }
 0x2b8   :  { %v3792_v47 = vpop.permute.xlu1 %955  ;;  %v1112_v52 = vsub.f32 %v3177_v55, %v3814_v15 }
 0x2b9   :  { %v1110_v27 = vsub.f32 %v3166_v49, %v3792_v47  ;;  %v3808_v49 = vmul.f32 %v3150_v40, %v3332_v48  ;;  %v2705_v48 = vld [vmem:[%s4709_s3 + $0x50] sm:$0xff] }
 0x2ba   :  { %v2779_v51 = vpop.eup %2778  ;;  %1746 = vmatpush.bf16.msrb.mxu3 %v2705_v48  ;;  %v1180_v0 = vmul.f32 1.442695, %v1112_v52  ;;  %v2703_v48 = vld [vmem:[%s4709_s3 + $0x40] sm:$0xff] }
 0x2bb   :  { %v1176_v28 = vmul.f32 1.442695, %v1110_v27  ;;  %v775_v1 = vmax.f32 %v3808_v49, %v3812_v29 }
 0x2bd   :  { %770 = vmax.xlane.f32.xlu1 %v769_v35  ;;  %2780 = vpow2.f32 %v1176_v28 }
 0x2be   :  { %2782 = vpow2.f32 %v1284_v63 }
 0x2bf   :  { %2784 = vpow2.f32 %v1286_v26 }
 0x2c0   :  { %v1096_v27 = vpop.permute.xlu1 %1095 }
 0x2c1   :  { %v1166_v44 = vsub.f32 %v3435_v23, %v1096_v27  ;;  %v1167_v28 = vsub.f32 %v3438_v3, %v1096_v27  ;;  %v2704_v3 = vld [vmem:[%s4709_s3 + $0x48] sm:$0xff]  ;;  %v1101_v27 = vpop.permute.xlu2 %1100  ;;  %s3017_s3 = smov 119  }
 0x2c2   :  { %1747 = vmatpush.bf16.msrb.mxu3 %v2704_v3 }
 0x2c3   :  { %v1288_v35 = vmul.f32 1.442695, %v1166_v44  ;;  %v1290_v36 = vmul.f32 1.442695, %v1167_v28  ;;  %v2781_v53 = vpop.eup %2780  ;;  %v1168_v44 = vsub.f32 %v3451_v4, %v1101_v27  ;;  %v3838_v28 = vld [vmem:[#allocation2 + $0x58] sm:$0xff] }
 0x2c4   :  { %v1524_v23 = vpack.c.bf16 %v2781_v53, %v2779_v51  ;;  %v2783_v26 = vpop.eup %2782 }
 0x2c5   :  { %776 = vmax.xlane.f32.xlu1 %v775_v1  ;;  %2786 = vpow2.f32 %v1288_v35  ;;  %v3835_v55 = vpop.eup %2784  ;;  %v1169_v35 = vsub.f32 %v3454_v10, %v1101_v27 }
 0x2c6   :  { %2788 = vpow2.f32 %v1290_v36  ;;  %1660 = vmatmul.bf16.vlgmr.msrb.gmra.mxu0 %v1524_v23  ;;  %4818 = vst [vmem:[#allocation58_spill] sm:$0xff] %v3835_v55  ;;  %1748 = vmatpush.bf16.msrb.mxu3 %v2703_v48  ;;  %v1292_v23 = vmul.f32 1.442695, %v1168_v44  ;;  %v3857_v48 = vld [vmem:[#allocation2 + $0x70] sm:$0xff] }
 0x2c7   :  { %2790 = vpow2.f32 %v1180_v0 }
 0x2c8   :  { %v3831_v37 = vpop.permute.xlu1 %965 }
 0x2c9   :  { %v1114_v63 = vsub.f32 %v3187_v60, %v3831_v37 }
 0x2cb   :  { %v1184_v53 = vmul.f32 1.442695, %v1114_v63  ;;  %v2787_v1 = vpop.eup %2786  ;;  %v1294_v63 = vmul.f32 1.442695, %v1169_v35 }
 0x2cc   :  { %v3843_v51 = vpop.eup %2788  ;;  %v1552_v60 = vpack.c.bf16 %v2787_v1, %v2783_v26 }
 0x2cd   :  { %4819 = vst [vmem:[#allocation59_spill] sm:$0xff] %v3843_v51  ;;  %2792 = vpow2.f32 %v1184_v53  ;;  %v2791_v27 = vpop.eup %2790 }
 0x2ce   :  { %v759_v36 = vpop.xlane.xlu0 %758  ;;  %1730 = vmatmul.bf16.gmra.mxu3 %v1552_v60  ;;  %2794 = vpow2.f32 %v1292_v23 }
 0x2cf   :  { %v3849_v4 = vmax.f32 %v3838_v28, %v759_v36  ;;  %2796 = vpow2.f32 %v1294_v63 }
 0x2d0   :  { %v1106_v3 = vpop.permute.xlu1 %1105 }
 0x2d1   :  { %1907 = vst.msk [vmem:[#allocation2 + $0x58] sm:$0xff] %vm22_vm1, %v3849_v4  ;;  %v1170_v10 = vsub.f32 %v3469_v9, %v1106_v3  ;;  %v1171_v0 = vsub.f32 %v3472_v61, %v1106_v3  ;;  %v1111_v3 = vsub.f32 %v3169_v50, %v3792_v47  ;;  %v1113_v50 = vsub.f32 %v3180_v56, %v3814_v15  ;;  %v986_v9 = vpop.permute.xlu2 %985 }
 0x2d2   :  { %v1122_v15 = vsub.f32 %v3444_v8, %v986_v9  ;;  %v4829_v8 = vld [vmem:[#allocation40_spill] sm:$0xff] }
 0x2d3   :  { %v1296_v26 = vmul.f32 1.442695, %v1170_v10  ;;  %v1298_v53 = vmul.f32 1.442695, %v1171_v0  ;;  %v2793_v1 = vpop.eup %2792  ;;  %v1109_v0 = vsub.f32 %v3159_v45, %v3763_v18  ;;  %v4823_v45 = vld [vmem:[#allocation6_spill] sm:$0xff] }
 0x2d4   :  { %v1526_v44 = vpack.c.bf16 %v2793_v1, %v2791_v27  ;;  %v2795_v61 = vpop.eup %2794  ;;  %v1182_v52 = vmul.f32 1.442695, %v1113_v50 }
 0x2d5   :  { %2798 = vpow2.f32 %v1296_v26  ;;  %v3867_v36 = vpop.eup %2796  ;;  %v1178_v26 = vmul.f32 1.442695, %v1111_v3 }
 0x2d6   :  { %v768_v35 = vpop.xlane.xlu0 %767  ;;  %2800 = vpow2.f32 %v1298_v53  ;;  %1665 = vmatmul.bf16.gmra.mxu0 %v1526_v44  ;;  %4820 = vst [vmem:[#allocation60_spill] sm:$0xff] %v3867_v36  ;;  %v1174_v53 = vmul.f32 1.442695, %v1109_v0  ;;  %v4824_v0 = vld [vmem:[#allocation8_spill] sm:$0xff]  ;;  %v3896_v36 = vld [vmem:[#allocation2 + $0x68] sm:$0xff] }
 0x2d7   :  { %v3860_v60 = vmax.f32 %v3857_v48, %v768_v35  ;;  %2802 = vpow2.f32 %v1178_v26  ;;  %v4822_v35 = vld [vmem:[#allocation5_spill] sm:$0xff] }
 0x2d8   :  { %2804 = vpow2.f32 %v1174_v53 }
 0x2d9   :  { %1910 = vst.msk [vmem:[#allocation2 + $0x70] sm:$0xff] %vm22_vm1, %v3860_v60  ;;  %1020 = vperm.xlu2 %2757, %v3860_v60   ;;  %2806 = vpow2.f32 %v1182_v52  ;;  %v4827_v52 = vld [vmem:[#allocation9_spill] sm:$0xff] }
 0x2db   :  { %v2799_v23 = vpop.eup %2798 }
 0x2dc   :  { %v3871_v63 = vpop.eup %2800  ;;  %v1554_v10 = vpack.c.bf16 %v2799_v23, %v2795_v61  ;;  %v1115_v61 = vsub.f32 %v4822_v35, %v3831_v37 }
 0x2dd   :  { %4821 = vst [vmem:[#allocation61_spill] sm:$0xff] %v3871_v63  ;;  %v2803_v44 = vpop.eup %2802 }
 0x2de   :  { %1005 = vperm.xlu1 %2756, %v3849_v4   ;;  %1735 = vmatmul.bf16.gmra.mxu3 %v1554_v10  ;;  %v2805_v47 = vpop.eup %2804  ;;  %v1186_v27 = vmul.f32 1.442695, %v1115_v61 }
 0x2df   :  { %v1525_v23 = vpack.c.bf16 %v2803_v44, %v2805_v47  ;;  %v2807_v56 = vpop.eup %2806  ;;  %v4825_v44 = vld [vmem:[#allocation20_spill] sm:$0xff]  ;;  %v4826_v47 = vld [vmem:[#allocation21_spill] sm:$0xff] }
 0x2e0   :  { %2808 = vpow2.f32 %v1186_v27  ;;  %v3887_v50 = vmul.f32 %v3150_v40, %v4825_v44  ;;  %v3891_v61 = vmul.f32 %v3150_v40, %v4826_v47 }
 0x2e2   :  { %v784_v47 = vmax.f32 %v3887_v50, %v3891_v61 }
 0x2e6   :  { %v2809_v37 = vpop.eup %2808 }
 0x2e9   :  { %v971_v1 = vpop.permute.xlu0 %970 }
 0x2ea   :  { %v1116_v18 = vsub.f32 %v4823_v45, %v971_v1 }
 0x2ec   :  { %v1188_v10 = vmul.f32 1.442695, %v1116_v18  ;;  %v1200_v18 = vmul.f32 1.442695, %v1122_v15 }
 0x2ee   :  { %1749 = vmatmul.bf16.vlgmr.msrb.gmra.mxu3 %v1525_v23  ;;  %2810 = vpow2.f32 %v1188_v10  ;;  %v1527_v10 = vpack.c.bf16 %v2809_v37, %v2807_v56 }
 0x2f1   :  { %v976_v3 = vpop.permute.xlu0 %975 }
 0x2f2   :  { %v1118_v26 = vsub.f32 %v4824_v0, %v976_v3  ;;  %v1119_v27 = vsub.f32 %v4827_v52, %v976_v3 }
 0x2f4   :  { %v1192_v53 = vmul.f32 1.442695, %v1118_v26  ;;  %v2811_v35 = vpop.eup %2810  ;;  %v4828_v26 = vld [vmem:[#allocation7_spill] sm:$0xff]  ;;  %v1194_v44 = vmul.f32 1.442695, %v1119_v27  ;;  %v4831_v27 = vld [vmem:[#allocation41_spill] sm:$0xff] }
 0x2f6   :  { %2812 = vpow2.f32 %v1192_v53  ;;  %v1117_v53 = vsub.f32 %v4828_v26, %v971_v1 }
 0x2f7   :  { %2814 = vpow2.f32 %v1200_v18 }
 0x2f8   :  { %v1190_v56 = vmul.f32 1.442695, %v1117_v53  ;;  %v3916_v53 = vld [vmem:[#allocation2 + $0x90] sm:$0xff] }
 0x2f9   :  { %4833 = vst [vmem:[#allocation6_spill] sm:$0xff] %v3916_v53 }
 0x2fc   :  { %v2813_v45 = vpop.eup %2812 }
 0x2fd   :  { %v981_v23 = vpop.permute.xlu1 %980  ;;  %v1528_v0 = vpack.c.bf16 %v2813_v45, %v2811_v35  ;;  %v2815_v15 = vpop.eup %2814 }
 0x2fe   :  { %v1120_v54 = vsub.f32 %v4829_v8, %v981_v23  ;;  %1754 = vmatmul.bf16.gmra.mxu3 %v1527_v10  ;;  %v1121_v18 = vsub.f32 %v4831_v27, %v981_v23 }
 0x2ff   :  { %1670 = vmatmul.bf16.gmra.mxu0 %v1528_v0  ;;  %v4832_v0 = vld [vmem:[#allocation26_spill] sm:$0xff] }
 0x300   :  { %v1196_v63 = vmul.f32 1.442695, %v1120_v54  ;;  %v765_v55 = vpop.xlane.xlu2 %764  ;;  %v3907_v54 = vld [vmem:[#allocation2 + $0x80] sm:$0xff]  ;;  %v1123_v26 = vsub.f32 %v4832_v0, %v986_v9  ;;  %v1198_v8 = vmul.f32 1.442695, %v1121_v18 }
 0x301   :  { %v3901_v3 = vmax.f32 %v3896_v36, %v765_v55  ;;  %4830 = vst [vmem:[#allocation5_spill] sm:$0xff] %v3907_v54 }
 0x302   :  { %2816 = vpow2.f32 %v1196_v63  ;;  %785 = vmax.xlane.f32.xlu2 %v784_v47 }
 0x303   :  { %1909 = vst.msk [vmem:[#allocation2 + $0x68] sm:$0xff] %vm22_vm1, %v3901_v3  ;;  %2818 = vpow2.f32 %v1194_v44 }
 0x304   :  { %2820 = vpow2.f32 %v1190_v56  ;;  %v1202_v56 = vmul.f32 1.442695, %v1123_v26 }
 0x305   :  { %2822 = vpow2.f32 %v1198_v8 }
 0x306   :  { %2824 = vpow2.f32 %v1202_v56  ;;  %v3931_v56 = vld [vmem:[#allocation2 + $0x60] sm:$0xff] }
 0x308   :  { %v2817_v37 = vpop.eup %2816  ;;  %v774_v35 = vpop.xlane.xlu2 %773 }
 0x309   :  { %v3910_v45 = vmax.f32 %v3907_v54, %v774_v35  ;;  %v1530_v55 = vpack.c.bf16 %v2815_v15, %v2817_v37  ;;  %v2819_v52 = vpop.eup %2818  ;;  %v3923_v15 = vpop.f32.mrf.mxu3 }
 0x30a   :  { %v2821_v63 = vpop.eup %2820  ;;  %4834 = vst [vmem:[#allocation8_spill] sm:$0xff] %v3923_v15  ;;  %v991_v35 = vpop.permute.xlu0 %990 }
 0x30b   :  { %1912 = vst.msk [vmem:[#allocation2 + $0x80] sm:$0xff] %vm22_vm1, %v3910_v45  ;;  %1675 = vmatmul.bf16.vlgmr.msrb.gmra.mxu1 %v1530_v55  ;;  %v1529_v10 = vpack.c.bf16 %v2819_v52, %v2821_v63  ;;  %v2823_v23 = vpop.eup %2822  ;;  %v4835_v55 = vld [vmem:[#allocation27_spill] sm:$0xff]  ;;  %v4836_v63 = vld [vmem:[#allocation28_spill] sm:$0xff] }
 0x30c   :  { %v2825_v37 = vpop.eup %2824  ;;  %v1124_v52 = vsub.f32 %v4835_v55, %v991_v35  ;;  %v1125_v27 = vsub.f32 %v4836_v63, %v991_v35  ;;  %v3943_v55 = vld [vmem:[#allocation2 + $0x78] sm:$0xff] }
 0x30d   :  { %v1531_v9 = vpack.c.bf16 %v2825_v37, %v2823_v23 }
 0x30e   :  { %1759 = vmatmul.bf16.gmra.mxu3 %v1529_v10  ;;  %v1204_v10 = vmul.f32 1.442695, %v1124_v52  ;;  %v1206_v0 = vmul.f32 1.442695, %v1125_v27 }
 0x310   :  { %v780_v44 = vpop.xlane.xlu2 %779  ;;  %2826 = vpow2.f32 %v1204_v10 }
 0x311   :  { %v3919_v47 = vmax.f32 %v3916_v53, %v780_v44  ;;  %v3927_v18 = vpop.f32.mrf.mxu3  ;;  %2828 = vpow2.f32 %v1206_v0 }
 0x312   :  { %4837 = vst [vmem:[#allocation20_spill] sm:$0xff] %v3927_v18 }
 0x313   :  { %1914 = vst.msk [vmem:[#allocation2 + $0x90] sm:$0xff] %vm22_vm1, %v3919_v47 }
 0x31e   :  { %1764 = vmatmul.bf16.gmra.mxu3 %v1531_v9 }
 0x324   :  { %v996_v26 = vpop.permute.xlu0 %995 }
 0x325   :  { %v1126_v44 = vsub.f32 %v3617_v12, %v996_v26  ;;  %v1127_v8 = vsub.f32 %v3621_v2, %v996_v26  ;;  %v3941_v2 = vpop.f32.mrf.mxu3  ;;  %v2827_v12 = vpop.eup %2826 }
 0x326   :  { %4838 = vst [vmem:[#allocation21_spill] sm:$0xff] %v3941_v2  ;;  %v2829_v9 = vpop.eup %2828 }
 0x327   :  { %v1208_v1 = vmul.f32 1.442695, %v1126_v44  ;;  %v1210_v15 = vmul.f32 1.442695, %v1127_v8  ;;  %v3956_v44 = vld [vmem:[#allocation2 + $0x88] sm:$0xff] }
 0x328   :  { %v762_v23 = vpop.xlane.xlu1 %761 }
 0x329   :  { %2830 = vpow2.f32 %v1208_v1  ;;  %v3934_v37 = vmax.f32 %v3931_v56, %v762_v23 }
 0x32a   :  { %2832 = vpow2.f32 %v1210_v15 }
 0x32b   :  { %1908 = vst.msk [vmem:[#allocation2 + $0x60] sm:$0xff] %vm22_vm1, %v3934_v37  ;;  %1010 = vperm.xlu0 %2755, %v3934_v37  }
 0x32d   :  { %v3954_v26 = vpop.f32.mrf.mxu3 }
 0x32e   :  { %4839 = vst [vmem:[#allocation9_spill] sm:$0xff] %v3954_v26 }
 0x32f   :  { %v2831_v52 = vpop.eup %2830 }
 0x330   :  { %v2833_v1 = vpop.eup %2832  ;;  %v771_v63 = vpop.xlane.xlu1 %770  ;;  %v1532_v27 = vpack.c.bf16 %v2831_v52, %v2827_v12 }
 0x331   :  { %v3946_v15 = vmax.f32 %v3943_v55, %v771_v63  ;;  %v1533_v10 = vpack.c.bf16 %v2833_v1, %v2829_v9  ;;  %v1001_v52 = vpop.permute.xlu2 %1000 }
 0x332   :  { %1680 = vmatmul.bf16.gmra.mxu1 %v1532_v27  ;;  %v1128_v63 = vsub.f32 %v3572_v59, %v1001_v52  ;;  %v1129_v27 = vsub.f32 %v3576_v31, %v1001_v52  ;;  %v4844_v31 = vld [vmem:[#allocation23_spill] sm:$0xff] }
 0x333   :  { %1911 = vst.msk [vmem:[#allocation2 + $0x78] sm:$0xff] %vm22_vm1, %v3946_v15  ;;  %1769 = vmatmul.bf16.gmra.mxu3 %v1533_v10  ;;  %1025 = vperm.xlu1 %2756, %v3946_v15   ;;  %v3981_v52 = vmul.f32 %v3150_v40, %v4844_v31 }
 0x334   :  { %1015 = vperm.xlu0 %2755, %v3901_v3   ;;  %v1212_v10 = vmul.f32 1.442695, %v1128_v63  ;;  %v1214_v0 = vmul.f32 1.442695, %v1129_v27  ;;  %v4845_v63 = vld [vmem:[#allocation17_spill] sm:$0xff] }
 0x335   :  { %v3965_v9 = vpop.f32.mrf.mxu3 }
 0x336   :  { %4840 = vst [vmem:[#allocation7_spill] sm:$0xff] %v3965_v9  ;;  %2834 = vpow2.f32 %v1212_v10  ;;  %v4843_v9 = vld [vmem:[#allocation22_spill] sm:$0xff] }
 0x337   :  { %2836 = vpow2.f32 %v1214_v0  ;;  %v3977_v59 = vmul.f32 %v3150_v40, %v4843_v9 }
 0x338   :  { %v777_v8 = vpop.xlane.xlu1 %776 }
 0x339   :  { %v3959_v23 = vmax.f32 %v3956_v44, %v777_v8  ;;  %v787_v9 = vmax.f32 %v3977_v59, %v3981_v52  ;;  %v4003_v51 = vpop.permute.xlu2 %1020 }
 0x33b   :  { %1913 = vst.msk [vmem:[#allocation2 + $0x88] sm:$0xff] %vm22_vm1, %v3959_v23 }
 0x33d   :  { %v3967_v1 = vpop.f32.mrf.mxu3 }
 0x33e   :  { %4841 = vst [vmem:[#allocation40_spill] sm:$0xff] %v3967_v1 }
 0x343   :  { %v4005_v53 = vpop.f32.mrf.mxu0 }
 0x350   :  { %v1006_v35 = vpop.permute.xlu1 %1005 }
 0x351   :  { %v1130_v8 = vsub.f32 %v3651_v38, %v1006_v35  ;;  %v1131_v26 = vsub.f32 %v3655_v17, %v1006_v35  ;;  %v3973_v12 = vpop.f32.mrf.mxu3  ;;  %v3985_v38 = vmul.f32 %v3150_v40, %v4845_v63  ;;  %v4846_v17 = vld [vmem:[#allocation18_spill] sm:$0xff]  ;;  %v4849_v63 = vld [vmem:[#allocation11_spill] sm:$0xff] }
 0x352   :  { %4842 = vst [vmem:[#allocation41_spill] sm:$0xff] %v3973_v12  ;;  %v3989_v35 = vmul.f32 %v3150_v40, %v4846_v17  ;;  %v4850_v17 = vld [vmem:[#allocation10_spill] sm:$0xff] }
 0x353   :  { %v1216_v18 = vmul.f32 1.442695, %v1130_v8  ;;  %v1218_v2 = vmul.f32 1.442695, %v1131_v26  ;;  %v2835_v26 = vpop.eup %2834  ;;  %v852_v12 = vsub.f32 %v4850_v17, %v4849_v63  ;;  %v4854_v63 = vld [vmem:[#allocation12_spill] sm:$0xff] }
 0x354   :  { %v2837_v0 = vpop.eup %2836  ;;  %v781_v10 = vmax.f32 %v3985_v38, %v3989_v35  ;;  %v853_v17 = vsub.f32 %v4854_v63, %v3326_v46 }
 0x355   :  { %2838 = vpow2.f32 %v1216_v18  ;;  %v884_v1 = vmul.f32 1.442695, %v852_v12  ;;  %v4017_v12 = vpop.f32.mrf.mxu0 }
 0x356   :  { %2840 = vpow2.f32 %v1218_v2 }
 0x357   :  { %2842 = vpow2.f32 %v884_v1 }
 0x359   :  { %v3991_v18 = vpop.f32.mrf.mxu3 }
 0x35a   :  { %4847 = vst [vmem:[#allocation26_spill] sm:$0xff] %v3991_v18 }
 0x35b   :  { %v2839_v2 = vpop.eup %2838 }
 0x35c   :  { %v2841_v27 = vpop.eup %2840  ;;  %v1534_v8 = vpack.c.bf16 %v2839_v2, %v2835_v26  ;;  %v4852_v26 = vld [vmem:[#allocation15_spill] sm:$0xff] }
 0x35d   :  { %788 = vmax.xlane.f32.xlu1 %v787_v9  ;;  %v1535_v31 = vpack.c.bf16 %v2841_v27, %v2837_v0  ;;  %v855_v2 = vsub.f32 %v4852_v26, %v3348_v62  ;;  %v4012_v27 = vld [vmem:[#allocation2 + $0xa0] sm:$0xff]  ;;  %v4855_v26 = vsub.f32 %v3703_v13, %v3715_v32 }
 0x35e   :  { %782 = vmax.xlane.f32.xlu0 %v781_v10  ;;  %1685 = vmatmul.bf16.gmra.mxu1 %v1534_v8  ;;  %4853 = vst [vmem:[#allocation22_spill] sm:$0xff] %v4012_v27  ;;  %v2843_v10 = vpop.eup %2842 }
 0x35f   :  { %1774 = vmatmul.bf16.gmra.mxu3 %v1535_v31  ;;  %v890_v9 = vmul.f32 1.442695, %v855_v2  ;;  %v896_v2 = vmul.f32 1.442695, %v4855_v26 }
 0x361   :  { %v3997_v40 = vpop.f32.mrf.mxu3  ;;  %2844 = vpow2.f32 %v890_v9 }
 0x362   :  { %4848 = vst [vmem:[#allocation27_spill] sm:$0xff] %v3997_v40  ;;  %2846 = vpow2.f32 %v896_v2 }
 0x367   :  { %v2845_v9 = vpop.eup %2844 }
 0x368   :  { %v2847_v46 = vpop.eup %2846 }
 0x369   :  { %v4001_v18 = vpop.f32.mrf.mxu3 }
 0x36a   :  { %4851 = vst [vmem:[#allocation28_spill] sm:$0xff] %v4001_v18  ;;  %v1666_v18 = vpop.f32.mrf.mxu0 }
 0x371   :  { %v4009_v0 = vpop.f32.mrf.mxu3 }
 0x372   :  { %1030 = vperm.xlu0 %2755, %v3910_v45  }
 0x375   :  { %v786_v8 = vpop.xlane.xlu2 %785 }
 0x376   :  { %v4015_v31 = vmax.f32 %v4012_v27, %v786_v8  ;;  %1334 = vperm.xlu1 %2756, %v2843_v10   ;;  %v886_v10 = vmul.f32 1.442695, %v853_v17  ;;  %v4856_v8 = vld [vmem:[#allocation51_spill] sm:$0xff] }
 0x377   :  { %v860_v1 = vsub.f32 %v4856_v8, %v3603_v21 }
 0x378   :  { %1916 = vst.msk [vmem:[#allocation2 + $0xa0] sm:$0xff] %vm22_vm1, %v4015_v31  ;;  %2848 = vpow2.f32 %v886_v10 }
 0x379   :  { %v4023_v62 = vpop.f32.mrf.mxu3  ;;  %v900_v27 = vmul.f32 1.442695, %v860_v1 }
 0x37a   :  { %1035 = vperm.xlu0 %2755, %v3959_v23  }
 0x37b   :  { %2850 = vpow2.f32 %v900_v27 }
 0x37e   :  { %1349 = vperm.xlu1 %2756, %v2845_v9   ;;  %v2849_v13 = vpop.eup %2848 }
 0x381   :  { %v1755_v40 = vpop.f32.mrf.mxu3  ;;  %v2851_v32 = vpop.eup %2850 }
 0x382   :  { %1040 = vperm.xlu0 %2755, %v3919_v47   ;;  %v4034_v54 = vadd.f32 %v1755_v40, %v1666_v18 }
 0x386   :  { %1364 = vperm.xlu1 %2756, %v2847_v46  }
 0x38a   :  { %1339 = vperm.xlu0 %2755, %v2849_v13  }
 0x38e   :  { %1374 = vperm.xlu1 %2756, %v2851_v32  }
 0x392   :  { %1050 = vperm.xlu0 %2755, %v4015_v31  }
 0x39d   :  { %v1011_v63 = vpop.permute.xlu0 %1010 }
 0x39e   :  { %v1132_v21 = vsub.f32 %v3757_v58, %v1011_v63  ;;  %v1133_v17 = vsub.f32 %v3761_v30, %v1011_v63 }
 0x3a0   :  { %v1220_v26 = vmul.f32 1.442695, %v1132_v21  ;;  %v1222_v9 = vmul.f32 1.442695, %v1133_v17  ;;  %v1137_v21 = vsub.f32 %v3667_v24, %v4003_v51  ;;  %v4857_v24 = vld [vmem:[#allocation16_spill] sm:$0xff] }
 0x3a2   :  { %2852 = vpow2.f32 %v1220_v26 }
 0x3a3   :  { %2854 = vpow2.f32 %v1222_v9  ;;  %v1230_v9 = vmul.f32 1.442695, %v1137_v21 }
 0x3a5   :  { %v1026_v10 = vpop.permute.xlu1 %1025 }
 0x3a6   :  { %v1016_v2 = vpop.permute.xlu0 %1015  ;;  %v1138_v58 = vsub.f32 %v3786_v6, %v1026_v10  ;;  %v1139_v32 = vsub.f32 %v3790_v41, %v1026_v10  ;;  %v4858_v10 = vld [vmem:[#allocation14_spill] sm:$0xff] }
 0x3a7   :  { %v1134_v18 = vsub.f32 %v3707_v7, %v1016_v2  ;;  %v1135_v40 = vsub.f32 %v3711_v34, %v1016_v2  ;;  %v1136_v7 = vsub.f32 %v3663_v22, %v4003_v51  ;;  %v856_v51 = vsub.f32 %v4857_v24, %v3359_v5 }
 0x3a8   :  { %v2853_v8 = vpop.eup %2852  ;;  %v1232_v17 = vmul.f32 1.442695, %v1138_v58  ;;  %v1234_v26 = vmul.f32 1.442695, %v1139_v32  ;;  %v4073_v58 = vld [vmem:[#allocation2 + $0xa8] sm:$0xff] }
 0x3a9   :  { %v1224_v1 = vmul.f32 1.442695, %v1134_v18  ;;  %v1226_v27 = vmul.f32 1.442695, %v1135_v40  ;;  %v2855_v46 = vpop.eup %2854  ;;  %v1228_v2 = vmul.f32 1.442695, %v1136_v7 }
 0x3aa   :  { %v892_v5 = vmul.f32 1.442695, %v856_v51 }
 0x3ab   :  { %2856 = vpow2.f32 %v1224_v1 }
 0x3ac   :  { %2858 = vpow2.f32 %v1226_v27  ;;  %v3016_v27 = vmov 0.0  }
 0x3ad   :  { %2860 = vpow2.f32 %v1232_v17  ;;  %56 = vst.msk [vmem:[#allocation3] sm:$0xff] %vm55_vm2, %v3016_v27 }
 0x3ae   :  { %2862 = vpow2.f32 %v1234_v26  ;;  %57 = vst.msk [vmem:[#allocation3 + $0x8] sm:$0xff] %vm55_vm2, %v3016_v27 }
 0x3af   :  { %2864 = vpow2.f32 %v1228_v2  ;;  %58 = vst.msk [vmem:[#allocation3 + $0x10] sm:$0xff] %vm55_vm2, %v3016_v27  ;;  %v4860_v2 = vld [vmem:[#allocation19_spill] sm:$0xff] }
 0x3b0   :  { %2866 = vpow2.f32 %v1230_v9  ;;  %59 = vst.msk [vmem:[#allocation3 + $0x18] sm:$0xff] %vm55_vm2, %v3016_v27  ;;  %v857_v9 = vsub.f32 %v4860_v2, %v3370_v20  ;;  %v1751_v2 = vadd.f32 %v4009_v0, %v4005_v53 }
 0x3b1   :  { %v2857_v13 = vpop.eup %2856  ;;  %60 = vst.msk [vmem:[#allocation3 + $0x20] sm:$0xff] %vm55_vm2, %v3016_v27  ;;  %2868 = vpow2.f32 %v892_v5 }
 0x3b2   :  { %v2859_v30 = vpop.eup %2858  ;;  %v1536_v63 = vpack.c.bf16 %v2857_v13, %v2853_v8  ;;  %61 = vst.msk [vmem:[#allocation3 + $0x28] sm:$0xff] %vm55_vm2, %v3016_v27  ;;  %v4859_v8 = vld [vmem:[#allocation13_spill] sm:$0xff]  ;;  %v4071_v13 = vpop.f32.mrf.mxu3 }
 0x3b3   :  { %v1537_v34 = vpack.c.bf16 %v2859_v30, %v2855_v46  ;;  %v2861_v6 = vpop.eup %2860  ;;  %62 = vst.msk [vmem:[#allocation3 + $0x30] sm:$0xff] %vm55_vm2, %v3016_v27  ;;  %v854_v46 = vsub.f32 %v4859_v8, %v4858_v10  ;;  %v4077_v30 = vld [vmem:[#allocation2 + $0x98] sm:$0xff] }
 0x3b4   :  { %1690 = vmatmul.bf16.vlgmr.msra.gmra.mxu2 %v1536_v63  ;;  %v2863_v41 = vpop.eup %2862  ;;  %63 = vst.msk [vmem:[#allocation3 + $0x38] sm:$0xff] %vm55_vm2, %v3016_v27  ;;  %v1300_v5 = vld [vmem:[#allocation3] sm:$0xff] }
 0x3b5   :  { %1779 = vmatmul.bf16.gmra.mxu3 %v1537_v34  ;;  %v2865_v18 = vpop.eup %2864  ;;  %64 = vst.msk [vmem:[#allocation3 + $0x40] sm:$0xff] %vm55_vm2, %v3016_v27  ;;  %v888_v63 = vmul.f32 1.442695, %v854_v46 }
 0x3b6   :  { %v2867_v40 = vpop.eup %2866  ;;  %v1538_v1 = vpack.c.bf16 %v2861_v6, %v2865_v18  ;;  %65 = vst.msk [vmem:[#allocation3 + $0x48] sm:$0xff] %vm55_vm2, %v3016_v27  ;;  %v4861_v6 = vld [vmem:[#allocation48_spill] sm:$0xff] }
 0x3b7   :  { %v1539_v22 = vpack.c.bf16 %v2863_v41, %v2867_v40  ;;  %66 = vst.msk [vmem:[#allocation3 + $0x50] sm:$0xff] %vm55_vm2, %v3016_v27  ;;  %2870 = vpow2.f32 %v888_v63  ;;  %v4862_v41 = vld [vmem:[#allocation50_spill] sm:$0xff]  ;;  %v2869_v20 = vpop.eup %2868 }
 0x3b8   :  { %67 = vst.msk [vmem:[#allocation3 + $0x58] sm:$0xff] %vm55_vm2, %v3016_v27  ;;  %v4863_v18 = vsub.f32 %v4861_v6, %v4862_v41 }
 0x3b9   :  { %68 = vst.msk [vmem:[#allocation3 + $0x60] sm:$0xff] %vm55_vm2, %v3016_v27 }
 0x3ba   :  { %69 = vst.msk [vmem:[#allocation3 + $0x68] sm:$0xff] %vm55_vm2, %v3016_v27  ;;  %v898_v40 = vmul.f32 1.442695, %v4863_v18 }
 0x3bb   :  { %70 = vst.msk [vmem:[#allocation3 + $0x70] sm:$0xff] %vm55_vm2, %v3016_v27 }
 0x3bc   :  { %71 = vst.msk [vmem:[#allocation3 + $0x78] sm:$0xff] %vm55_vm2, %v3016_v27  ;;  %2872 = vpow2.f32 %v898_v40 }
 0x3bd   :  { %72 = vst.msk [vmem:[#allocation3 + $0x80] sm:$0xff] %vm55_vm2, %v3016_v27  ;;  %v2871_v24 = vpop.eup %2870 }
 0x3be   :  { %73 = vst.msk [vmem:[#allocation3 + $0x88] sm:$0xff] %vm55_vm2, %v3016_v27 }
 0x3bf   :  { %74 = vst.msk [vmem:[#allocation3 + $0x90] sm:$0xff] %vm55_vm2, %v3016_v27 }
 0x3c0   :  { %75 = vst.msk [vmem:[#allocation3 + $0x98] sm:$0xff] %vm55_vm2, %v3016_v27 }
 0x3c1   :  { %76 = vst.msk [vmem:[#allocation3 + $0xa0] sm:$0xff] %vm55_vm2, %v3016_v27 }
 0x3c2   :  { %77 = vst.msk [vmem:[#allocation3 + $0xa8] sm:$0xff] %vm55_vm2, %v3016_v27  ;;  %v2873_v51 = vpop.eup %2872 }
 0x3c3   :  { %78 = vst.msk [vmem:[#allocation3 + $0xb0] sm:$0xff] %vm55_vm2, %v3016_v27 }
 0x3c4   :  { %1695 = vmatmul.bf16.gmra.mxu2 %v1538_v1  ;;  %v4114_v1 = vpop.f32.mrf.mxu3  ;;  %79 = vst.msk [vmem:[#allocation3 + $0xb8] sm:$0xff] %vm55_vm2, %v3016_v27 }
 0x3c5   :  { %1784 = vmatmul.bf16.gmra.mxu3 %v1539_v22  ;;  %v894_v22 = vmul.f32 1.442695, %v857_v9  ;;  %80 = vst.msk [vmem:[#allocation3 + $0xc0] sm:$0xff] %vm55_vm2, %v3016_v27 }
 0x3c6   :  { %81 = vst.msk [vmem:[#allocation3 + $0xc8] sm:$0xff] %vm55_vm2, %v3016_v27 }
 0x3c7   :  { %2874 = vpow2.f32 %v894_v22  ;;  %82 = vst.msk [vmem:[#allocation3 + $0xd0] sm:$0xff] %vm55_vm2, %v3016_v27 }
 0x3c8   :  { %83 = vst.msk [vmem:[#allocation3 + $0xd8] sm:$0xff] %vm55_vm2, %v3016_v27 }
 0x3c9   :  { %84 = vst.msk [vmem:[#allocation3 + $0xe0] sm:$0xff] %vm55_vm2, %v3016_v27 }
 0x3ca   :  { %85 = vst.msk [vmem:[#allocation3 + $0xe8] sm:$0xff] %vm55_vm2, %v3016_v27 }
 0x3cb   :  { %86 = vst.msk [vmem:[#allocation3 + $0xf0] sm:$0xff] %vm55_vm2, %v3016_v27 }
 0x3cc   :  { %v4136_v10 = vpop.f32.mrf.mxu3  ;;  %87 = vst.msk [vmem:[#allocation3 + $0xf8] sm:$0xff] %vm55_vm2, %v3016_v27 }
 0x3cd   :  { %v2875_v8 = vpop.eup %2874 }
 0x3d0   :  { %v789_v32 = vpop.xlane.xlu1 %788 }
 0x3d1   :  { %v4084_v7 = vmax.f32 %v4073_v58, %v789_v32  ;;  %v783_v34 = vpop.xlane.xlu0 %782 }
 0x3d2   :  { %v4089_v21 = vmax.f32 %v4077_v30, %v783_v34 }
 0x3d3   :  { %v873_v17 = vsub.f32 %v4073_v58, %v4084_v7  ;;  %1917 = vst.msk [vmem:[#allocation2 + $0xa8] sm:$0xff] %vm22_vm1, %v4084_v7  ;;  %1055 = vperm.xlu0 %2755, %v4084_v7  }
 0x3d4   :  { %1915 = vst.msk [vmem:[#allocation2 + $0x98] sm:$0xff] %vm22_vm1, %v4089_v21  ;;  %1045 = vperm.xlu2 %2757, %v4089_v21   ;;  %v1765_v18 = vpop.f32.mrf.mxu3 }
 0x3db   :  { %1354 = vperm.xlu0 %2755, %v2869_v20  }
 0x3dc   :  { %1344 = vperm.xlu2 %2757, %v2871_v24  }
 0x3e3   :  { %1369 = vperm.xlu0 %2755, %v2873_v51   ;;  %v1676_v51 = vpop.f32.mrf.mxu1 }
 0x3e4   :  { %1359 = vperm.xlu2 %2757, %v2875_v8   ;;  %v1031_v46 = vpop.permute.xlu0 %1030 }
 0x3e5   :  { %v1140_v32 = vsub.f32 %v3726_v33, %v1031_v46  ;;  %v1141_v63 = vsub.f32 %v3730_v43, %v1031_v46  ;;  %v1303_v33 = vld [vmem:[#allocation3 + $0x18] sm:$0xff]  ;;  %v1668_v46 = vpop.f32.mrf.mxu0 }
 0x3e6   :  { %v1758_v0 = vadd.f32 %v4071_v13, %v1668_v46  ;;  %v4864_v46 = vsub.f32 %v3753_v57, %v3766_v25 }
 0x3e7   :  { %v1236_v6 = vmul.f32 1.442695, %v1140_v32  ;;  %v1238_v40 = vmul.f32 1.442695, %v1141_v63 }
 0x3e8   :  { %v1335_v34 = vpop.permute.xlu1 %1334 }
 0x3e9   :  { %v1492_v9 = vmul.f32 %v1335_v34, %v1300_v5  ;;  %2876 = vpow2.f32 %v1236_v6  ;;  %v1306_v6 = vld [vmem:[#allocation3 + $0x30] sm:$0xff] }
 0x3ea   :  { %2878 = vpow2.f32 %v1238_v40 }
 0x3eb   :  { %v1830_v41 = vadd.f32 %v1751_v2, %v1492_v9  ;;  %v4160_v9 = vpop.f32.mrf.mxu3  ;;  %v4162_v40 = vpop.f32.mrf.mxu1 }
 0x3ec   :  { %v1036_v22 = vpop.permute.xlu0 %1035 }
 0x3ed   :  { %1863 = vst.msk [vmem:[#allocation3] sm:$0xff] %vm55_vm2, %v1830_v41  ;;  %v1142_v20 = vsub.f32 %v3808_v49, %v1036_v22  ;;  %v1143_v24 = vsub.f32 %v3812_v29, %v1036_v22 }
 0x3ef   :  { %v1240_v43 = vmul.f32 1.442695, %v1142_v20  ;;  %v1242_v8 = vmul.f32 1.442695, %v1143_v24  ;;  %v2877_v49 = vpop.eup %2876  ;;  %v1766_v24 = vadd.f32 %v1765_v18, %v1676_v51  ;;  %v1308_v18 = vld [vmem:[#allocation3 + $0x40] sm:$0xff] }
 0x3f0   :  { %v1350_v53 = vpop.permute.xlu1 %1349  ;;  %v2879_v2 = vpop.eup %2878 }
 0x3f1   :  { %2880 = vpow2.f32 %v1240_v43  ;;  %v1495_v5 = vmul.f32 %v1350_v53, %v1303_v33  ;;  %v902_v53 = vmul.f32 1.442695, %v4864_v46 }
 0x3f2   :  { %2882 = vpow2.f32 %v1242_v8  ;;  %v1301_v8 = vld [vmem:[#allocation3 + $0x8] sm:$0xff] }
 0x3f3   :  { %v1833_v32 = vadd.f32 %v1758_v0, %v1495_v5 }
 0x3f4   :  { %v4154_v63 = vpop.permute.xlu0 %1040  ;;  %v4156_v34 = vld [vmem:[#allocation3] sm:$0xff] }
 0x3f5   :  { %1866 = vst.msk [vmem:[#allocation3 + $0x18] sm:$0xff] %vm55_vm2, %v1833_v32  ;;  %v1963_v29 = vmax.f32 %v4156_v34, 1e-06 }
 0x3f7   :  { %v2881_v41 = vpop.eup %2880  ;;  %2884 = vrcp.f32 %v1963_v29  ;;  %v1753_v29 = vadd.f32 %v4023_v62, %v4017_v12 }
 0x3f8   :  { %v2883_v13 = vpop.eup %2882  ;;  %v1365_v22 = vpop.permute.xlu1 %1364  ;;  %v1540_v20 = vpack.c.bf16 %v2881_v41, %v2877_v49  ;;  %2886 = vpow2.f32 %v902_v53 }
 0x3f9   :  { %v1498_v33 = vmul.f32 %v1365_v22, %v1306_v6  ;;  %v1541_v43 = vpack.c.bf16 %v2883_v13, %v2879_v2  ;;  %v1770_v49 = vpop.f32.mrf.mxu3  ;;  %v1681_v2 = vpop.f32.mrf.mxu1 }
 0x3fa   :  { %1700 = vmatmul.bf16.gmra.mxu2 %v1540_v20  ;;  %v1771_v6 = vadd.f32 %v1770_v49, %v1681_v2  ;;  %v4865_v20 = vsub.f32 %v3931_v56, %v3934_v37  ;;  %v4867_v37 = vsub.f32 %v3943_v55, %v3946_v15  ;;  %v1145_v49 = vsub.f32 %v3740_v14, %v4154_v63 }
 0x3fb   :  { %v1836_v0 = vadd.f32 %v1766_v24, %v1498_v33  ;;  %1789 = vmatmul.bf16.gmra.mxu3 %v1541_v43  ;;  %v4866_v43 = vsub.f32 %v3744_v42, %v3747_v39 }
 0x3fc   :  { %v1340_v5 = vpop.permute.xlu0 %1339  ;;  %v4171_v25 = vld [vmem:[#allocation3 + $0x18] sm:$0xff]  ;;  %v908_v24 = vmul.f32 1.442695, %v4865_v20 }
 0x3fd   :  { %v2885_v32 = vpop.eup %2884  ;;  %1869 = vst.msk [vmem:[#allocation3 + $0x30] sm:$0xff] %vm55_vm2, %v1836_v0  ;;  %v1493_v26 = vmul.f32 %v1340_v5, %v1301_v8  ;;  %v1966_v12 = vmax.f32 %v4171_v25, 1e-06  ;;  %v904_v8 = vmul.f32 1.442695, %v4866_v43 }
 0x3fe   :  { %2070 = vrot.lane.b32.xlu2 %v2885_v32, %s3017_s3  ;;  %v2887_v62 = vpop.eup %2886  ;;  %v914_v32 = vmul.f32 1.442695, %v4867_v37 }
 0x3ff   :  { %v1831_v51 = vadd.f32 %v1753_v29, %v1493_v26  ;;  %2888 = vrcp.f32 %v1966_v12  ;;  %v1144_v29 = vsub.f32 %v3736_v19, %v4154_v63 }
 0x400   :  { %v1375_v57 = vpop.permute.xlu1 %1374 }
 0x401   :  { %1864 = vst.msk [vmem:[#allocation3 + $0x8] sm:$0xff] %vm55_vm2, %v1831_v51  ;;  %v1500_v41 = vmul.f32 %v1375_v57, %v1308_v18  ;;  %v1244_v18 = vmul.f32 1.442695, %v1144_v29  ;;  %v1246_v51 = vmul.f32 1.442695, %v1145_v49 }
 0x403   :  { %v1838_v13 = vadd.f32 %v1771_v6, %v1500_v41  ;;  %v1671_v41 = vpop.f32.mrf.mxu0 }
 0x404   :  { %v4186_v46 = vld [vmem:[#allocation3 + $0x30] sm:$0xff] }
 0x405   :  { %1871 = vst.msk [vmem:[#allocation3 + $0x40] sm:$0xff] %vm55_vm2, %v1838_v13  ;;  %v2889_v33 = vpop.eup %2888  ;;  %v1969_v0 = vmax.f32 %v4186_v46, 1e-06  ;;  %v1302_v13 = vld [vmem:[#allocation3 + $0x10] sm:$0xff] }
 0x406   :  { %1379 = vperm.xlu2 %2757, %v2887_v62  }
 0x408   :  { %v4176_v22 = vld [vmem:[#allocation3 + $0x8] sm:$0xff] }
 0x409   :  { %v1964_v26 = vmax.f32 %v4176_v22, 1e-06 }
 0x40b   :  { %2890 = vrcp.f32 %v1964_v26 }
 0x40c   :  { %2892 = vpow2.f32 %v908_v24 }
 0x40d   :  { %2894 = vpow2.f32 %v904_v8  ;;  %v1051_v8 = vpop.permute.xlu0 %1050 }
 0x40e   :  { %2076 = vrot.lane.b32.xlu2 %v2889_v33, %s3017_s3  ;;  %2896 = vrcp.f32 %v1969_v0  ;;  %v1305_v33 = vld [vmem:[#allocation3 + $0x28] sm:$0xff] }
 0x40f   :  { %2898 = vpow2.f32 %v914_v32  ;;  %v1148_v32 = vsub.f32 %v3887_v50, %v1051_v8 }
 0x410   :  { %2900 = vpow2.f32 %v1244_v18 }
 0x411   :  { %v2891_v53 = vpop.eup %2890  ;;  %2902 = vpow2.f32 %v1246_v51  ;;  %v1252_v51 = vmul.f32 1.442695, %v1148_v32 }
 0x412   :  { %2072 = vrot.lane.b32.xlu0 %v2891_v53, %s3017_s3  ;;  %v2893_v5 = vpop.eup %2892  ;;  %v1673_v53 = vpop.f32.mrf.mxu0 }
 0x413   :  { %v2895_v56 = vpop.eup %2894 }
 0x414   :  { %v2897_v42 = vpop.eup %2896 }
 0x415   :  { %v2899_v39 = vpop.eup %2898 }
 0x416   :  { %1394 = vperm.xlu2 %2757, %v2893_v5   ;;  %v2901_v19 = vpop.eup %2900 }
 0x417   :  { %v2903_v26 = vpop.eup %2902 }
 0x41a   :  { %1384 = vperm.xlu0 %2755, %v2895_v56   ;;  %v1763_v56 = vadd.f32 %v4136_v10, %v1673_v53 }
 0x41e   :  { %2082 = vrot.lane.b32.xlu2 %v2897_v42, %s3017_s3 }
 0x426   :  { %1409 = vperm.xlu2 %2757, %v2899_v39   ;;  %v1149_v39 = vsub.f32 %v3891_v61, %v1051_v8  ;;  %v1307_v8 = vld [vmem:[#allocation3 + $0x38] sm:$0xff] }
 0x42e   :  { %v1046_v2 = vpop.permute.xlu2 %1045 }
 0x42f   :  { %v1146_v57 = vsub.f32 %v3985_v38, %v1046_v2  ;;  %v1147_v55 = vsub.f32 %v3989_v35, %v1046_v2  ;;  %v2027_v38 = vlaneseq  ;;  %v1254_v2 = vmul.f32 1.442695, %v1149_v39 }
 0x431   :  { %v1248_v15 = vmul.f32 1.442695, %v1146_v57  ;;  %v1250_v6 = vmul.f32 1.442695, %v1147_v55  ;;  %v2030_v43 = vshrl.u32 %v2027_v38, 7  ;;  %v1772_v57 = vpop.f32.mrf.mxu3 }
 0x433   :  { %2904 = vpow2.f32 %v1248_v15  ;;  %v2031_v5 = vmul.u32 3, %v2030_v43 }
 0x434   :  { %2906 = vpow2.f32 %v1250_v6 }
 0x435   :  { %v2033_v42 = vadd.s32 3, %v2031_v5 }
 0x436   :  { %v1345_v12 = vpop.permute.xlu2 %1344 }
 0x437   :  { %v1494_v62 = vmul.f32 %v1345_v12, %v1302_v13  ;;  %v4868_v13 = vsub.f32 %v3838_v28, %v3849_v4 }
 0x439   :  { %v2905_v14 = vpop.eup %2904  ;;  %v1832_v63 = vadd.f32 %v4034_v54, %v1494_v62  ;;  %v2028_v54 = vand.u32 127, %v2027_v38  ;;  %v906_v12 = vmul.f32 1.442695, %v4868_v13  ;;  %v4871_v13 = vpack.c.bf16 %v3680_v11, %v3677_v16  ;;  %v4873_v16 = vld [vmem:[#allocation5_spill] sm:$0xff] }
 0x43a   :  { %v2907_v20 = vpop.eup %2906  ;;  %v1542_v24 = vpack.c.bf16 %v2905_v14, %v2901_v19  ;;  %v1304_v19 = vld [vmem:[#allocation3 + $0x20] sm:$0xff] }
 0x43b   :  { %1865 = vst.msk [vmem:[#allocation3 + $0x10] sm:$0xff] %vm55_vm2, %v1832_v63  ;;  %v1543_v35 = vpack.c.bf16 %v2907_v20, %v2903_v26  ;;  %vm2032_vm3 = vcmp.ge.s32.totalorder %v2028_v54, %v2031_v5  ;;  %vm2034_vm4 = vcmp.lt.s32.totalorder %v2028_v54, %v2033_v42 }
 0x43c   :  { %1705 = vmatmul.bf16.gmra.mxu2 %v1542_v24  ;;  %vm2035_vm5 = vmand %vm2032_vm3, %vm2034_vm4 }
 0x43d   :  { %1794 = vmatmul.bf16.gmra.mxu3 %v1543_v35  ;;  %v2645_v10 = vsel %vm2035_vm5, 1.0, %v3016_v27 }
 0x43e   :  { %v1360_v0 = vpop.permute.xlu2 %1359  ;;  %2646 = vmatpush.msk.msrb.mxu2 %vm2199_vm6, %v2645_v10 }
 0x43f   :  { %v1497_v37 = vmul.f32 %v1360_v0, %v1305_v33 }
 0x441   :  { %v1835_v29 = vadd.f32 %v1763_v56, %v1497_v37  ;;  %v4869_v37 = vsub.f32 %v3857_v48, %v3860_v60  ;;  %v4870_v48 = vsub.f32 %v3896_v36, %v3901_v3 }
 0x442   :  { %v4205_v49 = vld [vmem:[#allocation3 + $0x10] sm:$0xff] }
 0x443   :  { %1868 = vst.msk [vmem:[#allocation3 + $0x28] sm:$0xff] %vm55_vm2, %v1835_v29  ;;  %v1965_v18 = vmax.f32 %v4205_v49, 1e-06  ;;  %v912_v32 = vmul.f32 1.442695, %v4869_v37  ;;  %v1683_v29 = vpop.f32.mrf.mxu1 }
 0x444   :  { %v910_v60 = vmul.f32 1.442695, %v4870_v48 }
 0x445   :  { %v1056_v50 = vpop.permute.xlu0 %1055  ;;  %2908 = vrcp.f32 %v1965_v18  ;;  %v1691_v18 = vpop.f32.mrf.mxu2 }
 0x446   :  { %v1150_v61 = vsub.f32 %v3977_v59, %v1056_v50  ;;  %v1151_v55 = vsub.f32 %v3981_v52, %v1056_v50  ;;  %2910 = vpow2.f32 %v1252_v51  ;;  %v1761_v59 = vadd.f32 %v4114_v1, %v1671_v41  ;;  %v4217_v52 = vpop.f32.mrf.mxu3 }
 0x447   :  { %2912 = vpow2.f32 %v1254_v2  ;;  %v1768_v41 = vadd.f32 %v4160_v9, %v4162_v40  ;;  %v1309_v9 = vld [vmem:[#allocation3 + $0x48] sm:$0xff]  ;;  %v4235_v40 = vld [vmem:[#allocation3 + $0x40] sm:$0xff]  ;;  %v1773_v2 = vadd.f32 %v1772_v57, %v1683_v29 }
 0x448   :  { %v1256_v15 = vmul.f32 1.442695, %v1150_v61  ;;  %v1258_v6 = vmul.f32 1.442695, %v1151_v55  ;;  %v1971_v61 = vmax.f32 %v4235_v40, 1e-06 }
 0x44a   :  { %2914 = vpow2.f32 %v1256_v15  ;;  %v4219_v63 = vld [vmem:[#allocation3 + $0x28] sm:$0xff] }
 0x44b   :  { %v2909_v27 = vpop.eup %2908  ;;  %2916 = vpow2.f32 %v1258_v6  ;;  %v1968_v35 = vmax.f32 %v4219_v63, 1e-06 }
 0x44c   :  { %2074 = vrot.lane.b32.xlu1 %v2909_v27, %s3017_s3  ;;  %2918 = vpow2.f32 %v906_v12  ;;  %v2911_v26 = vpop.eup %2910  ;;  %v4872_v12 = vsub.f32 %v3956_v44, %v3959_v23  ;;  %v1312_v44 = vld [vmem:[#allocation3 + $0x60] sm:$0xff]  ;;  %v4874_v23 = vld [vmem:[#allocation6_spill] sm:$0xff] }
 0x44d   :  { %v1355_v62 = vpop.permute.xlu0 %1354  ;;  %v2913_v20 = vpop.eup %2912  ;;  %2920 = vrcp.f32 %v1968_v35  ;;  %v4876_v35 = vld [vmem:[#allocation25_spill] sm:$0xff] }
 0x44e   :  { %v1496_v14 = vmul.f32 %v1355_v62, %v1304_v19  ;;  %v4225_v0 = vpop.f32.mrf.mxu3  ;;  %v918_v27 = vmul.f32 1.442695, %v4872_v12  ;;  %v4255_v62 = vpop.f32.mrf.mxu2 }
 0x450   :  { %v2915_v28 = vpop.eup %2914  ;;  %v1834_v4 = vadd.f32 %v1761_v59, %v1496_v14  ;;  %v868_v59 = vsub.f32 %v4873_v16, %v3910_v45 }
 0x451   :  { %v2917_v24 = vpop.eup %2916  ;;  %v1544_v38 = vpack.c.bf16 %v2915_v28, %v2911_v26  ;;  %v870_v28 = vsub.f32 %v4874_v23, %v3919_v47  ;;  %v1686_v23 = vpop.f32.mrf.mxu1 }
 0x452   :  { %1867 = vst.msk [vmem:[#allocation3 + $0x20] sm:$0xff] %vm55_vm2, %v1834_v4  ;;  %v1545_v33 = vpack.c.bf16 %v2917_v24, %v2913_v20  ;;  %v2919_v43 = vpop.eup %2918  ;;  %v916_v4 = vmul.f32 1.442695, %v868_v59  ;;  %v1776_v58 = vadd.f32 %v4217_v52, %v1686_v23  ;;  %v1314_v23 = vld [vmem:[#allocation3 + $0x70] sm:$0xff] }
 0x453   :  { %1710 = vmatmul.bf16.gmra.mxu2 %v1544_v38  ;;  %v2921_v39 = vpop.eup %2920  ;;  %v4875_v38 = vld [vmem:[#allocation55_spill] sm:$0xff] }
 0x454   :  { %1799 = vmatmul.bf16.gmra.mxu3 %v1545_v33  ;;  %1389 = vperm.xlu1 %2756, %v2919_v43   ;;  %v1163_v33 = vsub.f32 %v4876_v35, %v4875_v38  ;;  %v4882_v35 = vld [vmem:[#allocation33_spill] sm:$0xff] }
 0x455   :  { %v1370_v1 = vpop.permute.xlu0 %1369 }
 0x456   :  { %v1499_v53 = vmul.f32 %v1370_v1, %v1307_v8  ;;  %v1780_v51 = vpop.f32.mrf.mxu3 }
 0x457   :  { %v1781_v43 = vadd.f32 %v1780_v51, %v1691_v18  ;;  %v1282_v18 = vmul.f32 1.442695, %v1163_v33  ;;  %v4883_v33 = vld [vmem:[#allocation34_spill] sm:$0xff] }
 0x458   :  { %v1837_v5 = vadd.f32 %v1768_v41, %v1499_v53  ;;  %v2071_v56 = vpop.permute.xlu2 %2070  ;;  %v4877_v41 = vld [vmem:[#allocation54_spill] sm:$0xff]  ;;  %v4878_v53 = vld [vmem:[#allocation24_spill] sm:$0xff] }
 0x459   :  { %v4230_v54 = vld [vmem:[#allocation3 + $0x20] sm:$0xff] }
 0x45a   :  { %1870 = vst.msk [vmem:[#allocation3 + $0x38] sm:$0xff] %vm55_vm2, %v1837_v5  ;;  %v1967_v42 = vmax.f32 %v4230_v54, 1e-06  ;;  %v1161_v5 = vsub.f32 %v4878_v53, %v4877_v41 }
 0x45c   :  { %2080 = vrot.lane.b32.xlu1 %v2921_v39, %s3017_s3  ;;  %2922 = vrcp.f32 %v1967_v42  ;;  %v4879_v42 = vld [vmem:[#allocation57_spill] sm:$0xff]  ;;  %v4880_v39 = vld [vmem:[#allocation56_spill] sm:$0xff]  ;;  %v1278_v48 = vmul.f32 1.442695, %v1161_v5 }
 0x45d   :  { %2924 = vpow2.f32 %v912_v32  ;;  %v4272_v32 = vpop.f32.mrf.mxu2 }
 0x45e   :  { %2926 = vpow2.f32 %v910_v60  ;;  %v4257_v26 = vpop.f32.mrf.mxu3 }
 0x45f   :  { %2928 = vrcp.f32 %v1971_v61 }
 0x460   :  { %v1380_v10 = vpop.permute.xlu2 %1379 }
 0x461   :  { %v1501_v50 = vmul.f32 %v1380_v10, %v1309_v9  ;;  %v4247_v36 = vld [vmem:[#allocation3 + $0x38] sm:$0xff]  ;;  %v4881_v9 = vpack.c.bf16 %v4879_v42, %v4880_v39 }
 0x462   :  { %v2923_v55 = vpop.eup %2922  ;;  %v1970_v57 = vmax.f32 %v4247_v36, 1e-06 }
 0x463   :  { %v2925_v15 = vpop.eup %2924  ;;  %v1839_v6 = vadd.f32 %v1773_v2, %v1501_v50  ;;  %2078 = vrot.lane.b32.xlu0 %v2923_v55, %s3017_s3  ;;  %2647 = vmatmul.msk.f32.vlgmr.msrb.gmra.mxu2 %vm2134_vm7, %v2071_v56  ;;  %v920_v56 = vmul.f32 1.442695, %v870_v28 }
 0x464   :  { %1804 = vmatmul.bf16.gmra.mxu3 %v4871_v13  ;;  %1404 = vperm.xlu1 %2756, %v2925_v15   ;;  %v2927_v19 = vpop.eup %2926  ;;  %2930 = vrcp.f32 %v1970_v57  ;;  %v1315_v15 = vld [vmem:[#allocation3 + $0x78] sm:$0xff] }
 0x465   :  { %1872 = vst.msk [vmem:[#allocation3 + $0x48] sm:$0xff] %vm55_vm2, %v1839_v6  ;;  %v2929_v11 = vpop.eup %2928  ;;  %2932 = vpow2.f32 %v918_v27  ;;  %v1698_v61 = vpop.f32.mrf.mxu2 }
 0x466   :  { %v4274_v47 = vpop.f32.mrf.mxu3 }
 0x468   :  { %v4249_v3 = vpop.permute.xlu2 %2076 }
 0x46a   :  { %v2931_v8 = vpop.eup %2930 }
 0x46b   :  { %1399 = vperm.xlu0 %2755, %v2927_v19   ;;  %v2933_v1 = vpop.eup %2932 }
 0x46c   :  { %2086 = vrot.lane.b32.xlu1 %v2929_v11, %s3017_s3  ;;  %v4262_v14 = vld [vmem:[#allocation3 + $0x48] sm:$0xff]  ;;  %v926_v11 = vmul.f32 1.442695, %v873_v17 }
 0x46d   :  { %v1972_v20 = vmax.f32 %v4262_v14, 1e-06 }
 0x46e   :  { %v1787_v55 = vpop.f32.mrf.mxu3 }
 0x46f   :  { %2934 = vrcp.f32 %v1972_v20  ;;  %v1788_v12 = vadd.f32 %v1787_v55, %v1698_v61  ;;  %v1311_v55 = vld [vmem:[#allocation3 + $0x58] sm:$0xff] }
 0x470   :  { %v1395_v24 = vpop.permute.xlu2 %1394  ;;  %2936 = vpow2.f32 %v916_v4 }
 0x471   :  { %v1504_v45 = vmul.f32 %v1395_v24, %v1312_v44  ;;  %2938 = vpow2.f32 %v920_v56  ;;  %v1310_v44 = vld [vmem:[#allocation3 + $0x50] sm:$0xff] }
 0x472   :  { %2940 = vpow2.f32 %v1282_v18 }
 0x473   :  { %v1842_v37 = vadd.f32 %v1781_v43, %v1504_v45  ;;  %2084 = vrot.lane.b32.xlu0 %v2931_v8, %s3017_s3  ;;  %2942 = vpow2.f32 %v1278_v48  ;;  %v4884_v43 = vsub.f32 %v4882_v35, %v4883_v33  ;;  %v4885_v8 = vld [vmem:[#allocation59_spill] sm:$0xff]  ;;  %v4892_v35 = vld [vmem:[#allocation22_spill] sm:$0xff] }
 0x474   :  { %1809 = vmatmul.bf16.gmra.mxu3 %v4881_v9  ;;  %1419 = vperm.xlu1 %2756, %v2933_v1   ;;  %v4886_v1 = vld [vmem:[#allocation58_spill] sm:$0xff]  ;;  %v4889_v9 = vld [vmem:[#allocation61_spill] sm:$0xff]  ;;  %v4893_v33 = vsub.f32 %v4892_v35, %v4015_v31  ;;  %v4897_v35 = vld [vmem:[#allocation39_spill] sm:$0xff] }
 0x475   :  { %v2935_v29 = vpop.eup %2934  ;;  %1875 = vst.msk [vmem:[#allocation3 + $0x60] sm:$0xff] %vm55_vm2, %v1842_v37  ;;  %v932_v45 = vmul.f32 1.442695, %v4884_v43  ;;  %v4887_v41 = vpack.c.bf16 %v4885_v8, %v4886_v1  ;;  %v4888_v37 = vsub.f32 %v4077_v30, %v4089_v21 }
 0x476   :  { %2088 = vrot.lane.b32.xlu2 %v2935_v29, %s3017_s3  ;;  %v2937_v51 = vpop.eup %2936  ;;  %v4890_v29 = vld [vmem:[#allocation60_spill] sm:$0xff]  ;;  %v924_v43 = vmul.f32 1.442695, %v4893_v33  ;;  %v4898_v33 = vld [vmem:[#allocation42_spill] sm:$0xff] }
 0x477   :  { %v2939_v2 = vpop.eup %2938  ;;  %v922_v42 = vmul.f32 1.442695, %v4888_v37  ;;  %v4891_v18 = vpack.c.bf16 %v4889_v9, %v4890_v29 }
 0x478   :  { %v4281_v60 = vpop.permute.xlu2 %2082  ;;  %v2941_v6 = vpop.eup %2940 }
 0x479   :  { %v2943_v57 = vpop.eup %2942 }
 0x47a   :  { %v1551_v19 = vpack.c.bf16 %v2941_v6, %v2943_v57  ;;  %v1688_v6 = vpop.f32.mrf.mxu1 }
 0x47b   :  { %1414 = vperm.xlu0 %2755, %v2937_v51   ;;  %v1778_v57 = vadd.f32 %v4225_v0, %v1688_v6  ;;  %v1321_v6 = vld [vmem:[#allocation3 + $0xa8] sm:$0xff] }
 0x47c   :  { %v4283_v10 = vld [vmem:[#allocation3 + $0x60] sm:$0xff] }
 0x47d   :  { %v1975_v50 = vmax.f32 %v4283_v10, 1e-06  ;;  %v4314_v51 = vpop.f32.mrf.mxu2 }
 0x47e   :  { %1424 = vperm.xlu2 %2757, %v2939_v2   ;;  %v4316_v2 = vpop.f32.mrf.mxu3 }
 0x47f   :  { %2944 = vrcp.f32 %v1975_v50 }
 0x480   :  { %v1410_v13 = vpop.permute.xlu2 %1409  ;;  %2946 = vpow2.f32 %v926_v11 }
 0x481   :  { %v1507_v27 = vmul.f32 %v1410_v13, %v1315_v15 }
 0x483   :  { %v1845_v16 = vadd.f32 %v1788_v12, %v1507_v27 }
 0x484   :  { %v2073_v59 = vpop.permute.xlu0 %2072  ;;  %1814 = vmatmul.bf16.gmra.mxu3 %v1551_v19 }
 0x485   :  { %v2945_v20 = vpop.eup %2944  ;;  %1878 = vst.msk [vmem:[#allocation3 + $0x78] sm:$0xff] %vm55_vm2, %v1845_v16  ;;  %2648 = vmatmul.msk.f32.gmra.mxu2 %vm2134_vm7, %v2073_v59  ;;  %v4318_v50 = vpop.f32.mrf.mxu2 }
 0x486   :  { %2094 = vrot.lane.b32.xlu2 %v2945_v20, %s3017_s3  ;;  %v2947_v24 = vpop.eup %2946  ;;  %v4320_v61 = vpop.f32.mrf.mxu3 }
 0x48c   :  { %v1385_v28 = vpop.permute.xlu0 %1384  ;;  %v4292_v4 = vld [vmem:[#allocation3 + $0x78] sm:$0xff] }
 0x48d   :  { %v1502_v7 = vmul.f32 %v1385_v28, %v1310_v44  ;;  %v1978_v17 = vmax.f32 %v4292_v4, 1e-06 }
 0x48e   :  { %1439 = vperm.xlu2 %2757, %v2947_v24  }
 0x48f   :  { %v1840_v38 = vadd.f32 %v1776_v58, %v1502_v7  ;;  %2948 = vrcp.f32 %v1978_v17  ;;  %v1786_v58 = vadd.f32 %v4274_v47, %v4272_v32  ;;  %v1783_v47 = vadd.f32 %v4257_v26, %v4255_v62 }
 0x490   :  { %2950 = vpow2.f32 %v932_v45 }
 0x491   :  { %1873 = vst.msk [vmem:[#allocation3 + $0x50] sm:$0xff] %vm55_vm2, %v1840_v38 }
 0x494   :  { %1819 = vmatmul.bf16.gmra.mxu3 %v4887_v41 }
 0x495   :  { %v2949_v53 = vpop.eup %2948 }
 0x496   :  { %2100 = vrot.lane.b32.xlu2 %v2949_v53, %s3017_s3  ;;  %v2951_v56 = vpop.eup %2950 }
 0x498   :  { %v4304_v52 = vld [vmem:[#allocation3 + $0x50] sm:$0xff] }
 0x499   :  { %v1973_v5 = vmax.f32 %v4304_v52, 1e-06 }
 0x49b   :  { %2952 = vrcp.f32 %v1973_v5  ;;  %v1313_v5 = vld [vmem:[#allocation3 + $0x68] sm:$0xff] }
 0x49c   :  { %2954 = vpow2.f32 %v922_v42 }
 0x49e   :  { %1454 = vperm.xlu2 %2757, %v2951_v56  }
 0x4a1   :  { %v2953_v39 = vpop.eup %2952 }
 0x4a2   :  { %2090 = vrot.lane.b32.xlu0 %v2953_v39, %s3017_s3  ;;  %v2955_v48 = vpop.eup %2954 }
 0x4a4   :  { %1824 = vmatmul.bf16.gmra.mxu3 %v4891_v18 }
 0x4aa   :  { %1429 = vperm.xlu0 %2755, %v2955_v48  }
 0x4be   :  { %v2075_v30 = vpop.permute.xlu1 %2074 }
 0x4bf   :  { %2649 = vmatmul.msk.f32.gmra.mxu2 %vm2134_vm7, %v2075_v30  ;;  %v1706_v21 = vpop.f32.mrf.mxu2  ;;  %v1317_v30 = vld [vmem:[#allocation3 + $0x88] sm:$0xff] }
 0x4c0   :  { %v1795_v15 = vpop.f32.mrf.mxu3 }
 0x4c1   :  { %v1796_v45 = vadd.f32 %v1795_v15, %v1706_v21 }
 0x4c6   :  { %v1390_v13 = vpop.permute.xlu1 %1389 }
 0x4c7   :  { %v1503_v12 = vmul.f32 %v1390_v13, %v1311_v55  ;;  %2650 = vmatmul.msk.f32.gmra.mxu2 %vm2134_vm7, %v4249_v3  ;;  %v4327_v19 = vpop.f32.mrf.mxu2  ;;  %v1318_v3 = vld [vmem:[#allocation3 + $0x90] sm:$0xff]  ;;  %v1793_v13 = vadd.f32 %v4320_v61, %v4318_v50 }
 0x4c8   :  { %v4329_v16 = vpop.f32.mrf.mxu3 }
 0x4c9   :  { %v1841_v27 = vadd.f32 %v1778_v57, %v1503_v12 }
 0x4cb   :  { %1874 = vst.msk [vmem:[#allocation3 + $0x58] sm:$0xff] %vm55_vm2, %v1841_v27 }
 0x4ce   :  { %v2081_v11 = vpop.permute.xlu1 %2080 }
 0x4d0   :  { %v4331_v59 = vpop.permute.xlu2 %2088 }
 0x4d2   :  { %v4333_v20 = vld [vmem:[#allocation3 + $0x58] sm:$0xff] }
 0x4d3   :  { %v1974_v44 = vmax.f32 %v4333_v20, 1e-06 }
 0x4d5   :  { %v2079_v0 = vpop.permute.xlu0 %2078  ;;  %2956 = vrcp.f32 %v1974_v44  ;;  %v4895_v44 = vld [vmem:[#allocation32_spill] sm:$0xff] }
 0x4d6   :  { %v1405_v28 = vpop.permute.xlu1 %1404  ;;  %v4336_v24 = vpop.f32.mrf.mxu2  ;;  %2651 = vmatmul.msk.f32.gmra.mxu2 %vm2134_vm7, %v2079_v0  ;;  %2958 = vpow2.f32 %v924_v43  ;;  %v4899_v43 = vsub.f32 %v4897_v35, %v4898_v33 }
 0x4d7   :  { %v1506_v7 = vmul.f32 %v1405_v28, %v1314_v23  ;;  %v4341_v17 = vpop.f32.mrf.mxu3 }
 0x4d8   :  { %v1425_v38 = vpop.permute.xlu2 %1424 }
 0x4d9   :  { %v1844_v8 = vadd.f32 %v1786_v58, %v1506_v7  ;;  %v1510_v1 = vmul.f32 %v1425_v38, %v1318_v3 }
 0x4db   :  { %v2957_v41 = vpop.eup %2956  ;;  %1877 = vst.msk [vmem:[#allocation3 + $0x70] sm:$0xff] %vm55_vm2, %v1844_v8  ;;  %v1848_v53 = vadd.f32 %v1796_v45, %v1510_v1  ;;  %v1316_v8 = vld [vmem:[#allocation3 + $0x80] sm:$0xff] }
 0x4dc   :  { %2092 = vrot.lane.b32.xlu1 %v2957_v41, %s3017_s3  ;;  %v2959_v18 = vpop.eup %2958 }
 0x4dd   :  { %1881 = vst.msk [vmem:[#allocation3 + $0x90] sm:$0xff] %vm55_vm2, %v1848_v53  ;;  %v1400_v32 = vpop.permute.xlu0 %1399  ;;  %v1791_v53 = vadd.f32 %v4316_v2, %v4314_v51 }
 0x4de   :  { %v1505_v56 = vmul.f32 %v1400_v32, %v1313_v5  ;;  %v4351_v31 = vpop.permute.xlu1 %2086  ;;  %v1713_v37 = vpop.f32.mrf.mxu2  ;;  %2652 = vmatmul.msk.f32.gmra.mxu2 %vm2134_vm7, %v2081_v11  ;;  %v4894_v11 = vld [vmem:[#allocation31_spill] sm:$0xff] }
 0x4df   :  { %v1802_v42 = vpop.f32.mrf.mxu3  ;;  %v4896_v23 = vsub.f32 %v4894_v11, %v4895_v44 }
 0x4e0   :  { %v1843_v39 = vadd.f32 %v1783_v47, %v1505_v56  ;;  %v4354_v9 = vpop.permute.xlu2 %2094  ;;  %v1803_v3 = vadd.f32 %v1802_v42, %v1713_v37  ;;  %v4900_v47 = vld [vmem:[#allocation29_spill] sm:$0xff]  ;;  %v4901_v56 = vld [vmem:[#allocation30_spill] sm:$0xff] }
 0x4e1   :  { %v930_v0 = vmul.f32 1.442695, %v4896_v23  ;;  %v4902_v37 = vsub.f32 %v4900_v47, %v4901_v56  ;;  %v4906_v23 = vld [vmem:[#allocation21_spill] sm:$0xff] }
 0x4e2   :  { %1876 = vst.msk [vmem:[#allocation3 + $0x68] sm:$0xff] %vm55_vm2, %v1843_v39  ;;  %v4357_v29 = vld [vmem:[#allocation3 + $0x70] sm:$0xff] }
 0x4e3   :  { %v1977_v48 = vmax.f32 %v4357_v29, 1e-06  ;;  %v928_v42 = vmul.f32 1.442695, %v4902_v37 }
 0x4e4   :  { %1434 = vperm.xlu1 %2756, %v2959_v18   ;;  %v4360_v62 = vld [vmem:[#allocation3 + $0x90] sm:$0xff] }
 0x4e5   :  { %v2085_v26 = vpop.permute.xlu0 %2084  ;;  %2960 = vrcp.f32 %v1977_v48  ;;  %v1981_v21 = vmax.f32 %v4360_v62, 1e-06 }
 0x4e6   :  { %v1420_v55 = vpop.permute.xlu1 %1419  ;;  %v2220_v15 = vpop.f32.mrf.mxu2  ;;  %2653 = vmatmul.msk.f32.gmra.mxu2 %vm2134_vm7, %v4281_v60 }
 0x4e7   :  { %v1509_v57 = vmul.f32 %v1420_v55, %v1317_v30  ;;  %v4367_v12 = vpop.f32.mrf.mxu3  ;;  %v2316_v27 = vmul.f32 %v2220_v15, %v4156_v34  ;;  %2962 = vrcp.f32 %v1981_v21  ;;  %v938_v34 = vmul.f32 1.442695, %v4899_v43  ;;  %v1324_v15 = vld [vmem:[#allocation3 + $0xc0] sm:$0xff] }
 0x4e8   :  { %v1440_v28 = vpop.permute.xlu2 %1439 }
 0x4e9   :  { %v1847_v58 = vadd.f32 %v1793_v13, %v1509_v57  ;;  %v2348_v7 = vpack.c.bf16 %v2316_v27, %v2316_v27  ;;  %v1513_v60 = vmul.f32 %v1440_v28, %v1321_v6  ;;  %v4373_v38 = vld [vmem:[#allocation3 + $0x68] sm:$0xff]  ;;  %v4903_v57 = vld [vmem:[#allocation37_spill] sm:$0xff] }
 0x4ea   :  { %v1976_v50 = vmax.f32 %v4373_v38, 1e-06  ;;  %v4904_v27 = vld [vmem:[#allocation38_spill] sm:$0xff] }
 0x4eb   :  { %v2961_v61 = vpop.eup %2960  ;;  %1880 = vst.msk [vmem:[#allocation3 + $0x88] sm:$0xff] %vm55_vm2, %v1847_v58  ;;  %v1851_v45 = vadd.f32 %v1803_v3, %v1513_v60  ;;  %v4905_v11 = vsub.f32 %v4903_v57, %v4904_v27  ;;  %v4913_v27 = vld [vmem:[#allocation43_spill] sm:$0xff] }
 0x4ec   :  { %2381 = vst.msk [vmem:[%s4710_s4] sm:$0xf] %vm2380_vm8, %v2348_v7  ;;  %2098 = vrot.lane.b32.xlu1 %v2961_v61, %s3017_s3  ;;  %2964 = vrcp.f32 %v1976_v50  ;;  %v4907_v50 = vld [vmem:[#allocation47_spill] sm:$0xff] }
 0x4ed   :  { %v2963_v1 = vpop.eup %2962  ;;  %2966 = vpow2.f32 %v930_v0  ;;  %1884 = vst.msk [vmem:[#allocation3 + $0xa8] sm:$0xff] %vm55_vm2, %v1851_v45  ;;  %v1415_v41 = vpop.permute.xlu0 %1414  ;;  %v936_v44 = vmul.f32 1.442695, %v4905_v11  ;;  %v4911_v45 = vld [vmem:[#allocation36_spill] sm:$0xff] }
 0x4ee   :  { %v1508_v5 = vmul.f32 %v1415_v41, %v1316_v8  ;;  %2654 = vmatmul.msk.f32.gmra.mxu2 %vm2134_vm7, %v2085_v26  ;;  %2106 = vrot.lane.b32.xlu2 %v2963_v1, %s3017_s3  ;;  %2968 = vpow2.f32 %v938_v34  ;;  %v4910_v34 = vld [vmem:[#allocation35_spill] sm:$0xff]  ;;  %v4914_v11 = vld [vmem:[#allocation44_spill] sm:$0xff] }
 0x4ef   :  { %v4390_v32 = vpop.f32.mrf.mxu3  ;;  %2970 = vpow2.f32 %v928_v42  ;;  %v4912_v8 = vsub.f32 %v4910_v34, %v4911_v45  ;;  %v1327_v34 = vld [vmem:[#allocation3 + $0xd8] sm:$0xff] }
 0x4f0   :  { %v1846_v39 = vadd.f32 %v1791_v53, %v1508_v5  ;;  %v4395_v18 = vpop.permute.xlu2 %2100  ;;  %v4916_v45 = vld [vmem:[#allocation40_spill] sm:$0xff] }
 0x4f1   :  { %v934_v1 = vmul.f32 1.442695, %v4912_v8 }
 0x4f2   :  { %v2965_v48 = vpop.eup %2964  ;;  %1879 = vst.msk [vmem:[#allocation3 + $0x80] sm:$0xff] %vm55_vm2, %v1846_v39  ;;  %v4398_v30 = vld [vmem:[#allocation3 + $0x88] sm:$0xff] }
 0x4f3   :  { %v2967_v51 = vpop.eup %2966  ;;  %2096 = vrot.lane.b32.xlu0 %v2965_v48, %s3017_s3  ;;  %v1980_v2 = vmax.f32 %v4398_v30, 1e-06 }
 0x4f4   :  { %1449 = vperm.xlu1 %2756, %v2967_v51   ;;  %v4402_v26 = vld [vmem:[#allocation3 + $0xa8] sm:$0xff]  ;;  %v2969_v21 = vpop.eup %2968 }
 0x4f5   :  { %2972 = vrcp.f32 %v1980_v2  ;;  %v1984_v55 = vmax.f32 %v4402_v26, 1e-06  ;;  %v2971_v58 = vpop.eup %2970  ;;  %v1319_v2 = vld [vmem:[#allocation3 + $0x98] sm:$0xff] }
 0x4f6   :  { %2655 = vmatmul.msk.f32.gmra.mxu2 %vm2134_vm7, %v4351_v31  ;;  %1469 = vperm.xlu2 %2757, %v2969_v21   ;;  %v4908_v31 = vld [vmem:[#allocation49_spill] sm:$0xff] }
 0x4f7   :  { %v1810_v6 = vpop.f32.mrf.mxu3  ;;  %2974 = vrcp.f32 %v1984_v55  ;;  %v4909_v61 = vsub.f32 %v4907_v50, %v4908_v31  ;;  %v1798_v55 = vadd.f32 %v4329_v16, %v4327_v19 }
 0x4f8   :  { %v1455_v13 = vpop.permute.xlu2 %1454  ;;  %v1811_v0 = vadd.f32 %v1810_v6, %v4906_v23 }
 0x4f9   :  { %v1516_v28 = vmul.f32 %v1455_v13, %v1324_v15  ;;  %v4411_v3 = vld [vmem:[#allocation3 + $0x80] sm:$0xff]  ;;  %v944_v35 = vmul.f32 1.442695, %v4909_v61 }
 0x4fa   :  { %v1979_v7 = vmax.f32 %v4411_v3, 1e-06 }
 0x4fb   :  { %v2973_v60 = vpop.eup %2972  ;;  %v1854_v33 = vadd.f32 %v1811_v0, %v1516_v28  ;;  %1444 = vperm.xlu0 %2755, %v2971_v58  }
 0x4fc   :  { %2104 = vrot.lane.b32.xlu1 %v2973_v60, %s3017_s3  ;;  %2976 = vrcp.f32 %v1979_v7 }
 0x4fd   :  { %v2975_v43 = vpop.eup %2974  ;;  %2978 = vpow2.f32 %v936_v44  ;;  %1887 = vst.msk [vmem:[#allocation3 + $0xc0] sm:$0xff] %vm55_vm2, %v1854_v33  ;;  %v4915_v44 = vsub.f32 %v4913_v27, %v4914_v11 }
 0x4fe   :  { %2656 = vmatmul.msk.f32.gmra.mxu2 %vm2134_vm7, %v4331_v59  ;;  %2112 = vrot.lane.b32.xlu2 %v2975_v43, %s3017_s3  ;;  %2980 = vpow2.f32 %v944_v35 }
 0x4ff   :  { %2982 = vpow2.f32 %v934_v1  ;;  %v4442_v57 = vpop.f32.mrf.mxu3  ;;  %v940_v23 = vmul.f32 1.442695, %v4915_v44 }
 0x502   :  { %v2977_v41 = vpop.eup %2976 }
 0x503   :  { %v2979_v53 = vpop.eup %2978  ;;  %2102 = vrot.lane.b32.xlu0 %v2977_v41, %s3017_s3 }
 0x504   :  { %1464 = vperm.xlu1 %2756, %v2979_v53   ;;  %v4426_v5 = vld [vmem:[#allocation3 + $0xc0] sm:$0xff]  ;;  %v2981_v47 = vpop.eup %2980 }
 0x505   :  { %v1987_v56 = vmax.f32 %v4426_v5, 1e-06  ;;  %v2983_v42 = vpop.eup %2982 }
 0x506   :  { %1484 = vperm.xlu2 %2757, %v2981_v47   ;;  %v1320_v47 = vld [vmem:[#allocation3 + $0xa0] sm:$0xff] }
 0x507   :  { %2984 = vrcp.f32 %v1987_v56  ;;  %v4448_v19 = vpop.f32.mrf.mxu3  ;;  %v1801_v56 = vadd.f32 %v4341_v17, %v4336_v24  ;;  %v1330_v17 = vld [vmem:[#allocation3 + $0xf0] sm:$0xff] }
 0x508   :  { %v2223_v59 = vpop.f32.mrf.mxu2 }
 0x509   :  { %v2317_v37 = vmul.f32 %v2223_v59, %v4176_v22 }
 0x50b   :  { %v2349_v39 = vpack.c.bf16 %v2317_v37, %v2317_v37  ;;  %1459 = vperm.xlu0 %2755, %v2983_v42  }
 0x50d   :  { %v2985_v48 = vpop.eup %2984  ;;  %2382 = vst.msk [vmem:[%s4710_s4 + $0x4] sm:$0xf] %vm2380_vm8, %v2349_v39 }
 0x50e   :  { %2118 = vrot.lane.b32.xlu2 %v2985_v48, %s3017_s3 }
 0x50f   :  { %v1817_v28 = vpop.f32.mrf.mxu3 }
 0x510   :  { %v1818_v8 = vadd.f32 %v1817_v28, %v4916_v45 }
 0x514   :  { %v2091_v51 = vpop.permute.xlu0 %2090 }
 0x515   :  { %2657 = vmatmul.msk.f32.gmra.mxu2 %vm2134_vm7, %v2091_v51 }
 0x517   :  { %v4457_v31 = vpop.f32.mrf.mxu3 }
 0x51c   :  { %v1430_v21 = vpop.permute.xlu0 %1429 }
 0x51d   :  { %v1511_v22 = vmul.f32 %v1430_v21, %v1319_v2 }
 0x51f   :  { %v1849_v15 = vadd.f32 %v1798_v55, %v1511_v22  ;;  %v4466_v53 = vpop.f32.mrf.mxu3  ;;  %v4917_v22 = vld [vmem:[#allocation27_spill] sm:$0xff] }
 0x521   :  { %1882 = vst.msk [vmem:[#allocation3 + $0x98] sm:$0xff] %vm55_vm2, %v1849_v15 }
 0x527   :  { %v1825_v55 = vpop.f32.mrf.mxu3 }
 0x528   :  { %v4439_v6 = vld [vmem:[#allocation3 + $0x98] sm:$0xff]  ;;  %v1826_v15 = vadd.f32 %v1825_v55, %v4917_v22  ;;  %v1326_v22 = vld [vmem:[#allocation3 + $0xd0] sm:$0xff] }
 0x529   :  { %v1982_v13 = vmax.f32 %v4439_v6, 1e-06 }
 0x52b   :  { %2986 = vrcp.f32 %v1982_v13 }
 0x52c   :  { %2988 = vpow2.f32 %v940_v23 }
 0x531   :  { %v2987_v0 = vpop.eup %2986 }
 0x532   :  { %2108 = vrot.lane.b32.xlu0 %v2987_v0, %s3017_s3  ;;  %v2989_v16 = vpop.eup %2988 }
 0x53a   :  { %1474 = vperm.xlu0 %2755, %v2989_v16   ;;  %v1323_v16 = vld [vmem:[#allocation3 + $0xb8] sm:$0xff] }
 0x542   :  { %v2226_v58 = vpop.f32.mrf.mxu2 }
 0x543   :  { %v2318_v7 = vmul.f32 %v2226_v58, %v4205_v49 }
 0x545   :  { %v2350_v60 = vpack.c.bf16 %v2318_v7, %v2318_v7 }
 0x547   :  { %2383 = vst.msk [vmem:[%s4710_s4 + $0x8] sm:$0xf] %vm2380_vm8, %v2350_v60 }
 0x548   :  { %v4455_v50 = vpop.permute.xlu2 %2106 }
 0x54a   :  { %v2229_v61 = vpop.f32.mrf.mxu2 }
 0x54b   :  { %v2319_v35 = vmul.f32 %v2229_v61, %v4171_v25 }
 0x54d   :  { %v2351_v33 = vpack.c.bf16 %v2319_v35, %v2319_v35  ;;  %v4919_v35 = vld [vmem:[#allocation45_spill] sm:$0xff] }
 0x54e   :  { %v2093_v43 = vpop.permute.xlu1 %2092 }
 0x54f   :  { %2384 = vst.msk [vmem:[%s4710_s4 + $0xc] sm:$0xf] %vm2380_vm8, %v2351_v33  ;;  %2658 = vmatmul.msk.f32.gmra.mxu2 %vm2134_vm7, %v2093_v43  ;;  %v4920_v33 = vld [vmem:[#allocation46_spill] sm:$0xff] }
 0x550   :  { %v1470_v49 = vpop.permute.xlu2 %1469  ;;  %v4921_v43 = vsub.f32 %v4919_v35, %v4920_v33  ;;  %v4926_v35 = vld [vmem:[#allocation53_spill] sm:$0xff] }
 0x551   :  { %v1519_v1 = vmul.f32 %v1470_v49, %v1327_v34 }
 0x552   :  { %v942_v34 = vmul.f32 1.442695, %v4921_v43 }
 0x553   :  { %v1857_v41 = vadd.f32 %v1818_v8, %v1519_v1 }
 0x555   :  { %1890 = vst.msk [vmem:[#allocation3 + $0xd8] sm:$0xff] %vm55_vm2, %v1857_v41  ;;  %v1322_v41 = vld [vmem:[#allocation3 + $0xb0] sm:$0xff] }
 0x556   :  { %v1435_v25 = vpop.permute.xlu1 %1434 }
 0x557   :  { %v1512_v59 = vmul.f32 %v1435_v25, %v1320_v47  ;;  %2659 = vmatmul.msk.f32.gmra.mxu2 %vm2134_vm7, %v4354_v9 }
 0x558   :  { %v4473_v37 = vpop.permute.xlu2 %2112 }
 0x559   :  { %v1850_v42 = vadd.f32 %v1801_v56, %v1512_v59  ;;  %v2232_v39 = vpop.f32.mrf.mxu2  ;;  %v4922_v59 = vld [vmem:[#allocation8_spill] sm:$0xff] }
 0x55a   :  { %v2320_v48 = vmul.f32 %v2232_v39, %v4230_v54 }
 0x55b   :  { %1883 = vst.msk [vmem:[#allocation3 + $0xa0] sm:$0xff] %vm55_vm2, %v1850_v42  ;;  %v1806_v42 = vadd.f32 %v4367_v12, %v4922_v59 }
 0x55c   :  { %v2352_v51 = vpack.c.bf16 %v2320_v48, %v2320_v48  ;;  %v4477_v2 = vld [vmem:[#allocation3 + $0xd8] sm:$0xff] }
 0x55d   :  { %v1990_v21 = vmax.f32 %v4477_v2, 1e-06 }
 0x55e   :  { %2385 = vst.msk [vmem:[%s4710_s4 + $0x10] sm:$0xf] %vm2380_vm8, %v2352_v51  ;;  %v2099_v24 = vpop.permute.xlu1 %2098 }
 0x55f   :  { %2990 = vrcp.f32 %v1990_v21 }
 0x560   :  { %v1485_v9 = vpop.permute.xlu2 %1484 }
 0x561   :  { %v1522_v54 = vmul.f32 %v1485_v9, %v1330_v17  ;;  %v2235_v13 = vpop.f32.mrf.mxu2 }
 0x562   :  { %v2321_v27 = vmul.f32 %v2235_v13, %v4219_v63  ;;  %v4486_v11 = vld [vmem:[#allocation3 + $0xa0] sm:$0xff]  ;;  %v4918_v63 = vld [vmem:[#allocation20_spill] sm:$0xff] }
 0x563   :  { %v1860_v44 = vadd.f32 %v1826_v15, %v1522_v54  ;;  %v1983_v23 = vmax.f32 %v4486_v11, 1e-06  ;;  %v1808_v60 = vadd.f32 %v4390_v32, %v4918_v63 }
 0x564   :  { %v2353_v0 = vpack.c.bf16 %v2321_v27, %v2321_v27 }
 0x565   :  { %v2991_v28 = vpop.eup %2990  ;;  %1893 = vst.msk [vmem:[#allocation3 + $0xf0] sm:$0xff] %vm55_vm2, %v1860_v44  ;;  %v2097_v58 = vpop.permute.xlu0 %2096  ;;  %2992 = vrcp.f32 %v1983_v23 }
 0x566   :  { %2386 = vst.msk [vmem:[%s4710_s4 + $0x14] sm:$0xf] %vm2380_vm8, %v2353_v0  ;;  %v1450_v7 = vpop.permute.xlu1 %1449  ;;  %2660 = vmatmul.msk.f32.gmra.mxu2 %vm2134_vm7, %v2097_v58  ;;  %2124 = vrot.lane.b32.xlu2 %v2991_v28, %s3017_s3  ;;  %2994 = vpow2.f32 %v942_v34 }
 0x567   :  { %v1515_v61 = vmul.f32 %v1450_v7, %v1323_v16  ;;  %v1325_v7 = vld [vmem:[#allocation3 + $0xc8] sm:$0xff] }
 0x569   :  { %v1853_v49 = vadd.f32 %v1808_v60, %v1515_v61  ;;  %v2238_v45 = vpop.f32.mrf.mxu2  ;;  %v4924_v60 = vld [vmem:[#allocation9_spill] sm:$0xff]  ;;  %v4925_v61 = vld [vmem:[#allocation52_spill] sm:$0xff] }
 0x56a   :  { %v2322_v8 = vmul.f32 %v2238_v45, %v4186_v46  ;;  %v4927_v33 = vsub.f32 %v4925_v61, %v4926_v35 }
 0x56b   :  { %v2993_v1 = vpop.eup %2992  ;;  %1886 = vst.msk [vmem:[#allocation3 + $0xb8] sm:$0xff] %vm55_vm2, %v1853_v49 }
 0x56c   :  { %v2354_v47 = vpack.c.bf16 %v2322_v8, %v2322_v8  ;;  %2110 = vrot.lane.b32.xlu1 %v2993_v1, %s3017_s3  ;;  %v4504_v25 = vld [vmem:[#allocation3 + $0xf0] sm:$0xff]  ;;  %v2995_v17 = vpop.eup %2994  ;;  %v946_v43 = vmul.f32 1.442695, %v4927_v33 }
 0x56d   :  { %v1445_v32 = vpop.permute.xlu0 %1444  ;;  %v1993_v56 = vmax.f32 %v4504_v25, 1e-06 }
 0x56e   :  { %2387 = vst.msk [vmem:[%s4710_s4 + $0x18] sm:$0xf] %vm2380_vm8, %v2354_v47  ;;  %v1514_v46 = vmul.f32 %v1445_v32, %v1322_v41  ;;  %v2105_v39 = vpop.permute.xlu1 %2104  ;;  %2661 = vmatmul.msk.f32.gmra.mxu2 %vm2134_vm7, %v2099_v24 }
 0x56f   :  { %2996 = vrcp.f32 %v1993_v56 }
 0x570   :  { %v1852_v48 = vadd.f32 %v1806_v42, %v1514_v46 }
 0x571   :  { %v2241_v51 = vpop.f32.mrf.mxu2 }
 0x572   :  { %1885 = vst.msk [vmem:[#allocation3 + $0xb0] sm:$0xff] %vm55_vm2, %v1852_v48  ;;  %v2323_v21 = vmul.f32 %v2241_v51, %v4247_v36  ;;  %v4516_v55 = vld [vmem:[#allocation3 + $0xb8] sm:$0xff]  ;;  %v4923_v36 = vld [vmem:[#allocation7_spill] sm:$0xff]  ;;  %v1328_v51 = vld [vmem:[#allocation3 + $0xe0] sm:$0xff] }
 0x573   :  { %v1986_v12 = vmax.f32 %v4516_v55, 1e-06  ;;  %v1816_v13 = vadd.f32 %v4448_v19, %v4923_v36  ;;  %v1813_v19 = vadd.f32 %v4442_v57, %v4924_v60 }
 0x574   :  { %v2355_v9 = vpack.c.bf16 %v2323_v21, %v2323_v21  ;;  %1479 = vperm.xlu1 %2756, %v2995_v17   ;;  %v4928_v21 = vld [vmem:[#allocation41_spill] sm:$0xff] }
 0x575   :  { %v2997_v15 = vpop.eup %2996  ;;  %v2103_v54 = vpop.permute.xlu0 %2102  ;;  %2998 = vrcp.f32 %v1986_v12  ;;  %v1821_v17 = vadd.f32 %v4457_v31, %v4928_v21 }
 0x576   :  { %2388 = vst.msk [vmem:[%s4710_s4 + $0x1c] sm:$0xf] %vm2380_vm8, %v2355_v9  ;;  %v1465_v24 = vpop.permute.xlu1 %1464  ;;  %2662 = vmatmul.msk.f32.gmra.mxu2 %vm2134_vm7, %v4395_v18  ;;  %2130 = vrot.lane.b32.xlu2 %v2997_v15, %s3017_s3 }
 0x577   :  { %v1518_v27 = vmul.f32 %v1465_v24, %v1326_v22 }
 0x579   :  { %v1856_v44 = vadd.f32 %v1816_v13, %v1518_v27  ;;  %v2244_v23 = vpop.f32.mrf.mxu2  ;;  %v4528_v0 = vld [vmem:[#allocation3 + $0xb0] sm:$0xff] }
 0x57a   :  { %v2324_v16 = vmul.f32 %v2244_v23, %v4235_v40  ;;  %v1985_v28 = vmax.f32 %v4528_v0, 1e-06  ;;  %v1329_v23 = vld [vmem:[#allocation3 + $0xe8] sm:$0xff] }
 0x57b   :  { %v2999_v58 = vpop.eup %2998  ;;  %1889 = vst.msk [vmem:[#allocation3 + $0xd0] sm:$0xff] %vm55_vm2, %v1856_v44 }
 0x57c   :  { %v2356_v63 = vpack.c.bf16 %v2324_v16, %v2324_v16  ;;  %2116 = vrot.lane.b32.xlu1 %v2999_v58, %s3017_s3  ;;  %3000 = vrcp.f32 %v1985_v28  ;;  %v4929_v16 = vld [vmem:[#allocation26_spill] sm:$0xff] }
 0x57d   :  { %v1460_v18 = vpop.permute.xlu0 %1459  ;;  %3002 = vpow2.f32 %v946_v43  ;;  %v1823_v28 = vadd.f32 %v4466_v53, %v4929_v16  ;;  %v1827_v43 = vpop.f32.mrf.mxu3 }
 0x57e   :  { %2389 = vst.msk [vmem:[%s4710_s4 + $0x20] sm:$0xf] %vm2380_vm8, %v2356_v63  ;;  %v1517_v40 = vmul.f32 %v1460_v18, %v1325_v7  ;;  %2663 = vmatmul.msk.f32.gmra.mxu2 %vm2134_vm7, %v2103_v54 }
 0x580   :  { %v1855_v34 = vadd.f32 %v1813_v19, %v1517_v40 }
 0x581   :  { %v2247_v49 = vpop.f32.mrf.mxu2 }
 0x582   :  { %v3001_v45 = vpop.eup %3000  ;;  %1888 = vst.msk [vmem:[#allocation3 + $0xc8] sm:$0xff] %vm55_vm2, %v1855_v34  ;;  %v2325_v8 = vmul.f32 %v2247_v49, %v4262_v14  ;;  %v4547_v1 = vld [vmem:[#allocation3 + $0xd0] sm:$0xff] }
 0x583   :  { %2114 = vrot.lane.b32.xlu0 %v3001_v45, %s3017_s3  ;;  %v1989_v41 = vmax.f32 %v4547_v1, 1e-06  ;;  %v3003_v32 = vpop.eup %3002 }
 0x584   :  { %v2357_v57 = vpack.c.bf16 %v2325_v8, %v2325_v8  ;;  %v4930_v8 = vld [vmem:[#allocation28_spill] sm:$0xff] }
 0x585   :  { %3004 = vrcp.f32 %v1989_v41 }
 0x586   :  { %2390 = vst.msk [vmem:[%s4710_s4 + $0x24] sm:$0xf] %vm2380_vm8, %v2357_v57  ;;  %2664 = vmatmul.msk.f32.gmra.mxu2 %vm2134_vm7, %v2105_v39  ;;  %v1828_v57 = vadd.f32 %v1827_v43, %v4930_v8 }
 0x589   :  { %v4555_v47 = vld [vmem:[#allocation3 + $0xc8] sm:$0xff] }
 0x58a   :  { %v1988_v14 = vmax.f32 %v4555_v47, 1e-06 }
 0x58b   :  { %1489 = vperm.xlu0 %2755, %v3003_v32   ;;  %v3005_v56 = vpop.eup %3004 }
 0x58c   :  { %3006 = vrcp.f32 %v1988_v14 }
 0x58e   :  { %2665 = vmatmul.msk.f32.gmra.mxu2 %vm2134_vm7, %v4455_v50 }
 0x592   :  { %v3007_v59 = vpop.eup %3006 }
 0x593   :  { %2120 = vrot.lane.b32.xlu1 %v3007_v59, %s3017_s3  ;;  %2122 = vrot.lane.b32.xlu0 %v3005_v56, %s3017_s3  ;;  %v2119_v59 = vpop.permute.xlu2 %2118 }
 0x598   :  { %v2250_v42 = vpop.f32.mrf.mxu2 }
 0x599   :  { %v2326_v46 = vmul.f32 %v2250_v42, %v4304_v52 }
 0x59b   :  { %v2358_v39 = vpack.c.bf16 %v2326_v46, %v2326_v46 }
 0x59d   :  { %2391 = vst.msk [vmem:[%s4710_s4 + $0x28] sm:$0xf] %vm2380_vm8, %v2358_v39 }
 0x5a4   :  { %v2109_v48 = vpop.permute.xlu0 %2108 }
 0x5a5   :  { %2666 = vmatmul.msk.f32.gmra.mxu2 %vm2134_vm7, %v2109_v48 }
 0x5ac   :  { %v1475_v50 = vpop.permute.xlu0 %1474 }
 0x5ad   :  { %v1520_v12 = vmul.f32 %v1475_v50, %v1328_v51 }
 0x5af   :  { %v1858_v9 = vadd.f32 %v1821_v17, %v1520_v12 }
 0x5b1   :  { %1891 = vst.msk [vmem:[#allocation3 + $0xe0] sm:$0xff] %vm55_vm2, %v1858_v9 }
 0x5b8   :  { %v4571_v22 = vld [vmem:[#allocation3 + $0xe0] sm:$0xff] }
 0x5b9   :  { %v1991_v52 = vmax.f32 %v4571_v22, 1e-06 }
 0x5bb   :  { %3008 = vrcp.f32 %v1991_v52 }
 0x5c0   :  { %v2125_v9 = vpop.permute.xlu2 %2124 }
 0x5c1   :  { %v3009_v15 = vpop.eup %3008 }
 0x5c2   :  { %2126 = vrot.lane.b32.xlu1 %v3009_v15, %s3017_s3 }
 0x5d2   :  { %v2253_v54 = vpop.f32.mrf.mxu2 }
 0x5d3   :  { %v2327_v24 = vmul.f32 %v2253_v54, %v4333_v20 }
 0x5d5   :  { %v2359_v36 = vpack.c.bf16 %v2327_v24, %v2327_v24 }
 0x5d7   :  { %2392 = vst.msk [vmem:[%s4710_s4 + $0x2c] sm:$0xf] %vm2380_vm8, %v2359_v36 }
 0x5da   :  { %v2256_v31 = vpop.f32.mrf.mxu2 }
 0x5db   :  { %v2328_v13 = vmul.f32 %v2256_v31, %v4283_v10 }
 0x5dd   :  { %v2360_v27 = vpack.c.bf16 %v2328_v13, %v2328_v13 }
 0x5de   :  { %v2111_v44 = vpop.permute.xlu1 %2110 }
 0x5df   :  { %2393 = vst.msk [vmem:[%s4710_s4 + $0x30] sm:$0xf] %vm2380_vm8, %v2360_v27  ;;  %2667 = vmatmul.msk.f32.gmra.mxu2 %vm2134_vm7, %v2111_v44 }
 0x5e6   :  { %v1480_v20 = vpop.permute.xlu1 %1479 }
 0x5e7   :  { %v1521_v58 = vmul.f32 %v1480_v20, %v1329_v23  ;;  %2668 = vmatmul.msk.f32.gmra.mxu2 %vm2134_vm7, %v4473_v37  ;;  %v2131_v23 = vpop.permute.xlu2 %2130 }
 0x5e9   :  { %v1859_v7 = vadd.f32 %v1823_v28, %v1521_v58  ;;  %v2259_v10 = vpop.f32.mrf.mxu2 }
 0x5ea   :  { %v2329_v63 = vmul.f32 %v2259_v10, %v4373_v38 }
 0x5eb   :  { %1892 = vst.msk [vmem:[#allocation3 + $0xe8] sm:$0xff] %vm55_vm2, %v1859_v7 }
 0x5ec   :  { %v2361_v18 = vpack.c.bf16 %v2329_v63, %v2329_v63 }
 0x5ee   :  { %2394 = vst.msk [vmem:[%s4710_s4 + $0x34] sm:$0xf] %vm2380_vm8, %v2361_v18  ;;  %v2117_v49 = vpop.permute.xlu1 %2116 }
 0x5f1   :  { %v2262_v60 = vpop.f32.mrf.mxu2 }
 0x5f2   :  { %v2330_v19 = vmul.f32 %v2262_v60, %v4357_v29  ;;  %v4597_v53 = vld [vmem:[#allocation3 + $0xe8] sm:$0xff]  ;;  %v1331_v29 = vld [vmem:[#allocation3 + $0xf8] sm:$0xff] }
 0x5f3   :  { %v1992_v40 = vmax.f32 %v4597_v53, 1e-06 }
 0x5f4   :  { %v2362_v37 = vpack.c.bf16 %v2330_v19, %v2330_v19 }
 0x5f5   :  { %v2115_v61 = vpop.permute.xlu0 %2114  ;;  %3010 = vrcp.f32 %v1992_v40 }
 0x5f6   :  { %2395 = vst.msk [vmem:[%s4710_s4 + $0x38] sm:$0xf] %vm2380_vm8, %v2362_v37  ;;  %2669 = vmatmul.msk.f32.gmra.mxu2 %vm2134_vm7, %v2115_v61 }
 0x5f9   :  { %v2265_v38 = vpop.f32.mrf.mxu2 }
 0x5fa   :  { %v2331_v35 = vmul.f32 %v2265_v38, %v4292_v4 }
 0x5fb   :  { %v3011_v33 = vpop.eup %3010 }
 0x5fc   :  { %v2363_v34 = vpack.c.bf16 %v2331_v35, %v2331_v35  ;;  %2128 = vrot.lane.b32.xlu0 %v3011_v33, %s3017_s3 }
 0x5fd   :  { %v1490_v45 = vpop.permute.xlu0 %1489 }
 0x5fe   :  { %2396 = vst.msk [vmem:[%s4710_s4 + $0x3c] sm:$0xf] %vm2380_vm8, %v2363_v34  ;;  %v1523_v41 = vmul.f32 %v1490_v45, %v1331_v29  ;;  %2670 = vmatmul.msk.f32.gmra.mxu2 %vm2134_vm7, %v2117_v49 }
 0x600   :  { %v1861_v32 = vadd.f32 %v1828_v57, %v1523_v41 }
 0x601   :  { %v2268_v4 = vpop.f32.mrf.mxu2 }
 0x602   :  { %1894 = vst.msk [vmem:[#allocation3 + $0xf8] sm:$0xff] %vm55_vm2, %v1861_v32  ;;  %v2332_v14 = vmul.f32 %v2268_v4, %v4411_v3 }
 0x604   :  { %v2364_v56 = vpack.c.bf16 %v2332_v14, %v2332_v14 }
 0x605   :  { %v2121_v50 = vpop.permute.xlu1 %2120 }
 0x606   :  { %2397 = vst.msk [vmem:[%s4710_s4 + $0x40] sm:$0xf] %vm2380_vm8, %v2364_v56  ;;  %2671 = vmatmul.msk.f32.gmra.mxu2 %vm2134_vm7, %v2119_v59 }
 0x609   :  { %v2271_v42 = vpop.f32.mrf.mxu2  ;;  %v4620_v46 = vld [vmem:[#allocation3 + $0xf8] sm:$0xff] }
 0x60a   :  { %v2333_v39 = vmul.f32 %v2271_v42, %v4398_v30  ;;  %v1994_v48 = vmax.f32 %v4620_v46, 1e-06  ;;  %v2123_v30 = vpop.permute.xlu0 %2122 }
 0x60c   :  { %v2365_v51 = vpack.c.bf16 %v2333_v39, %v2333_v39  ;;  %3012 = vrcp.f32 %v1994_v48 }
 0x60e   :  { %2398 = vst.msk [vmem:[%s4710_s4 + $0x44] sm:$0xf] %vm2380_vm8, %v2365_v51  ;;  %2672 = vmatmul.msk.f32.gmra.mxu2 %vm2134_vm7, %v2121_v50 }
 0x611   :  { %v2274_v3 = vpop.f32.mrf.mxu2 }
 0x612   :  { %v3013_v21 = vpop.eup %3012  ;;  %v2334_v17 = vmul.f32 %v2274_v3, %v4360_v62 }
 0x613   :  { %2132 = vrot.lane.b32.xlu1 %v3013_v21, %s3017_s3 }
 0x614   :  { %v2366_v12 = vpack.c.bf16 %v2334_v17, %v2334_v17 }
 0x616   :  { %2399 = vst.msk [vmem:[%s4710_s4 + $0x48] sm:$0xf] %vm2380_vm8, %v2366_v12  ;;  %2673 = vmatmul.msk.f32.gmra.mxu2 %vm2134_vm7, %v2123_v30 }
 0x61e   :  { %2674 = vmatmul.msk.f32.gmra.mxu2 %vm2134_vm7, %v2125_v9 }
 0x628   :  { %v2277_v52 = vpop.f32.mrf.mxu2 }
 0x629   :  { %v2335_v15 = vmul.f32 %v2277_v52, %v4439_v6 }
 0x62b   :  { %v2367_v54 = vpack.c.bf16 %v2335_v15, %v2335_v15 }
 0x62d   :  { %2400 = vst.msk [vmem:[%s4710_s4 + $0x4c] sm:$0xf] %vm2380_vm8, %v2367_v54 }
 0x634   :  { %v2127_v62 = vpop.permute.xlu1 %2126 }
 0x635   :  { %2675 = vmatmul.msk.f32.gmra.mxu2 %vm2134_vm7, %v2127_v62 }
 0x662   :  { %v2280_v24 = vpop.f32.mrf.mxu2 }
 0x663   :  { %v2336_v36 = vmul.f32 %v2280_v24, %v4486_v11 }
 0x665   :  { %v2368_v31 = vpack.c.bf16 %v2336_v36, %v2336_v36 }
 0x667   :  { %2401 = vst.msk [vmem:[%s4710_s4 + $0x50] sm:$0xf] %vm2380_vm8, %v2368_v31 }
 0x66a   :  { %v2283_v13 = vpop.f32.mrf.mxu2 }
 0x66b   :  { %v2337_v6 = vmul.f32 %v2283_v13, %v4402_v26 }
 0x66d   :  { %v2369_v27 = vpack.c.bf16 %v2337_v6, %v2337_v6 }
 0x66e   :  { %v2129_v44 = vpop.permute.xlu0 %2128 }
 0x66f   :  { %2402 = vst.msk [vmem:[%s4710_s4 + $0x54] sm:$0xf] %vm2380_vm8, %v2369_v27  ;;  %2676 = vmatmul.msk.f32.gmra.mxu2 %vm2134_vm7, %v2129_v44 }
 0x677   :  { %2677 = vmatmul.msk.f32.gmra.mxu2 %vm2134_vm7, %v2131_v23 }
 0x679   :  { %v2286_v11 = vpop.f32.mrf.mxu2 }
 0x67a   :  { %v2338_v20 = vmul.f32 %v2286_v11, %v4528_v0 }
 0x67c   :  { %v2370_v16 = vpack.c.bf16 %v2338_v20, %v2338_v20 }
 0x67e   :  { %2403 = vst.msk [vmem:[%s4710_s4 + $0x58] sm:$0xf] %vm2380_vm8, %v2370_v16 }
 0x681   :  { %v2289_v26 = vpop.f32.mrf.mxu2 }
 0x682   :  { %v2339_v28 = vmul.f32 %v2289_v26, %v4516_v55 }
 0x684   :  { %v2371_v58 = vpack.c.bf16 %v2339_v28, %v2339_v28 }
 0x685   :  { %v2133_v7 = vpop.permute.xlu1 %2132 }
 0x686   :  { %2404 = vst.msk [vmem:[%s4710_s4 + $0x5c] sm:$0xf] %vm2380_vm8, %v2371_v58  ;;  %2678 = vmatmul.msk.f32.gmra.mxu2 %vm2134_vm7, %v2133_v7 }
 0x689   :  { %v2292_v10 = vpop.f32.mrf.mxu2 }
 0x68a   :  { %v2340_v0 = vmul.f32 %v2292_v10, %v4426_v5 }
 0x68c   :  { %v2372_v63 = vpack.c.bf16 %v2340_v0, %v2340_v0 }
 0x68e   :  { %2405 = vst.msk [vmem:[%s4710_s4 + $0x60] sm:$0xf] %vm2380_vm8, %v2372_v63 }
 0x691   :  { %v2295_v18 = vpop.f32.mrf.mxu2 }
 0x692   :  { %v2341_v55 = vmul.f32 %v2295_v18, %v4555_v47 }
 0x694   :  { %v2373_v60 = vpack.c.bf16 %v2341_v55, %v2341_v55 }
 0x696   :  { %2406 = vst.msk [vmem:[%s4710_s4 + $0x64] sm:$0xf] %vm2380_vm8, %v2373_v60 }
 0x699   :  { %v2298_v19 = vpop.f32.mrf.mxu2 }
 0x69a   :  { %v2342_v40 = vmul.f32 %v2298_v19, %v4547_v1 }
 0x69c   :  { %v2374_v37 = vpack.c.bf16 %v2342_v40, %v2342_v40 }
 0x69e   :  { %2407 = vst.msk [vmem:[%s4710_s4 + $0x68] sm:$0xf] %vm2380_vm8, %v2374_v37 }
 0x6a1   :  { %v2301_v5 = vpop.f32.mrf.mxu2 }
 0x6a2   :  { %v2343_v61 = vmul.f32 %v2301_v5, %v4477_v2 }
 0x6a4   :  { %v2375_v38 = vpack.c.bf16 %v2343_v61, %v2343_v61 }
 0x6a6   :  { %2408 = vst.msk [vmem:[%s4710_s4 + $0x6c] sm:$0xf] %vm2380_vm8, %v2375_v38 }
 0x6b8   :  { %v2304_v47 = vpop.f32.mrf.mxu2 }
 0x6b9   :  { %v2344_v35 = vmul.f32 %v2304_v47, %v4571_v22 }
 0x6bb   :  { %v2376_v33 = vpack.c.bf16 %v2344_v35, %v2344_v35 }
 0x6bd   :  { %2409 = vst.msk [vmem:[%s4710_s4 + $0x70] sm:$0xf] %vm2380_vm8, %v2376_v33 }
 0x6f2   :  { %v2307_v1 = vpop.f32.mrf.mxu2 }
 0x6f3   :  { %v2345_v43 = vmul.f32 %v2307_v1, %v4597_v53 }
 0x6f5   :  { %v2377_v29 = vpack.c.bf16 %v2345_v43, %v2345_v43 }
 0x6f7   :  { %2410 = vst.msk [vmem:[%s4710_s4 + $0x74] sm:$0xf] %vm2380_vm8, %v2377_v29 }
 0x6fa   :  { %v2310_v2 = vpop.f32.mrf.mxu2 }
 0x6fb   :  { %v2346_v34 = vmul.f32 %v2310_v2, %v4504_v25 }
 0x6fd   :  { %v2378_v49 = vpack.c.bf16 %v2346_v34, %v2346_v34 }
 0x6ff   :  { %2411 = vst.msk [vmem:[%s4710_s4 + $0x78] sm:$0xf] %vm2380_vm8, %v2378_v49 }
 0x709   :  { %v2313_v22 = vpop.f32.mrf.mxu2 }
 0x70a   :  { %v2347_v45 = vmul.f32 %v2313_v22, %v4620_v46 }
 0x70c   :  { %v2379_v8 = vpack.c.bf16 %v2347_v45, %v2347_v45 }
 0x70e   :  { %2412 = vst.msk [vmem:[%s4710_s4 + $0x7c] sm:$0xf] %vm2380_vm8, %v2379_v8 }

</bundles_post_ra>
